<compile_context>
chip_gen: v5e
topology: v5e:2x2
jax: 0.10.0
libtpu: 0.0.40
codegen_flags: <defaults>
</compile_context>

<pallas_src>
import functools

import jax
import jax.numpy as jnp
from jax.experimental import pallas as pl
from jax.experimental.pallas import tpu as pltpu

NINF_VALUE = -9999.0

_SMEM = pl.BlockSpec(memory_space=pltpu.MemorySpace.SMEM)


# ----------------------------------------------------------------------------
# budgets / tiling
# ----------------------------------------------------------------------------
def _vmem_limit_bytes():
    """Generation-dependent VMEM budget: 64 MiB on the 128-MiB parts (v5*/v6*),
    conservative 32 MiB otherwise (v7x: 64 MiB physical / 32 MiB scoped default)."""
    try:
        kind = jax.devices()[0].device_kind.lower()
    except Exception:
        kind = ""
    if "v5" in kind or "v6" in kind:
        return 64 * 1024 * 1024
    return 32 * 1024 * 1024


def _choose_h_tile(H, WD, out_rows, acc_rows, vmem_limit):
    """Tile of the H axis: a multiple of 8 dividing H (or H itself), sized so the per-step
    working set (double-buffered x/out blocks + live accumulators + scratch) stays within
    ~half the VMEM budget, preferring >=2 grid steps (v7x has 2 TensorCores)."""
    bytes_per_row = 4 * WD

    def step_bytes(th):
        # 2x x-block + 2x out-block (double buffered) + acc_rows accumulators + 1 scratch
        return th * bytes_per_row * (2 + 2 * out_rows + acc_rows + 1)

    cands = [t for t in range(8, H + 1, 8) if H % t == 0] or [H]
    fit = [t for t in cands if step_bytes(t) <= vmem_limit // 2] or [min(cands)]
    multi = [t for t in fit if H // t >= 2]
    return max(multi) if multi else max(fit)


# ----------------------------------------------------------------------------
# shared in-kernel helper: point-wise encoder layer-1 + folded heads
# ----------------------------------------------------------------------------
def _accumulate_heads(x, w1_ref, b1_ref, w2e_ref, n_rows, feat):
    """acc[b] = sum_f w2e[b, f] * gelu(x * w1[f] + b1[f]);  x is the (th, W*D) image tile.
    Fully lane-dense: every gelu / FMA pass runs over the whole (th, W*D) tile."""
    accs = None
    for f in range(feat):
        hf = jax.nn.gelu(x * w1_ref[f] + b1_ref[f], approximate=True)
        terms = [w2e_ref[b, f] * hf for b in range(n_rows)]
        accs = terms if accs is None else [a + t for a, t in zip(accs, terms)]
    return accs


# ----------------------------------------------------------------------------
# Kernel A: fused encoder + head(s), no combine (class-only / point-only paths)
# ----------------------------------------------------------------------------
def _encoder_heads_kernel(x_ref, w1_ref, b1_ref, w2e_ref, bias_ref, mask_ref, out_ref,
                          *, n_rows, feat):
    accs = _accumulate_heads(x_ref[...], w1_ref, b1_ref, w2e_ref, n_rows, feat)
    for b in range(n_rows):
        m = (mask_ref[b] != 0).astype(jnp.float32)      # row-level mapping_index mask
        out_ref[b] = (accs[b] + bias_ref[b]) * m + (1.0 - m) * NINF_VALUE


def fused_encoder_heads(x_hwd, w1, b1, w2e, bias, row_mask, *, th, vmem_limit):
    H, WD = x_hwd.shape
    R, feat = w2e.shape
    kernel = functools.partial(_encoder_heads_kernel, n_rows=R, feat=feat)
    return pl.pallas_call(
        kernel,
        out_shape=jax.ShapeDtypeStruct((R, H, WD), jnp.float32),
        grid=(H // th,),
        in_specs=[pl.BlockSpec((th, WD), lambda i: (i, 0)),   # lane-dense image tile
                  _SMEM, _SMEM, _SMEM, _SMEM, _SMEM],         # w1, b1, w2e, bias, row_mask
        out_specs=pl.BlockSpec((R, th, WD), lambda i: (0, i, 0)),
        compiler_params=pltpu.CompilerParams(
            dimension_semantics=("parallel",), vmem_limit_bytes=vmem_limit),
    )(x_hwd, w1, b1, w2e, bias, row_mask)


# ----------------------------------------------------------------------------
# Kernel B: fused encoder + class_head + point_head + gaussian_combine epilogue
# ----------------------------------------------------------------------------
def _encoder_heads_gaussian_kernel(x_ref, w1_ref, b1_ref, w2e_ref, bias_ref,
                                   pts_ref, lbl_ref, cw_ref, cd_ref, out_ref, gsum_ref,
                                   *, n_pairs, n_points, feat, neg_inv):
    th = x_ref.shape[0]
    # rows 0..n_pairs-1: class-head logits; rows n_pairs..2*n_pairs-1: point-head logits
    accs = _accumulate_heads(x_ref[...], w1_ref, b1_ref, w2e_ref, 2 * n_pairs, feat)

    # Voxel coordinates: H from grid offset + (th, 1) sublane iota; W / D from tiny LUT rows.
    hh = (pl.program_id(0) * th
          + jax.lax.broadcasted_iota(jnp.int32, (th, 1), 0)).astype(jnp.float32)
    cw = cw_ref[...]                      # (1, wd) W-coordinate
    cd = cd_ref[...]                      # (1, wd) D-coordinate

    for b in range(n_pairs):
        gsum_ref[...] = jnp.zeros_like(gsum_ref)
        for n in range(n_points):
            @pl.when(lbl_ref[b, n] != -1)             # skip padded points entirely
            def _(b=b, n=n):
                px = pts_ref[b, n, 0]
                py = pts_ref[b, n, 1]
                pz = pts_ref[b, n, 2]
                # separable gaussian: exp(a*(dh^2 + dw^2 + dd^2)) = col(th,1) * row(1,wd)
                col = jnp.exp(neg_inv * (hh - px) * (hh - px))
                row = jnp.exp(neg_inv * ((cw - py) * (cw - py) + (cd - pz) * (cd - pz)))
                gsum_ref[...] = gsum_ref[...] + col * row
        w = jnp.maximum(1.0 - gsum_ref[...], 0.0)     # weight[weight < 0] = 0
        cls = accs[b] + bias_ref[b]
        pnt = accs[n_pairs + b] + bias_ref[n_pairs + b]
        out_ref[b] = cls * w + (1.0 - w) * pnt        # rows w/o valid points -> w==1 -> cls


def fused_encoder_heads_gaussian(x_hwd, w1, b1, w2e, bias, pts, lbl, radius, D,
                                 *, th, vmem_limit):
    H, WD = x_hwd.shape
    R2, feat = w2e.shape
    n_pairs = R2 // 2
    n_points = pts.shape[1]
    j = jnp.arange(WD, dtype=jnp.int32)
    cw = (j // D).astype(jnp.float32)[None, :]        # (1, WD) W-index LUT row
    cd = (j % D).astype(jnp.float32)[None, :]         # (1, WD) D-index LUT row
    neg_inv = -1.0 / (2.0 * float(radius) * float(radius))
    kernel = functools.partial(_encoder_heads_gaussian_kernel, n_pairs=n_pairs,
                               n_points=n_points, feat=feat, neg_inv=neg_inv)
    return pl.pallas_call(
        kernel,
        out_shape=jax.ShapeDtypeStruct((n_pairs, H, WD), jnp.float32),
        grid=(H // th,),
        in_specs=[pl.BlockSpec((th, WD), lambda i: (i, 0)),   # lane-dense image tile
                  _SMEM, _SMEM, _SMEM, _SMEM,                 # w1, b1, w2e, bias
                  _SMEM, _SMEM,                               # point coords, point labels
                  pl.BlockSpec((1, WD), lambda i: (0, 0)),    # W LUT row
                  pl.BlockSpec((1, WD), lambda i: (0, 0))],   # D LUT row
        out_specs=pl.BlockSpec((n_pairs, th, WD), lambda i: (0, i, 0)),
        scratch_shapes=[pltpu.VMEM((th, WD), jnp.float32)],   # per-row gaussian accumulator
        compiler_params=pltpu.CompilerParams(
            dimension_semantics=("parallel",), vmem_limit_bytes=vmem_limit),
    )(x_hwd, w1, b1, w2e, bias, pts, lbl, cw, cd)


# ----------------------------------------------------------------------------
# VISTA3D2 (synthetic image_encoder / class_head / point_head, deterministic init)
# ----------------------------------------------------------------------------
class VISTA3D2Pallas:
    def __init__(self, feature_size=32, num_classes=8, key=None):
        if key is None:
            key = jax.random.PRNGKey(0)
        F = feature_size
        ks = jax.random.split(key, 10)
        sf = lambda k, shape, s=0.1: (s * jax.random.normal(k, shape)).astype(jnp.float32)

        # synthetic image_encoder (point-wise MLP, stands in for the 3D UNet encoder)
        self.enc_w1 = sf(ks[0], (F,))
        self.enc_b1 = jnp.zeros((F,), jnp.float32)
        self.enc_w2 = sf(ks[1], (F, F))
        self.enc_b2 = jnp.zeros((F,), jnp.float32)

        # synthetic class_head: class embedding table + per-class bias
        self.num_classes = num_classes
        self.class_emb = sf(ks[2], (num_classes, F))
        self.class_bias = sf(ks[3], (num_classes,))

        # synthetic point_head: point coord projection + point-label embedding table
        self.point_wc = sf(ks[4], (3, F))
        self.point_lbl_emb = sf(ks[5], (4, F))  # labels 0..3

        # weight_mapper from __init__ (parameter fidelity only; unused by forward())
        self.wm_w1 = sf(ks[6], (F, 4 * F))
        self.wm_b1 = jnp.zeros((4 * F,), jnp.float32)
        self.wm_w2 = sf(ks[7], (4 * F, 1))
        self.wm_b2 = jnp.zeros((1,), jnp.float32)

        self.feature_size = F
        self.auto_freeze = False
        self.point_freeze = False
        self.image_embeddings = None

    # ------------------------------------------------------------------
    def _point_embedding(self, point_coords, point_labels, prompt_class, image_size):
        H, W, D = image_size
        valid = (point_labels != -1).astype(jnp.float32)                        # [B, N]
        lbl = jnp.clip(point_labels, 0, 3)
        norm = jnp.asarray([H, W, D], jnp.float32)
        per_pt = (point_coords / norm) @ self.point_wc + self.point_lbl_emb[lbl]  # [B,N,F]
        per_pt = per_pt * valid[..., None]
        obj_emb = per_pt.sum(1) / jnp.maximum(valid.sum(1, keepdims=True), 1.0)   # [B,F]
        if prompt_class is not None:
            obj_emb = obj_emb + self.class_emb[
                jnp.clip(prompt_class[:, 0], 0, self.num_classes - 1)]
        return obj_emb

    # ------------------------------------------------------------------
    def forward(self, input_images, point_coords=None, point_labels=None,
                class_vector=None, prompt_class=None, patch_coords=None,
                prev_mask=None, radius=None, **kwargs):
        image_size = input_images.shape[-3:]
        H, W, D = image_size
        if point_coords is None and class_vector is None:
            return NINF_VALUE + jnp.zeros((1, 1, *image_size), jnp.float32)
        bs = class_vector.shape[0] if class_vector is not None else point_coords.shape[0]

        # TODO(synk): patch_coords / label_set sliding-window paths (update_point_to_patch,
        # sample_points_patch_val, connected_components_combine via MONAI lcc) have no clean
        # static-shape Pallas equivalent and are not implemented.

        WD = W * D
        x_hwd = input_images.reshape(H, WD).astype(jnp.float32)    # lane-dense image slab
        vmem_limit = _vmem_limit_bytes()

        mapping_index = None
        if point_coords is not None and point_labels is not None:
            mapping_index = (point_labels != -1).sum(1) > 0

        if class_vector is not None:
            n_class = class_vector.shape[0]
            cls_idx = jnp.clip(class_vector[:, 0], 0, self.num_classes - 1)
            cls_emb = self.class_emb[cls_idx]                      # (n_class, F)
            cls_bias = self.class_bias[cls_idx]                    # (n_class,)

            if point_coords is not None and patch_coords is None:
                assert point_coords.shape[0] == n_class, (
                    "class+point path requires one point prompt per class prompt")
                if radius is None:
                    radius = max(1, min(image_size) // 5)          # clamp: radius >= 1
                pt_emb = self._point_embedding(point_coords, point_labels,
                                               prompt_class, image_size)
                emb_all = jnp.concatenate([cls_emb, pt_emb], axis=0)          # (2B, F)
                bias_all = jnp.concatenate(
                    [cls_bias, jnp.zeros((n_class,), jnp.float32)], axis=0)   # (2B,)
                # Fold encoder layer-2 (no nonlinearity after it) into the heads (tiny XLA ops).
                w2e = emb_all @ self.enc_w2.T                                 # (2B, F)
                bias_fold = emb_all @ self.enc_b2 + bias_all                  # (2B,)
                th = _choose_h_tile(H, WD, out_rows=n_class,
                                    acc_rows=2 * n_class, vmem_limit=vmem_limit)
                out = fused_encoder_heads_gaussian(
                    x_hwd, self.enc_w1, self.enc_b1, w2e, bias_fold,
                    point_coords.astype(jnp.float32), point_labels.astype(jnp.int32),
                    radius, D, th=th, vmem_limit=vmem_limit)       # (B, H, WD)
                # rows with no valid point get weight==1 everywhere -> class logits,
                # matching logits[mapping_index] semantics of the reference exactly.
                return out.reshape(n_class, 1, H, W, D)

            # class-only path
            w2e = cls_emb @ self.enc_w2.T
            bias_fold = cls_emb @ self.enc_b2 + cls_bias
            mask = jnp.ones((n_class,), jnp.int32)
            th = _choose_h_tile(H, WD, out_rows=n_class,
                                acc_rows=n_class, vmem_limit=vmem_limit)
            out = fused_encoder_heads(x_hwd, self.enc_w1, self.enc_b1, w2e, bias_fold,
                                      mask, th=th, vmem_limit=vmem_limit)
            return out.reshape(n_class, 1, H, W, D)

        # point-only path: NINF background, point logits for mapped objects
        mi = mapping_index
        mi = jnp.where(jnp.any(mi), mi, jnp.ones_like(mi))          # reference's fill_(True)
        pt_emb = self._point_embedding(point_coords, point_labels, prompt_class, image_size)
        w2e = pt_emb @ self.enc_w2.T
        bias_fold = pt_emb @ self.enc_b2
        th = _choose_h_tile(H, WD, out_rows=bs, acc_rows=bs, vmem_limit=vmem_limit)
        out = fused_encoder_heads(x_hwd, self.enc_w1, self.enc_b1, w2e, bias_fold,
                                  mi.astype(jnp.int32), th=th, vmem_limit=vmem_limit)
        return out.reshape(bs, 1, H, W, D)


# ----------------------------------------------------------------------------
if __name__ == "__main__":
    H = W = D = 16
    B, N = 2, 4

    model = VISTA3D2Pallas(feature_size=32, num_classes=8, key=jax.random.PRNGKey(0))

    k1, k2 = jax.random.split(jax.random.PRNGKey(0), 2)
    input_images = jax.random.normal(k1, (1, 1, H, W, D), jnp.float32)
    point_coords = jax.random.uniform(k2, (B, N, 3), jnp.float32, 1.0, 14.0)
    point_labels = jnp.array([[1, 0, -1, 1], [1, -1, -1, 0]], jnp.int32)
    class_vector = jnp.array([[1], [3]], jnp.int32)
    prompt_class = class_vector

    # class + point prompts (single fused kernel: encoder + heads + gaussian_combine)
    logits = model.forward(input_images, point_coords, point_labels,
                           class_vector, prompt_class)
    jax.block_until_ready(logits)
    assert logits.shape == (B, 1, H, W, D) and logits.dtype == jnp.float32

    # class-only prompts
    logits_c = model.forward(input_images, None, None, class_vector, None)
    jax.block_until_ready(logits_c)
    assert logits_c.shape == (B, 1, H, W, D)

    # point-only prompts (NINF background, point_head fills mapped objects)
    logits_p = model.forward(input_images, point_coords, point_labels,
                             None, prompt_class)
    jax.block_until_ready(logits_p)
    assert logits_p.shape == (B, 1, H, W, D)

    # no prompts at all -> NINF volume
    logits_n = model.forward(input_images)
    jax.block_until_ready(logits_n)
    assert logits_n.shape == (1, 1, H, W, D)

    print("KERNEL_OK")
</pallas_src>

<mosaic_0001>
module attributes {stable_mosaic.version = 11 : i64} {
  func.func @_encoder_heads_gaussian_kernel(%arg0: i32, %arg1: memref<8x256xf32, #tpu.memory_space<vmem>>, %arg2: memref<32xf32, #tpu.memory_space<smem>>, %arg3: memref<32xf32, #tpu.memory_space<smem>>, %arg4: memref<4x32xf32, #tpu.memory_space<smem>>, %arg5: memref<4xf32, #tpu.memory_space<smem>>, %arg6: memref<2x4x3xf32, #tpu.memory_space<smem>>, %arg7: memref<2x4xi32, #tpu.memory_space<smem>>, %arg8: memref<1x256xf32, #tpu.memory_space<vmem>>, %arg9: memref<1x256xf32, #tpu.memory_space<vmem>>, %arg10: memref<2x8x256xf32, #tpu.memory_space<vmem>>, %arg11: memref<8x256xf32, #tpu.memory_space<vmem>>) attributes {dimension_semantics = [#tpu.dimension_semantics<parallel>], iteration_bounds = array<i64: 2>, scalar_prefetch = 0 : i64, scratch_operands = 1 : i64, tpu.core_type = #tpu.core_type<tc>, window_params = [{transform_indices = @transform_0, window_bounds = array<i64: 8, 256>}, {transform_indices = @transform_1, window_bounds = array<i64: 32>}, {transform_indices = @transform_2, window_bounds = array<i64: 32>}, {transform_indices = @transform_3, window_bounds = array<i64: 4, 32>}, {transform_indices = @transform_4, window_bounds = array<i64: 4>}, {transform_indices = @transform_5, window_bounds = array<i64: 2, 4, 3>}, {transform_indices = @transform_6, window_bounds = array<i64: 2, 4>}, {pipeline_mode = #tpu.pipeline_mode<synchronous>, transform_indices = @transform_7, window_bounds = array<i64: 1, 256>}, {pipeline_mode = #tpu.pipeline_mode<synchronous>, transform_indices = @transform_8, window_bounds = array<i64: 1, 256>}, {transform_indices = @transform_9, window_bounds = array<i64: 2, 8, 256>}]} {
    %c0 = arith.constant 0 : index
    %c0_0 = arith.constant 0 : index
    %0 = vector.load %arg1[%c0, %c0_0] : memref<8x256xf32, #tpu.memory_space<vmem>>, vector<8x256xf32>
    %c0_1 = arith.constant 0 : index
    %1 = memref.load %arg2[%c0_1] : memref<32xf32, #tpu.memory_space<smem>>
    %2 = vector.broadcast %1 : f32 to vector<8x256xf32>
    %3 = arith.mulf %0, %2 : vector<8x256xf32>
    %c0_2 = arith.constant 0 : index
    %4 = memref.load %arg3[%c0_2] : memref<32xf32, #tpu.memory_space<smem>>
    %5 = vector.broadcast %4 : f32 to vector<8x256xf32>
    %6 = arith.addf %3, %5 : vector<8x256xf32>
    %7 = arith.mulf %6, %6 : vector<8x256xf32>
    %8 = arith.mulf %6, %7 : vector<8x256xf32>
    %cst = arith.constant 4.471500e-02 : f32
    %9 = vector.broadcast %cst : f32 to vector<8x256xf32>
    %10 = arith.mulf %9, %8 : vector<8x256xf32>
    %11 = arith.addf %6, %10 : vector<8x256xf32>
    %cst_3 = arith.constant 0.797884583 : f32
    %12 = vector.broadcast %cst_3 : f32 to vector<8x256xf32>
    %13 = arith.mulf %12, %11 : vector<8x256xf32>
    %14 = math.tanh %13 : vector<8x256xf32>
    %cst_4 = arith.constant 1.000000e+00 : f32
    %15 = vector.broadcast %cst_4 : f32 to vector<8x256xf32>
    %16 = arith.addf %15, %14 : vector<8x256xf32>
    %cst_5 = arith.constant 5.000000e-01 : f32
    %17 = vector.broadcast %cst_5 : f32 to vector<8x256xf32>
    %18 = arith.mulf %17, %16 : vector<8x256xf32>
    %19 = arith.mulf %6, %18 : vector<8x256xf32>
    %c0_6 = arith.constant 0 : index
    %c0_7 = arith.constant 0 : index
    %20 = memref.load %arg4[%c0_6, %c0_7] : memref<4x32xf32, #tpu.memory_space<smem>>
    %21 = vector.broadcast %20 : f32 to vector<8x256xf32>
    %22 = arith.mulf %21, %19 : vector<8x256xf32>
    %c1 = arith.constant 1 : index
    %c0_8 = arith.constant 0 : index
    %23 = memref.load %arg4[%c1, %c0_8] : memref<4x32xf32, #tpu.memory_space<smem>>
    %24 = vector.broadcast %23 : f32 to vector<8x256xf32>
    %25 = arith.mulf %24, %19 : vector<8x256xf32>
    %c2 = arith.constant 2 : index
    %c0_9 = arith.constant 0 : index
    %26 = memref.load %arg4[%c2, %c0_9] : memref<4x32xf32, #tpu.memory_space<smem>>
    %27 = vector.broadcast %26 : f32 to vector<8x256xf32>
    %28 = arith.mulf %27, %19 : vector<8x256xf32>
    %c3 = arith.constant 3 : index
    %c0_10 = arith.constant 0 : index
    %29 = memref.load %arg4[%c3, %c0_10] : memref<4x32xf32, #tpu.memory_space<smem>>
    %30 = vector.broadcast %29 : f32 to vector<8x256xf32>
    %31 = arith.mulf %30, %19 : vector<8x256xf32>
    %c1_11 = arith.constant 1 : index
    %32 = memref.load %arg2[%c1_11] : memref<32xf32, #tpu.memory_space<smem>>
    %33 = vector.broadcast %32 : f32 to vector<8x256xf32>
    %34 = arith.mulf %0, %33 : vector<8x256xf32>
    %c1_12 = arith.constant 1 : index
    %35 = memref.load %arg3[%c1_12] : memref<32xf32, #tpu.memory_space<smem>>
    %36 = vector.broadcast %35 : f32 to vector<8x256xf32>
    %37 = arith.addf %34, %36 : vector<8x256xf32>
    %38 = arith.mulf %37, %37 : vector<8x256xf32>
    %39 = arith.mulf %37, %38 : vector<8x256xf32>
    %cst_13 = arith.constant 4.471500e-02 : f32
    %40 = vector.broadcast %cst_13 : f32 to vector<8x256xf32>
    %41 = arith.mulf %40, %39 : vector<8x256xf32>
    %42 = arith.addf %37, %41 : vector<8x256xf32>
    %cst_14 = arith.constant 0.797884583 : f32
    %43 = vector.broadcast %cst_14 : f32 to vector<8x256xf32>
    %44 = arith.mulf %43, %42 : vector<8x256xf32>
    %45 = math.tanh %44 : vector<8x256xf32>
    %cst_15 = arith.constant 1.000000e+00 : f32
    %46 = vector.broadcast %cst_15 : f32 to vector<8x256xf32>
    %47 = arith.addf %46, %45 : vector<8x256xf32>
    %cst_16 = arith.constant 5.000000e-01 : f32
    %48 = vector.broadcast %cst_16 : f32 to vector<8x256xf32>
    %49 = arith.mulf %48, %47 : vector<8x256xf32>
    %50 = arith.mulf %37, %49 : vector<8x256xf32>
    %c0_17 = arith.constant 0 : index
    %c1_18 = arith.constant 1 : index
    %51 = memref.load %arg4[%c0_17, %c1_18] : memref<4x32xf32, #tpu.memory_space<smem>>
    %52 = vector.broadcast %51 : f32 to vector<8x256xf32>
    %53 = arith.mulf %52, %50 : vector<8x256xf32>
    %c1_19 = arith.constant 1 : index
    %c1_20 = arith.constant 1 : index
    %54 = memref.load %arg4[%c1_19, %c1_20] : memref<4x32xf32, #tpu.memory_space<smem>>
    %55 = vector.broadcast %54 : f32 to vector<8x256xf32>
    %56 = arith.mulf %55, %50 : vector<8x256xf32>
    %c2_21 = arith.constant 2 : index
    %c1_22 = arith.constant 1 : index
    %57 = memref.load %arg4[%c2_21, %c1_22] : memref<4x32xf32, #tpu.memory_space<smem>>
    %58 = vector.broadcast %57 : f32 to vector<8x256xf32>
    %59 = arith.mulf %58, %50 : vector<8x256xf32>
    %c3_23 = arith.constant 3 : index
    %c1_24 = arith.constant 1 : index
    %60 = memref.load %arg4[%c3_23, %c1_24] : memref<4x32xf32, #tpu.memory_space<smem>>
    %61 = vector.broadcast %60 : f32 to vector<8x256xf32>
    %62 = arith.mulf %61, %50 : vector<8x256xf32>
    %63 = arith.addf %22, %53 : vector<8x256xf32>
    %64 = arith.addf %25, %56 : vector<8x256xf32>
    %65 = arith.addf %28, %59 : vector<8x256xf32>
    %66 = arith.addf %31, %62 : vector<8x256xf32>
    %c2_25 = arith.constant 2 : index
    %67 = memref.load %arg2[%c2_25] : memref<32xf32, #tpu.memory_space<smem>>
    %68 = vector.broadcast %67 : f32 to vector<8x256xf32>
    %69 = arith.mulf %0, %68 : vector<8x256xf32>
    %c2_26 = arith.constant 2 : index
    %70 = memref.load %arg3[%c2_26] : memref<32xf32, #tpu.memory_space<smem>>
    %71 = vector.broadcast %70 : f32 to vector<8x256xf32>
    %72 = arith.addf %69, %71 : vector<8x256xf32>
    %73 = arith.mulf %72, %72 : vector<8x256xf32>
    %74 = arith.mulf %72, %73 : vector<8x256xf32>
    %cst_27 = arith.constant 4.471500e-02 : f32
    %75 = vector.broadcast %cst_27 : f32 to vector<8x256xf32>
    %76 = arith.mulf %75, %74 : vector<8x256xf32>
    %77 = arith.addf %72, %76 : vector<8x256xf32>
    %cst_28 = arith.constant 0.797884583 : f32
    %78 = vector.broadcast %cst_28 : f32 to vector<8x256xf32>
    %79 = arith.mulf %78, %77 : vector<8x256xf32>
    %80 = math.tanh %79 : vector<8x256xf32>
    %cst_29 = arith.constant 1.000000e+00 : f32
    %81 = vector.broadcast %cst_29 : f32 to vector<8x256xf32>
    %82 = arith.addf %81, %80 : vector<8x256xf32>
    %cst_30 = arith.constant 5.000000e-01 : f32
    %83 = vector.broadcast %cst_30 : f32 to vector<8x256xf32>
    %84 = arith.mulf %83, %82 : vector<8x256xf32>
    %85 = arith.mulf %72, %84 : vector<8x256xf32>
    %c0_31 = arith.constant 0 : index
    %c2_32 = arith.constant 2 : index
    %86 = memref.load %arg4[%c0_31, %c2_32] : memref<4x32xf32, #tpu.memory_space<smem>>
    %87 = vector.broadcast %86 : f32 to vector<8x256xf32>
    %88 = arith.mulf %87, %85 : vector<8x256xf32>
    %c1_33 = arith.constant 1 : index
    %c2_34 = arith.constant 2 : index
    %89 = memref.load %arg4[%c1_33, %c2_34] : memref<4x32xf32, #tpu.memory_space<smem>>
    %90 = vector.broadcast %89 : f32 to vector<8x256xf32>
    %91 = arith.mulf %90, %85 : vector<8x256xf32>
    %c2_35 = arith.constant 2 : index
    %c2_36 = arith.constant 2 : index
    %92 = memref.load %arg4[%c2_35, %c2_36] : memref<4x32xf32, #tpu.memory_space<smem>>
    %93 = vector.broadcast %92 : f32 to vector<8x256xf32>
    %94 = arith.mulf %93, %85 : vector<8x256xf32>
    %c3_37 = arith.constant 3 : index
    %c2_38 = arith.constant 2 : index
    %95 = memref.load %arg4[%c3_37, %c2_38] : memref<4x32xf32, #tpu.memory_space<smem>>
    %96 = vector.broadcast %95 : f32 to vector<8x256xf32>
    %97 = arith.mulf %96, %85 : vector<8x256xf32>
    %98 = arith.addf %63, %88 : vector<8x256xf32>
    %99 = arith.addf %64, %91 : vector<8x256xf32>
    %100 = arith.addf %65, %94 : vector<8x256xf32>
    %101 = arith.addf %66, %97 : vector<8x256xf32>
    %c3_39 = arith.constant 3 : index
    %102 = memref.load %arg2[%c3_39] : memref<32xf32, #tpu.memory_space<smem>>
    %103 = vector.broadcast %102 : f32 to vector<8x256xf32>
    %104 = arith.mulf %0, %103 : vector<8x256xf32>
    %c3_40 = arith.constant 3 : index
    %105 = memref.load %arg3[%c3_40] : memref<32xf32, #tpu.memory_space<smem>>
    %106 = vector.broadcast %105 : f32 to vector<8x256xf32>
    %107 = arith.addf %104, %106 : vector<8x256xf32>
    %108 = arith.mulf %107, %107 : vector<8x256xf32>
    %109 = arith.mulf %107, %108 : vector<8x256xf32>
    %cst_41 = arith.constant 4.471500e-02 : f32
    %110 = vector.broadcast %cst_41 : f32 to vector<8x256xf32>
    %111 = arith.mulf %110, %109 : vector<8x256xf32>
    %112 = arith.addf %107, %111 : vector<8x256xf32>
    %cst_42 = arith.constant 0.797884583 : f32
    %113 = vector.broadcast %cst_42 : f32 to vector<8x256xf32>
    %114 = arith.mulf %113, %112 : vector<8x256xf32>
    %115 = math.tanh %114 : vector<8x256xf32>
    %cst_43 = arith.constant 1.000000e+00 : f32
    %116 = vector.broadcast %cst_43 : f32 to vector<8x256xf32>
    %117 = arith.addf %116, %115 : vector<8x256xf32>
    %cst_44 = arith.constant 5.000000e-01 : f32
    %118 = vector.broadcast %cst_44 : f32 to vector<8x256xf32>
    %119 = arith.mulf %118, %117 : vector<8x256xf32>
    %120 = arith.mulf %107, %119 : vector<8x256xf32>
    %c0_45 = arith.constant 0 : index
    %c3_46 = arith.constant 3 : index
    %121 = memref.load %arg4[%c0_45, %c3_46] : memref<4x32xf32, #tpu.memory_space<smem>>
    %122 = vector.broadcast %121 : f32 to vector<8x256xf32>
    %123 = arith.mulf %122, %120 : vector<8x256xf32>
    %c1_47 = arith.constant 1 : index
    %c3_48 = arith.constant 3 : index
    %124 = memref.load %arg4[%c1_47, %c3_48] : memref<4x32xf32, #tpu.memory_space<smem>>
    %125 = vector.broadcast %124 : f32 to vector<8x256xf32>
    %126 = arith.mulf %125, %120 : vector<8x256xf32>
    %c2_49 = arith.constant 2 : index
    %c3_50 = arith.constant 3 : index
    %127 = memref.load %arg4[%c2_49, %c3_50] : memref<4x32xf32, #tpu.memory_space<smem>>
    %128 = vector.broadcast %127 : f32 to vector<8x256xf32>
    %129 = arith.mulf %128, %120 : vector<8x256xf32>
    %c3_51 = arith.constant 3 : index
    %c3_52 = arith.constant 3 : index
    %130 = memref.load %arg4[%c3_51, %c3_52] : memref<4x32xf32, #tpu.memory_space<smem>>
    %131 = vector.broadcast %130 : f32 to vector<8x256xf32>
    %132 = arith.mulf %131, %120 : vector<8x256xf32>
    %133 = arith.addf %98, %123 : vector<8x256xf32>
    %134 = arith.addf %99, %126 : vector<8x256xf32>
    %135 = arith.addf %100, %129 : vector<8x256xf32>
    %136 = arith.addf %101, %132 : vector<8x256xf32>
    %c4 = arith.constant 4 : index
    %137 = memref.load %arg2[%c4] : memref<32xf32, #tpu.memory_space<smem>>
    %138 = vector.broadcast %137 : f32 to vector<8x256xf32>
    %139 = arith.mulf %0, %138 : vector<8x256xf32>
    %c4_53 = arith.constant 4 : index
    %140 = memref.load %arg3[%c4_53] : memref<32xf32, #tpu.memory_space<smem>>
    %141 = vector.broadcast %140 : f32 to vector<8x256xf32>
    %142 = arith.addf %139, %141 : vector<8x256xf32>
    %143 = arith.mulf %142, %142 : vector<8x256xf32>
    %144 = arith.mulf %142, %143 : vector<8x256xf32>
    %cst_54 = arith.constant 4.471500e-02 : f32
    %145 = vector.broadcast %cst_54 : f32 to vector<8x256xf32>
    %146 = arith.mulf %145, %144 : vector<8x256xf32>
    %147 = arith.addf %142, %146 : vector<8x256xf32>
    %cst_55 = arith.constant 0.797884583 : f32
    %148 = vector.broadcast %cst_55 : f32 to vector<8x256xf32>
    %149 = arith.mulf %148, %147 : vector<8x256xf32>
    %150 = math.tanh %149 : vector<8x256xf32>
    %cst_56 = arith.constant 1.000000e+00 : f32
    %151 = vector.broadcast %cst_56 : f32 to vector<8x256xf32>
    %152 = arith.addf %151, %150 : vector<8x256xf32>
    %cst_57 = arith.constant 5.000000e-01 : f32
    %153 = vector.broadcast %cst_57 : f32 to vector<8x256xf32>
    %154 = arith.mulf %153, %152 : vector<8x256xf32>
    %155 = arith.mulf %142, %154 : vector<8x256xf32>
    %c0_58 = arith.constant 0 : index
    %c4_59 = arith.constant 4 : index
    %156 = memref.load %arg4[%c0_58, %c4_59] : memref<4x32xf32, #tpu.memory_space<smem>>
    %157 = vector.broadcast %156 : f32 to vector<8x256xf32>
    %158 = arith.mulf %157, %155 : vector<8x256xf32>
    %c1_60 = arith.constant 1 : index
    %c4_61 = arith.constant 4 : index
    %159 = memref.load %arg4[%c1_60, %c4_61] : memref<4x32xf32, #tpu.memory_space<smem>>
    %160 = vector.broadcast %159 : f32 to vector<8x256xf32>
    %161 = arith.mulf %160, %155 : vector<8x256xf32>
    %c2_62 = arith.constant 2 : index
    %c4_63 = arith.constant 4 : index
    %162 = memref.load %arg4[%c2_62, %c4_63] : memref<4x32xf32, #tpu.memory_space<smem>>
    %163 = vector.broadcast %162 : f32 to vector<8x256xf32>
    %164 = arith.mulf %163, %155 : vector<8x256xf32>
    %c3_64 = arith.constant 3 : index
    %c4_65 = arith.constant 4 : index
    %165 = memref.load %arg4[%c3_64, %c4_65] : memref<4x32xf32, #tpu.memory_space<smem>>
    %166 = vector.broadcast %165 : f32 to vector<8x256xf32>
    %167 = arith.mulf %166, %155 : vector<8x256xf32>
    %168 = arith.addf %133, %158 : vector<8x256xf32>
    %169 = arith.addf %134, %161 : vector<8x256xf32>
    %170 = arith.addf %135, %164 : vector<8x256xf32>
    %171 = arith.addf %136, %167 : vector<8x256xf32>
    %c5 = arith.constant 5 : index
    %172 = memref.load %arg2[%c5] : memref<32xf32, #tpu.memory_space<smem>>
    %173 = vector.broadcast %172 : f32 to vector<8x256xf32>
    %174 = arith.mulf %0, %173 : vector<8x256xf32>
    %c5_66 = arith.constant 5 : index
    %175 = memref.load %arg3[%c5_66] : memref<32xf32, #tpu.memory_space<smem>>
    %176 = vector.broadcast %175 : f32 to vector<8x256xf32>
    %177 = arith.addf %174, %176 : vector<8x256xf32>
    %178 = arith.mulf %177, %177 : vector<8x256xf32>
    %179 = arith.mulf %177, %178 : vector<8x256xf32>
    %cst_67 = arith.constant 4.471500e-02 : f32
    %180 = vector.broadcast %cst_67 : f32 to vector<8x256xf32>
    %181 = arith.mulf %180, %179 : vector<8x256xf32>
    %182 = arith.addf %177, %181 : vector<8x256xf32>
    %cst_68 = arith.constant 0.797884583 : f32
    %183 = vector.broadcast %cst_68 : f32 to vector<8x256xf32>
    %184 = arith.mulf %183, %182 : vector<8x256xf32>
    %185 = math.tanh %184 : vector<8x256xf32>
    %cst_69 = arith.constant 1.000000e+00 : f32
    %186 = vector.broadcast %cst_69 : f32 to vector<8x256xf32>
    %187 = arith.addf %186, %185 : vector<8x256xf32>
    %cst_70 = arith.constant 5.000000e-01 : f32
    %188 = vector.broadcast %cst_70 : f32 to vector<8x256xf32>
    %189 = arith.mulf %188, %187 : vector<8x256xf32>
    %190 = arith.mulf %177, %189 : vector<8x256xf32>
    %c0_71 = arith.constant 0 : index
    %c5_72 = arith.constant 5 : index
    %191 = memref.load %arg4[%c0_71, %c5_72] : memref<4x32xf32, #tpu.memory_space<smem>>
    %192 = vector.broadcast %191 : f32 to vector<8x256xf32>
    %193 = arith.mulf %192, %190 : vector<8x256xf32>
    %c1_73 = arith.constant 1 : index
    %c5_74 = arith.constant 5 : index
    %194 = memref.load %arg4[%c1_73, %c5_74] : memref<4x32xf32, #tpu.memory_space<smem>>
    %195 = vector.broadcast %194 : f32 to vector<8x256xf32>
    %196 = arith.mulf %195, %190 : vector<8x256xf32>
    %c2_75 = arith.constant 2 : index
    %c5_76 = arith.constant 5 : index
    %197 = memref.load %arg4[%c2_75, %c5_76] : memref<4x32xf32, #tpu.memory_space<smem>>
    %198 = vector.broadcast %197 : f32 to vector<8x256xf32>
    %199 = arith.mulf %198, %190 : vector<8x256xf32>
    %c3_77 = arith.constant 3 : index
    %c5_78 = arith.constant 5 : index
    %200 = memref.load %arg4[%c3_77, %c5_78] : memref<4x32xf32, #tpu.memory_space<smem>>
    %201 = vector.broadcast %200 : f32 to vector<8x256xf32>
    %202 = arith.mulf %201, %190 : vector<8x256xf32>
    %203 = arith.addf %168, %193 : vector<8x256xf32>
    %204 = arith.addf %169, %196 : vector<8x256xf32>
    %205 = arith.addf %170, %199 : vector<8x256xf32>
    %206 = arith.addf %171, %202 : vector<8x256xf32>
    %c6 = arith.constant 6 : index
    %207 = memref.load %arg2[%c6] : memref<32xf32, #tpu.memory_space<smem>>
    %208 = vector.broadcast %207 : f32 to vector<8x256xf32>
    %209 = arith.mulf %0, %208 : vector<8x256xf32>
    %c6_79 = arith.constant 6 : index
    %210 = memref.load %arg3[%c6_79] : memref<32xf32, #tpu.memory_space<smem>>
    %211 = vector.broadcast %210 : f32 to vector<8x256xf32>
    %212 = arith.addf %209, %211 : vector<8x256xf32>
    %213 = arith.mulf %212, %212 : vector<8x256xf32>
    %214 = arith.mulf %212, %213 : vector<8x256xf32>
    %cst_80 = arith.constant 4.471500e-02 : f32
    %215 = vector.broadcast %cst_80 : f32 to vector<8x256xf32>
    %216 = arith.mulf %215, %214 : vector<8x256xf32>
    %217 = arith.addf %212, %216 : vector<8x256xf32>
    %cst_81 = arith.constant 0.797884583 : f32
    %218 = vector.broadcast %cst_81 : f32 to vector<8x256xf32>
    %219 = arith.mulf %218, %217 : vector<8x256xf32>
    %220 = math.tanh %219 : vector<8x256xf32>
    %cst_82 = arith.constant 1.000000e+00 : f32
    %221 = vector.broadcast %cst_82 : f32 to vector<8x256xf32>
    %222 = arith.addf %221, %220 : vector<8x256xf32>
    %cst_83 = arith.constant 5.000000e-01 : f32
    %223 = vector.broadcast %cst_83 : f32 to vector<8x256xf32>
    %224 = arith.mulf %223, %222 : vector<8x256xf32>
    %225 = arith.mulf %212, %224 : vector<8x256xf32>
    %c0_84 = arith.constant 0 : index
    %c6_85 = arith.constant 6 : index
    %226 = memref.load %arg4[%c0_84, %c6_85] : memref<4x32xf32, #tpu.memory_space<smem>>
    %227 = vector.broadcast %226 : f32 to vector<8x256xf32>
    %228 = arith.mulf %227, %225 : vector<8x256xf32>
    %c1_86 = arith.constant 1 : index
    %c6_87 = arith.constant 6 : index
    %229 = memref.load %arg4[%c1_86, %c6_87] : memref<4x32xf32, #tpu.memory_space<smem>>
    %230 = vector.broadcast %229 : f32 to vector<8x256xf32>
    %231 = arith.mulf %230, %225 : vector<8x256xf32>
    %c2_88 = arith.constant 2 : index
    %c6_89 = arith.constant 6 : index
    %232 = memref.load %arg4[%c2_88, %c6_89] : memref<4x32xf32, #tpu.memory_space<smem>>
    %233 = vector.broadcast %232 : f32 to vector<8x256xf32>
    %234 = arith.mulf %233, %225 : vector<8x256xf32>
    %c3_90 = arith.constant 3 : index
    %c6_91 = arith.constant 6 : index
    %235 = memref.load %arg4[%c3_90, %c6_91] : memref<4x32xf32, #tpu.memory_space<smem>>
    %236 = vector.broadcast %235 : f32 to vector<8x256xf32>
    %237 = arith.mulf %236, %225 : vector<8x256xf32>
    %238 = arith.addf %203, %228 : vector<8x256xf32>
    %239 = arith.addf %204, %231 : vector<8x256xf32>
    %240 = arith.addf %205, %234 : vector<8x256xf32>
    %241 = arith.addf %206, %237 : vector<8x256xf32>
    %c7 = arith.constant 7 : index
    %242 = memref.load %arg2[%c7] : memref<32xf32, #tpu.memory_space<smem>>
    %243 = vector.broadcast %242 : f32 to vector<8x256xf32>
    %244 = arith.mulf %0, %243 : vector<8x256xf32>
    %c7_92 = arith.constant 7 : index
    %245 = memref.load %arg3[%c7_92] : memref<32xf32, #tpu.memory_space<smem>>
    %246 = vector.broadcast %245 : f32 to vector<8x256xf32>
    %247 = arith.addf %244, %246 : vector<8x256xf32>
    %248 = arith.mulf %247, %247 : vector<8x256xf32>
    %249 = arith.mulf %247, %248 : vector<8x256xf32>
    %cst_93 = arith.constant 4.471500e-02 : f32
    %250 = vector.broadcast %cst_93 : f32 to vector<8x256xf32>
    %251 = arith.mulf %250, %249 : vector<8x256xf32>
    %252 = arith.addf %247, %251 : vector<8x256xf32>
    %cst_94 = arith.constant 0.797884583 : f32
    %253 = vector.broadcast %cst_94 : f32 to vector<8x256xf32>
    %254 = arith.mulf %253, %252 : vector<8x256xf32>
    %255 = math.tanh %254 : vector<8x256xf32>
    %cst_95 = arith.constant 1.000000e+00 : f32
    %256 = vector.broadcast %cst_95 : f32 to vector<8x256xf32>
    %257 = arith.addf %256, %255 : vector<8x256xf32>
    %cst_96 = arith.constant 5.000000e-01 : f32
    %258 = vector.broadcast %cst_96 : f32 to vector<8x256xf32>
    %259 = arith.mulf %258, %257 : vector<8x256xf32>
    %260 = arith.mulf %247, %259 : vector<8x256xf32>
    %c0_97 = arith.constant 0 : index
    %c7_98 = arith.constant 7 : index
    %261 = memref.load %arg4[%c0_97, %c7_98] : memref<4x32xf32, #tpu.memory_space<smem>>
    %262 = vector.broadcast %261 : f32 to vector<8x256xf32>
    %263 = arith.mulf %262, %260 : vector<8x256xf32>
    %c1_99 = arith.constant 1 : index
    %c7_100 = arith.constant 7 : index
    %264 = memref.load %arg4[%c1_99, %c7_100] : memref<4x32xf32, #tpu.memory_space<smem>>
    %265 = vector.broadcast %264 : f32 to vector<8x256xf32>
    %266 = arith.mulf %265, %260 : vector<8x256xf32>
    %c2_101 = arith.constant 2 : index
    %c7_102 = arith.constant 7 : index
    %267 = memref.load %arg4[%c2_101, %c7_102] : memref<4x32xf32, #tpu.memory_space<smem>>
    %268 = vector.broadcast %267 : f32 to vector<8x256xf32>
    %269 = arith.mulf %268, %260 : vector<8x256xf32>
    %c3_103 = arith.constant 3 : index
    %c7_104 = arith.constant 7 : index
    %270 = memref.load %arg4[%c3_103, %c7_104] : memref<4x32xf32, #tpu.memory_space<smem>>
    %271 = vector.broadcast %270 : f32 to vector<8x256xf32>
    %272 = arith.mulf %271, %260 : vector<8x256xf32>
    %273 = arith.addf %238, %263 : vector<8x256xf32>
    %274 = arith.addf %239, %266 : vector<8x256xf32>
    %275 = arith.addf %240, %269 : vector<8x256xf32>
    %276 = arith.addf %241, %272 : vector<8x256xf32>
    %c8 = arith.constant 8 : index
    %277 = memref.load %arg2[%c8] : memref<32xf32, #tpu.memory_space<smem>>
    %278 = vector.broadcast %277 : f32 to vector<8x256xf32>
    %279 = arith.mulf %0, %278 : vector<8x256xf32>
    %c8_105 = arith.constant 8 : index
    %280 = memref.load %arg3[%c8_105] : memref<32xf32, #tpu.memory_space<smem>>
    %281 = vector.broadcast %280 : f32 to vector<8x256xf32>
    %282 = arith.addf %279, %281 : vector<8x256xf32>
    %283 = arith.mulf %282, %282 : vector<8x256xf32>
    %284 = arith.mulf %282, %283 : vector<8x256xf32>
    %cst_106 = arith.constant 4.471500e-02 : f32
    %285 = vector.broadcast %cst_106 : f32 to vector<8x256xf32>
    %286 = arith.mulf %285, %284 : vector<8x256xf32>
    %287 = arith.addf %282, %286 : vector<8x256xf32>
    %cst_107 = arith.constant 0.797884583 : f32
    %288 = vector.broadcast %cst_107 : f32 to vector<8x256xf32>
    %289 = arith.mulf %288, %287 : vector<8x256xf32>
    %290 = math.tanh %289 : vector<8x256xf32>
    %cst_108 = arith.constant 1.000000e+00 : f32
    %291 = vector.broadcast %cst_108 : f32 to vector<8x256xf32>
    %292 = arith.addf %291, %290 : vector<8x256xf32>
    %cst_109 = arith.constant 5.000000e-01 : f32
    %293 = vector.broadcast %cst_109 : f32 to vector<8x256xf32>
    %294 = arith.mulf %293, %292 : vector<8x256xf32>
    %295 = arith.mulf %282, %294 : vector<8x256xf32>
    %c0_110 = arith.constant 0 : index
    %c8_111 = arith.constant 8 : index
    %296 = memref.load %arg4[%c0_110, %c8_111] : memref<4x32xf32, #tpu.memory_space<smem>>
    %297 = vector.broadcast %296 : f32 to vector<8x256xf32>
    %298 = arith.mulf %297, %295 : vector<8x256xf32>
    %c1_112 = arith.constant 1 : index
    %c8_113 = arith.constant 8 : index
    %299 = memref.load %arg4[%c1_112, %c8_113] : memref<4x32xf32, #tpu.memory_space<smem>>
    %300 = vector.broadcast %299 : f32 to vector<8x256xf32>
    %301 = arith.mulf %300, %295 : vector<8x256xf32>
    %c2_114 = arith.constant 2 : index
    %c8_115 = arith.constant 8 : index
    %302 = memref.load %arg4[%c2_114, %c8_115] : memref<4x32xf32, #tpu.memory_space<smem>>
    %303 = vector.broadcast %302 : f32 to vector<8x256xf32>
    %304 = arith.mulf %303, %295 : vector<8x256xf32>
    %c3_116 = arith.constant 3 : index
    %c8_117 = arith.constant 8 : index
    %305 = memref.load %arg4[%c3_116, %c8_117] : memref<4x32xf32, #tpu.memory_space<smem>>
    %306 = vector.broadcast %305 : f32 to vector<8x256xf32>
    %307 = arith.mulf %306, %295 : vector<8x256xf32>
    %308 = arith.addf %273, %298 : vector<8x256xf32>
    %309 = arith.addf %274, %301 : vector<8x256xf32>
    %310 = arith.addf %275, %304 : vector<8x256xf32>
    %311 = arith.addf %276, %307 : vector<8x256xf32>
    %c9 = arith.constant 9 : index
    %312 = memref.load %arg2[%c9] : memref<32xf32, #tpu.memory_space<smem>>
    %313 = vector.broadcast %312 : f32 to vector<8x256xf32>
    %314 = arith.mulf %0, %313 : vector<8x256xf32>
    %c9_118 = arith.constant 9 : index
    %315 = memref.load %arg3[%c9_118] : memref<32xf32, #tpu.memory_space<smem>>
    %316 = vector.broadcast %315 : f32 to vector<8x256xf32>
    %317 = arith.addf %314, %316 : vector<8x256xf32>
    %318 = arith.mulf %317, %317 : vector<8x256xf32>
    %319 = arith.mulf %317, %318 : vector<8x256xf32>
    %cst_119 = arith.constant 4.471500e-02 : f32
    %320 = vector.broadcast %cst_119 : f32 to vector<8x256xf32>
    %321 = arith.mulf %320, %319 : vector<8x256xf32>
    %322 = arith.addf %317, %321 : vector<8x256xf32>
    %cst_120 = arith.constant 0.797884583 : f32
    %323 = vector.broadcast %cst_120 : f32 to vector<8x256xf32>
    %324 = arith.mulf %323, %322 : vector<8x256xf32>
    %325 = math.tanh %324 : vector<8x256xf32>
    %cst_121 = arith.constant 1.000000e+00 : f32
    %326 = vector.broadcast %cst_121 : f32 to vector<8x256xf32>
    %327 = arith.addf %326, %325 : vector<8x256xf32>
    %cst_122 = arith.constant 5.000000e-01 : f32
    %328 = vector.broadcast %cst_122 : f32 to vector<8x256xf32>
    %329 = arith.mulf %328, %327 : vector<8x256xf32>
    %330 = arith.mulf %317, %329 : vector<8x256xf32>
    %c0_123 = arith.constant 0 : index
    %c9_124 = arith.constant 9 : index
    %331 = memref.load %arg4[%c0_123, %c9_124] : memref<4x32xf32, #tpu.memory_space<smem>>
    %332 = vector.broadcast %331 : f32 to vector<8x256xf32>
    %333 = arith.mulf %332, %330 : vector<8x256xf32>
    %c1_125 = arith.constant 1 : index
    %c9_126 = arith.constant 9 : index
    %334 = memref.load %arg4[%c1_125, %c9_126] : memref<4x32xf32, #tpu.memory_space<smem>>
    %335 = vector.broadcast %334 : f32 to vector<8x256xf32>
    %336 = arith.mulf %335, %330 : vector<8x256xf32>
    %c2_127 = arith.constant 2 : index
    %c9_128 = arith.constant 9 : index
    %337 = memref.load %arg4[%c2_127, %c9_128] : memref<4x32xf32, #tpu.memory_space<smem>>
    %338 = vector.broadcast %337 : f32 to vector<8x256xf32>
    %339 = arith.mulf %338, %330 : vector<8x256xf32>
    %c3_129 = arith.constant 3 : index
    %c9_130 = arith.constant 9 : index
    %340 = memref.load %arg4[%c3_129, %c9_130] : memref<4x32xf32, #tpu.memory_space<smem>>
    %341 = vector.broadcast %340 : f32 to vector<8x256xf32>
    %342 = arith.mulf %341, %330 : vector<8x256xf32>
    %343 = arith.addf %308, %333 : vector<8x256xf32>
    %344 = arith.addf %309, %336 : vector<8x256xf32>
    %345 = arith.addf %310, %339 : vector<8x256xf32>
    %346 = arith.addf %311, %342 : vector<8x256xf32>
    %c10 = arith.constant 10 : index
    %347 = memref.load %arg2[%c10] : memref<32xf32, #tpu.memory_space<smem>>
    %348 = vector.broadcast %347 : f32 to vector<8x256xf32>
    %349 = arith.mulf %0, %348 : vector<8x256xf32>
    %c10_131 = arith.constant 10 : index
    %350 = memref.load %arg3[%c10_131] : memref<32xf32, #tpu.memory_space<smem>>
    %351 = vector.broadcast %350 : f32 to vector<8x256xf32>
    %352 = arith.addf %349, %351 : vector<8x256xf32>
    %353 = arith.mulf %352, %352 : vector<8x256xf32>
    %354 = arith.mulf %352, %353 : vector<8x256xf32>
    %cst_132 = arith.constant 4.471500e-02 : f32
    %355 = vector.broadcast %cst_132 : f32 to vector<8x256xf32>
    %356 = arith.mulf %355, %354 : vector<8x256xf32>
    %357 = arith.addf %352, %356 : vector<8x256xf32>
    %cst_133 = arith.constant 0.797884583 : f32
    %358 = vector.broadcast %cst_133 : f32 to vector<8x256xf32>
    %359 = arith.mulf %358, %357 : vector<8x256xf32>
    %360 = math.tanh %359 : vector<8x256xf32>
    %cst_134 = arith.constant 1.000000e+00 : f32
    %361 = vector.broadcast %cst_134 : f32 to vector<8x256xf32>
    %362 = arith.addf %361, %360 : vector<8x256xf32>
    %cst_135 = arith.constant 5.000000e-01 : f32
    %363 = vector.broadcast %cst_135 : f32 to vector<8x256xf32>
    %364 = arith.mulf %363, %362 : vector<8x256xf32>
    %365 = arith.mulf %352, %364 : vector<8x256xf32>
    %c0_136 = arith.constant 0 : index
    %c10_137 = arith.constant 10 : index
    %366 = memref.load %arg4[%c0_136, %c10_137] : memref<4x32xf32, #tpu.memory_space<smem>>
    %367 = vector.broadcast %366 : f32 to vector<8x256xf32>
    %368 = arith.mulf %367, %365 : vector<8x256xf32>
    %c1_138 = arith.constant 1 : index
    %c10_139 = arith.constant 10 : index
    %369 = memref.load %arg4[%c1_138, %c10_139] : memref<4x32xf32, #tpu.memory_space<smem>>
    %370 = vector.broadcast %369 : f32 to vector<8x256xf32>
    %371 = arith.mulf %370, %365 : vector<8x256xf32>
    %c2_140 = arith.constant 2 : index
    %c10_141 = arith.constant 10 : index
    %372 = memref.load %arg4[%c2_140, %c10_141] : memref<4x32xf32, #tpu.memory_space<smem>>
    %373 = vector.broadcast %372 : f32 to vector<8x256xf32>
    %374 = arith.mulf %373, %365 : vector<8x256xf32>
    %c3_142 = arith.constant 3 : index
    %c10_143 = arith.constant 10 : index
    %375 = memref.load %arg4[%c3_142, %c10_143] : memref<4x32xf32, #tpu.memory_space<smem>>
    %376 = vector.broadcast %375 : f32 to vector<8x256xf32>
    %377 = arith.mulf %376, %365 : vector<8x256xf32>
    %378 = arith.addf %343, %368 : vector<8x256xf32>
    %379 = arith.addf %344, %371 : vector<8x256xf32>
    %380 = arith.addf %345, %374 : vector<8x256xf32>
    %381 = arith.addf %346, %377 : vector<8x256xf32>
    %c11 = arith.constant 11 : index
    %382 = memref.load %arg2[%c11] : memref<32xf32, #tpu.memory_space<smem>>
    %383 = vector.broadcast %382 : f32 to vector<8x256xf32>
    %384 = arith.mulf %0, %383 : vector<8x256xf32>
    %c11_144 = arith.constant 11 : index
    %385 = memref.load %arg3[%c11_144] : memref<32xf32, #tpu.memory_space<smem>>
    %386 = vector.broadcast %385 : f32 to vector<8x256xf32>
    %387 = arith.addf %384, %386 : vector<8x256xf32>
    %388 = arith.mulf %387, %387 : vector<8x256xf32>
    %389 = arith.mulf %387, %388 : vector<8x256xf32>
    %cst_145 = arith.constant 4.471500e-02 : f32
    %390 = vector.broadcast %cst_145 : f32 to vector<8x256xf32>
    %391 = arith.mulf %390, %389 : vector<8x256xf32>
    %392 = arith.addf %387, %391 : vector<8x256xf32>
    %cst_146 = arith.constant 0.797884583 : f32
    %393 = vector.broadcast %cst_146 : f32 to vector<8x256xf32>
    %394 = arith.mulf %393, %392 : vector<8x256xf32>
    %395 = math.tanh %394 : vector<8x256xf32>
    %cst_147 = arith.constant 1.000000e+00 : f32
    %396 = vector.broadcast %cst_147 : f32 to vector<8x256xf32>
    %397 = arith.addf %396, %395 : vector<8x256xf32>
    %cst_148 = arith.constant 5.000000e-01 : f32
    %398 = vector.broadcast %cst_148 : f32 to vector<8x256xf32>
    %399 = arith.mulf %398, %397 : vector<8x256xf32>
    %400 = arith.mulf %387, %399 : vector<8x256xf32>
    %c0_149 = arith.constant 0 : index
    %c11_150 = arith.constant 11 : index
    %401 = memref.load %arg4[%c0_149, %c11_150] : memref<4x32xf32, #tpu.memory_space<smem>>
    %402 = vector.broadcast %401 : f32 to vector<8x256xf32>
    %403 = arith.mulf %402, %400 : vector<8x256xf32>
    %c1_151 = arith.constant 1 : index
    %c11_152 = arith.constant 11 : index
    %404 = memref.load %arg4[%c1_151, %c11_152] : memref<4x32xf32, #tpu.memory_space<smem>>
    %405 = vector.broadcast %404 : f32 to vector<8x256xf32>
    %406 = arith.mulf %405, %400 : vector<8x256xf32>
    %c2_153 = arith.constant 2 : index
    %c11_154 = arith.constant 11 : index
    %407 = memref.load %arg4[%c2_153, %c11_154] : memref<4x32xf32, #tpu.memory_space<smem>>
    %408 = vector.broadcast %407 : f32 to vector<8x256xf32>
    %409 = arith.mulf %408, %400 : vector<8x256xf32>
    %c3_155 = arith.constant 3 : index
    %c11_156 = arith.constant 11 : index
    %410 = memref.load %arg4[%c3_155, %c11_156] : memref<4x32xf32, #tpu.memory_space<smem>>
    %411 = vector.broadcast %410 : f32 to vector<8x256xf32>
    %412 = arith.mulf %411, %400 : vector<8x256xf32>
    %413 = arith.addf %378, %403 : vector<8x256xf32>
    %414 = arith.addf %379, %406 : vector<8x256xf32>
    %415 = arith.addf %380, %409 : vector<8x256xf32>
    %416 = arith.addf %381, %412 : vector<8x256xf32>
    %c12 = arith.constant 12 : index
    %417 = memref.load %arg2[%c12] : memref<32xf32, #tpu.memory_space<smem>>
    %418 = vector.broadcast %417 : f32 to vector<8x256xf32>
    %419 = arith.mulf %0, %418 : vector<8x256xf32>
    %c12_157 = arith.constant 12 : index
    %420 = memref.load %arg3[%c12_157] : memref<32xf32, #tpu.memory_space<smem>>
    %421 = vector.broadcast %420 : f32 to vector<8x256xf32>
    %422 = arith.addf %419, %421 : vector<8x256xf32>
    %423 = arith.mulf %422, %422 : vector<8x256xf32>
    %424 = arith.mulf %422, %423 : vector<8x256xf32>
    %cst_158 = arith.constant 4.471500e-02 : f32
    %425 = vector.broadcast %cst_158 : f32 to vector<8x256xf32>
    %426 = arith.mulf %425, %424 : vector<8x256xf32>
    %427 = arith.addf %422, %426 : vector<8x256xf32>
    %cst_159 = arith.constant 0.797884583 : f32
    %428 = vector.broadcast %cst_159 : f32 to vector<8x256xf32>
    %429 = arith.mulf %428, %427 : vector<8x256xf32>
    %430 = math.tanh %429 : vector<8x256xf32>
    %cst_160 = arith.constant 1.000000e+00 : f32
    %431 = vector.broadcast %cst_160 : f32 to vector<8x256xf32>
    %432 = arith.addf %431, %430 : vector<8x256xf32>
    %cst_161 = arith.constant 5.000000e-01 : f32
    %433 = vector.broadcast %cst_161 : f32 to vector<8x256xf32>
    %434 = arith.mulf %433, %432 : vector<8x256xf32>
    %435 = arith.mulf %422, %434 : vector<8x256xf32>
    %c0_162 = arith.constant 0 : index
    %c12_163 = arith.constant 12 : index
    %436 = memref.load %arg4[%c0_162, %c12_163] : memref<4x32xf32, #tpu.memory_space<smem>>
    %437 = vector.broadcast %436 : f32 to vector<8x256xf32>
    %438 = arith.mulf %437, %435 : vector<8x256xf32>
    %c1_164 = arith.constant 1 : index
    %c12_165 = arith.constant 12 : index
    %439 = memref.load %arg4[%c1_164, %c12_165] : memref<4x32xf32, #tpu.memory_space<smem>>
    %440 = vector.broadcast %439 : f32 to vector<8x256xf32>
    %441 = arith.mulf %440, %435 : vector<8x256xf32>
    %c2_166 = arith.constant 2 : index
    %c12_167 = arith.constant 12 : index
    %442 = memref.load %arg4[%c2_166, %c12_167] : memref<4x32xf32, #tpu.memory_space<smem>>
    %443 = vector.broadcast %442 : f32 to vector<8x256xf32>
    %444 = arith.mulf %443, %435 : vector<8x256xf32>
    %c3_168 = arith.constant 3 : index
    %c12_169 = arith.constant 12 : index
    %445 = memref.load %arg4[%c3_168, %c12_169] : memref<4x32xf32, #tpu.memory_space<smem>>
    %446 = vector.broadcast %445 : f32 to vector<8x256xf32>
    %447 = arith.mulf %446, %435 : vector<8x256xf32>
    %448 = arith.addf %413, %438 : vector<8x256xf32>
    %449 = arith.addf %414, %441 : vector<8x256xf32>
    %450 = arith.addf %415, %444 : vector<8x256xf32>
    %451 = arith.addf %416, %447 : vector<8x256xf32>
    %c13 = arith.constant 13 : index
    %452 = memref.load %arg2[%c13] : memref<32xf32, #tpu.memory_space<smem>>
    %453 = vector.broadcast %452 : f32 to vector<8x256xf32>
    %454 = arith.mulf %0, %453 : vector<8x256xf32>
    %c13_170 = arith.constant 13 : index
    %455 = memref.load %arg3[%c13_170] : memref<32xf32, #tpu.memory_space<smem>>
    %456 = vector.broadcast %455 : f32 to vector<8x256xf32>
    %457 = arith.addf %454, %456 : vector<8x256xf32>
    %458 = arith.mulf %457, %457 : vector<8x256xf32>
    %459 = arith.mulf %457, %458 : vector<8x256xf32>
    %cst_171 = arith.constant 4.471500e-02 : f32
    %460 = vector.broadcast %cst_171 : f32 to vector<8x256xf32>
    %461 = arith.mulf %460, %459 : vector<8x256xf32>
    %462 = arith.addf %457, %461 : vector<8x256xf32>
    %cst_172 = arith.constant 0.797884583 : f32
    %463 = vector.broadcast %cst_172 : f32 to vector<8x256xf32>
    %464 = arith.mulf %463, %462 : vector<8x256xf32>
    %465 = math.tanh %464 : vector<8x256xf32>
    %cst_173 = arith.constant 1.000000e+00 : f32
    %466 = vector.broadcast %cst_173 : f32 to vector<8x256xf32>
    %467 = arith.addf %466, %465 : vector<8x256xf32>
    %cst_174 = arith.constant 5.000000e-01 : f32
    %468 = vector.broadcast %cst_174 : f32 to vector<8x256xf32>
    %469 = arith.mulf %468, %467 : vector<8x256xf32>
    %470 = arith.mulf %457, %469 : vector<8x256xf32>
    %c0_175 = arith.constant 0 : index
    %c13_176 = arith.constant 13 : index
    %471 = memref.load %arg4[%c0_175, %c13_176] : memref<4x32xf32, #tpu.memory_space<smem>>
    %472 = vector.broadcast %471 : f32 to vector<8x256xf32>
    %473 = arith.mulf %472, %470 : vector<8x256xf32>
    %c1_177 = arith.constant 1 : index
    %c13_178 = arith.constant 13 : index
    %474 = memref.load %arg4[%c1_177, %c13_178] : memref<4x32xf32, #tpu.memory_space<smem>>
    %475 = vector.broadcast %474 : f32 to vector<8x256xf32>
    %476 = arith.mulf %475, %470 : vector<8x256xf32>
    %c2_179 = arith.constant 2 : index
    %c13_180 = arith.constant 13 : index
    %477 = memref.load %arg4[%c2_179, %c13_180] : memref<4x32xf32, #tpu.memory_space<smem>>
    %478 = vector.broadcast %477 : f32 to vector<8x256xf32>
    %479 = arith.mulf %478, %470 : vector<8x256xf32>
    %c3_181 = arith.constant 3 : index
    %c13_182 = arith.constant 13 : index
    %480 = memref.load %arg4[%c3_181, %c13_182] : memref<4x32xf32, #tpu.memory_space<smem>>
    %481 = vector.broadcast %480 : f32 to vector<8x256xf32>
    %482 = arith.mulf %481, %470 : vector<8x256xf32>
    %483 = arith.addf %448, %473 : vector<8x256xf32>
    %484 = arith.addf %449, %476 : vector<8x256xf32>
    %485 = arith.addf %450, %479 : vector<8x256xf32>
    %486 = arith.addf %451, %482 : vector<8x256xf32>
    %c14 = arith.constant 14 : index
    %487 = memref.load %arg2[%c14] : memref<32xf32, #tpu.memory_space<smem>>
    %488 = vector.broadcast %487 : f32 to vector<8x256xf32>
    %489 = arith.mulf %0, %488 : vector<8x256xf32>
    %c14_183 = arith.constant 14 : index
    %490 = memref.load %arg3[%c14_183] : memref<32xf32, #tpu.memory_space<smem>>
    %491 = vector.broadcast %490 : f32 to vector<8x256xf32>
    %492 = arith.addf %489, %491 : vector<8x256xf32>
    %493 = arith.mulf %492, %492 : vector<8x256xf32>
    %494 = arith.mulf %492, %493 : vector<8x256xf32>
    %cst_184 = arith.constant 4.471500e-02 : f32
    %495 = vector.broadcast %cst_184 : f32 to vector<8x256xf32>
    %496 = arith.mulf %495, %494 : vector<8x256xf32>
    %497 = arith.addf %492, %496 : vector<8x256xf32>
    %cst_185 = arith.constant 0.797884583 : f32
    %498 = vector.broadcast %cst_185 : f32 to vector<8x256xf32>
    %499 = arith.mulf %498, %497 : vector<8x256xf32>
    %500 = math.tanh %499 : vector<8x256xf32>
    %cst_186 = arith.constant 1.000000e+00 : f32
    %501 = vector.broadcast %cst_186 : f32 to vector<8x256xf32>
    %502 = arith.addf %501, %500 : vector<8x256xf32>
    %cst_187 = arith.constant 5.000000e-01 : f32
    %503 = vector.broadcast %cst_187 : f32 to vector<8x256xf32>
    %504 = arith.mulf %503, %502 : vector<8x256xf32>
    %505 = arith.mulf %492, %504 : vector<8x256xf32>
    %c0_188 = arith.constant 0 : index
    %c14_189 = arith.constant 14 : index
    %506 = memref.load %arg4[%c0_188, %c14_189] : memref<4x32xf32, #tpu.memory_space<smem>>
    %507 = vector.broadcast %506 : f32 to vector<8x256xf32>
    %508 = arith.mulf %507, %505 : vector<8x256xf32>
    %c1_190 = arith.constant 1 : index
    %c14_191 = arith.constant 14 : index
    %509 = memref.load %arg4[%c1_190, %c14_191] : memref<4x32xf32, #tpu.memory_space<smem>>
    %510 = vector.broadcast %509 : f32 to vector<8x256xf32>
    %511 = arith.mulf %510, %505 : vector<8x256xf32>
    %c2_192 = arith.constant 2 : index
    %c14_193 = arith.constant 14 : index
    %512 = memref.load %arg4[%c2_192, %c14_193] : memref<4x32xf32, #tpu.memory_space<smem>>
    %513 = vector.broadcast %512 : f32 to vector<8x256xf32>
    %514 = arith.mulf %513, %505 : vector<8x256xf32>
    %c3_194 = arith.constant 3 : index
    %c14_195 = arith.constant 14 : index
    %515 = memref.load %arg4[%c3_194, %c14_195] : memref<4x32xf32, #tpu.memory_space<smem>>
    %516 = vector.broadcast %515 : f32 to vector<8x256xf32>
    %517 = arith.mulf %516, %505 : vector<8x256xf32>
    %518 = arith.addf %483, %508 : vector<8x256xf32>
    %519 = arith.addf %484, %511 : vector<8x256xf32>
    %520 = arith.addf %485, %514 : vector<8x256xf32>
    %521 = arith.addf %486, %517 : vector<8x256xf32>
    %c15 = arith.constant 15 : index
    %522 = memref.load %arg2[%c15] : memref<32xf32, #tpu.memory_space<smem>>
    %523 = vector.broadcast %522 : f32 to vector<8x256xf32>
    %524 = arith.mulf %0, %523 : vector<8x256xf32>
    %c15_196 = arith.constant 15 : index
    %525 = memref.load %arg3[%c15_196] : memref<32xf32, #tpu.memory_space<smem>>
    %526 = vector.broadcast %525 : f32 to vector<8x256xf32>
    %527 = arith.addf %524, %526 : vector<8x256xf32>
    %528 = arith.mulf %527, %527 : vector<8x256xf32>
    %529 = arith.mulf %527, %528 : vector<8x256xf32>
    %cst_197 = arith.constant 4.471500e-02 : f32
    %530 = vector.broadcast %cst_197 : f32 to vector<8x256xf32>
    %531 = arith.mulf %530, %529 : vector<8x256xf32>
    %532 = arith.addf %527, %531 : vector<8x256xf32>
    %cst_198 = arith.constant 0.797884583 : f32
    %533 = vector.broadcast %cst_198 : f32 to vector<8x256xf32>
    %534 = arith.mulf %533, %532 : vector<8x256xf32>
    %535 = math.tanh %534 : vector<8x256xf32>
    %cst_199 = arith.constant 1.000000e+00 : f32
    %536 = vector.broadcast %cst_199 : f32 to vector<8x256xf32>
    %537 = arith.addf %536, %535 : vector<8x256xf32>
    %cst_200 = arith.constant 5.000000e-01 : f32
    %538 = vector.broadcast %cst_200 : f32 to vector<8x256xf32>
    %539 = arith.mulf %538, %537 : vector<8x256xf32>
    %540 = arith.mulf %527, %539 : vector<8x256xf32>
    %c0_201 = arith.constant 0 : index
    %c15_202 = arith.constant 15 : index
    %541 = memref.load %arg4[%c0_201, %c15_202] : memref<4x32xf32, #tpu.memory_space<smem>>
    %542 = vector.broadcast %541 : f32 to vector<8x256xf32>
    %543 = arith.mulf %542, %540 : vector<8x256xf32>
    %c1_203 = arith.constant 1 : index
    %c15_204 = arith.constant 15 : index
    %544 = memref.load %arg4[%c1_203, %c15_204] : memref<4x32xf32, #tpu.memory_space<smem>>
    %545 = vector.broadcast %544 : f32 to vector<8x256xf32>
    %546 = arith.mulf %545, %540 : vector<8x256xf32>
    %c2_205 = arith.constant 2 : index
    %c15_206 = arith.constant 15 : index
    %547 = memref.load %arg4[%c2_205, %c15_206] : memref<4x32xf32, #tpu.memory_space<smem>>
    %548 = vector.broadcast %547 : f32 to vector<8x256xf32>
    %549 = arith.mulf %548, %540 : vector<8x256xf32>
    %c3_207 = arith.constant 3 : index
    %c15_208 = arith.constant 15 : index
    %550 = memref.load %arg4[%c3_207, %c15_208] : memref<4x32xf32, #tpu.memory_space<smem>>
    %551 = vector.broadcast %550 : f32 to vector<8x256xf32>
    %552 = arith.mulf %551, %540 : vector<8x256xf32>
    %553 = arith.addf %518, %543 : vector<8x256xf32>
    %554 = arith.addf %519, %546 : vector<8x256xf32>
    %555 = arith.addf %520, %549 : vector<8x256xf32>
    %556 = arith.addf %521, %552 : vector<8x256xf32>
    %c16 = arith.constant 16 : index
    %557 = memref.load %arg2[%c16] : memref<32xf32, #tpu.memory_space<smem>>
    %558 = vector.broadcast %557 : f32 to vector<8x256xf32>
    %559 = arith.mulf %0, %558 : vector<8x256xf32>
    %c16_209 = arith.constant 16 : index
    %560 = memref.load %arg3[%c16_209] : memref<32xf32, #tpu.memory_space<smem>>
    %561 = vector.broadcast %560 : f32 to vector<8x256xf32>
    %562 = arith.addf %559, %561 : vector<8x256xf32>
    %563 = arith.mulf %562, %562 : vector<8x256xf32>
    %564 = arith.mulf %562, %563 : vector<8x256xf32>
    %cst_210 = arith.constant 4.471500e-02 : f32
    %565 = vector.broadcast %cst_210 : f32 to vector<8x256xf32>
    %566 = arith.mulf %565, %564 : vector<8x256xf32>
    %567 = arith.addf %562, %566 : vector<8x256xf32>
    %cst_211 = arith.constant 0.797884583 : f32
    %568 = vector.broadcast %cst_211 : f32 to vector<8x256xf32>
    %569 = arith.mulf %568, %567 : vector<8x256xf32>
    %570 = math.tanh %569 : vector<8x256xf32>
    %cst_212 = arith.constant 1.000000e+00 : f32
    %571 = vector.broadcast %cst_212 : f32 to vector<8x256xf32>
    %572 = arith.addf %571, %570 : vector<8x256xf32>
    %cst_213 = arith.constant 5.000000e-01 : f32
    %573 = vector.broadcast %cst_213 : f32 to vector<8x256xf32>
    %574 = arith.mulf %573, %572 : vector<8x256xf32>
    %575 = arith.mulf %562, %574 : vector<8x256xf32>
    %c0_214 = arith.constant 0 : index
    %c16_215 = arith.constant 16 : index
    %576 = memref.load %arg4[%c0_214, %c16_215] : memref<4x32xf32, #tpu.memory_space<smem>>
    %577 = vector.broadcast %576 : f32 to vector<8x256xf32>
    %578 = arith.mulf %577, %575 : vector<8x256xf32>
    %c1_216 = arith.constant 1 : index
    %c16_217 = arith.constant 16 : index
    %579 = memref.load %arg4[%c1_216, %c16_217] : memref<4x32xf32, #tpu.memory_space<smem>>
    %580 = vector.broadcast %579 : f32 to vector<8x256xf32>
    %581 = arith.mulf %580, %575 : vector<8x256xf32>
    %c2_218 = arith.constant 2 : index
    %c16_219 = arith.constant 16 : index
    %582 = memref.load %arg4[%c2_218, %c16_219] : memref<4x32xf32, #tpu.memory_space<smem>>
    %583 = vector.broadcast %582 : f32 to vector<8x256xf32>
    %584 = arith.mulf %583, %575 : vector<8x256xf32>
    %c3_220 = arith.constant 3 : index
    %c16_221 = arith.constant 16 : index
    %585 = memref.load %arg4[%c3_220, %c16_221] : memref<4x32xf32, #tpu.memory_space<smem>>
    %586 = vector.broadcast %585 : f32 to vector<8x256xf32>
    %587 = arith.mulf %586, %575 : vector<8x256xf32>
    %588 = arith.addf %553, %578 : vector<8x256xf32>
    %589 = arith.addf %554, %581 : vector<8x256xf32>
    %590 = arith.addf %555, %584 : vector<8x256xf32>
    %591 = arith.addf %556, %587 : vector<8x256xf32>
    %c17 = arith.constant 17 : index
    %592 = memref.load %arg2[%c17] : memref<32xf32, #tpu.memory_space<smem>>
    %593 = vector.broadcast %592 : f32 to vector<8x256xf32>
    %594 = arith.mulf %0, %593 : vector<8x256xf32>
    %c17_222 = arith.constant 17 : index
    %595 = memref.load %arg3[%c17_222] : memref<32xf32, #tpu.memory_space<smem>>
    %596 = vector.broadcast %595 : f32 to vector<8x256xf32>
    %597 = arith.addf %594, %596 : vector<8x256xf32>
    %598 = arith.mulf %597, %597 : vector<8x256xf32>
    %599 = arith.mulf %597, %598 : vector<8x256xf32>
    %cst_223 = arith.constant 4.471500e-02 : f32
    %600 = vector.broadcast %cst_223 : f32 to vector<8x256xf32>
    %601 = arith.mulf %600, %599 : vector<8x256xf32>
    %602 = arith.addf %597, %601 : vector<8x256xf32>
    %cst_224 = arith.constant 0.797884583 : f32
    %603 = vector.broadcast %cst_224 : f32 to vector<8x256xf32>
    %604 = arith.mulf %603, %602 : vector<8x256xf32>
    %605 = math.tanh %604 : vector<8x256xf32>
    %cst_225 = arith.constant 1.000000e+00 : f32
    %606 = vector.broadcast %cst_225 : f32 to vector<8x256xf32>
    %607 = arith.addf %606, %605 : vector<8x256xf32>
    %cst_226 = arith.constant 5.000000e-01 : f32
    %608 = vector.broadcast %cst_226 : f32 to vector<8x256xf32>
    %609 = arith.mulf %608, %607 : vector<8x256xf32>
    %610 = arith.mulf %597, %609 : vector<8x256xf32>
    %c0_227 = arith.constant 0 : index
    %c17_228 = arith.constant 17 : index
    %611 = memref.load %arg4[%c0_227, %c17_228] : memref<4x32xf32, #tpu.memory_space<smem>>
    %612 = vector.broadcast %611 : f32 to vector<8x256xf32>
    %613 = arith.mulf %612, %610 : vector<8x256xf32>
    %c1_229 = arith.constant 1 : index
    %c17_230 = arith.constant 17 : index
    %614 = memref.load %arg4[%c1_229, %c17_230] : memref<4x32xf32, #tpu.memory_space<smem>>
    %615 = vector.broadcast %614 : f32 to vector<8x256xf32>
    %616 = arith.mulf %615, %610 : vector<8x256xf32>
    %c2_231 = arith.constant 2 : index
    %c17_232 = arith.constant 17 : index
    %617 = memref.load %arg4[%c2_231, %c17_232] : memref<4x32xf32, #tpu.memory_space<smem>>
    %618 = vector.broadcast %617 : f32 to vector<8x256xf32>
    %619 = arith.mulf %618, %610 : vector<8x256xf32>
    %c3_233 = arith.constant 3 : index
    %c17_234 = arith.constant 17 : index
    %620 = memref.load %arg4[%c3_233, %c17_234] : memref<4x32xf32, #tpu.memory_space<smem>>
    %621 = vector.broadcast %620 : f32 to vector<8x256xf32>
    %622 = arith.mulf %621, %610 : vector<8x256xf32>
    %623 = arith.addf %588, %613 : vector<8x256xf32>
    %624 = arith.addf %589, %616 : vector<8x256xf32>
    %625 = arith.addf %590, %619 : vector<8x256xf32>
    %626 = arith.addf %591, %622 : vector<8x256xf32>
    %c18 = arith.constant 18 : index
    %627 = memref.load %arg2[%c18] : memref<32xf32, #tpu.memory_space<smem>>
    %628 = vector.broadcast %627 : f32 to vector<8x256xf32>
    %629 = arith.mulf %0, %628 : vector<8x256xf32>
    %c18_235 = arith.constant 18 : index
    %630 = memref.load %arg3[%c18_235] : memref<32xf32, #tpu.memory_space<smem>>
    %631 = vector.broadcast %630 : f32 to vector<8x256xf32>
    %632 = arith.addf %629, %631 : vector<8x256xf32>
    %633 = arith.mulf %632, %632 : vector<8x256xf32>
    %634 = arith.mulf %632, %633 : vector<8x256xf32>
    %cst_236 = arith.constant 4.471500e-02 : f32
    %635 = vector.broadcast %cst_236 : f32 to vector<8x256xf32>
    %636 = arith.mulf %635, %634 : vector<8x256xf32>
    %637 = arith.addf %632, %636 : vector<8x256xf32>
    %cst_237 = arith.constant 0.797884583 : f32
    %638 = vector.broadcast %cst_237 : f32 to vector<8x256xf32>
    %639 = arith.mulf %638, %637 : vector<8x256xf32>
    %640 = math.tanh %639 : vector<8x256xf32>
    %cst_238 = arith.constant 1.000000e+00 : f32
    %641 = vector.broadcast %cst_238 : f32 to vector<8x256xf32>
    %642 = arith.addf %641, %640 : vector<8x256xf32>
    %cst_239 = arith.constant 5.000000e-01 : f32
    %643 = vector.broadcast %cst_239 : f32 to vector<8x256xf32>
    %644 = arith.mulf %643, %642 : vector<8x256xf32>
    %645 = arith.mulf %632, %644 : vector<8x256xf32>
    %c0_240 = arith.constant 0 : index
    %c18_241 = arith.constant 18 : index
    %646 = memref.load %arg4[%c0_240, %c18_241] : memref<4x32xf32, #tpu.memory_space<smem>>
    %647 = vector.broadcast %646 : f32 to vector<8x256xf32>
    %648 = arith.mulf %647, %645 : vector<8x256xf32>
    %c1_242 = arith.constant 1 : index
    %c18_243 = arith.constant 18 : index
    %649 = memref.load %arg4[%c1_242, %c18_243] : memref<4x32xf32, #tpu.memory_space<smem>>
    %650 = vector.broadcast %649 : f32 to vector<8x256xf32>
    %651 = arith.mulf %650, %645 : vector<8x256xf32>
    %c2_244 = arith.constant 2 : index
    %c18_245 = arith.constant 18 : index
    %652 = memref.load %arg4[%c2_244, %c18_245] : memref<4x32xf32, #tpu.memory_space<smem>>
    %653 = vector.broadcast %652 : f32 to vector<8x256xf32>
    %654 = arith.mulf %653, %645 : vector<8x256xf32>
    %c3_246 = arith.constant 3 : index
    %c18_247 = arith.constant 18 : index
    %655 = memref.load %arg4[%c3_246, %c18_247] : memref<4x32xf32, #tpu.memory_space<smem>>
    %656 = vector.broadcast %655 : f32 to vector<8x256xf32>
    %657 = arith.mulf %656, %645 : vector<8x256xf32>
    %658 = arith.addf %623, %648 : vector<8x256xf32>
    %659 = arith.addf %624, %651 : vector<8x256xf32>
    %660 = arith.addf %625, %654 : vector<8x256xf32>
    %661 = arith.addf %626, %657 : vector<8x256xf32>
    %c19 = arith.constant 19 : index
    %662 = memref.load %arg2[%c19] : memref<32xf32, #tpu.memory_space<smem>>
    %663 = vector.broadcast %662 : f32 to vector<8x256xf32>
    %664 = arith.mulf %0, %663 : vector<8x256xf32>
    %c19_248 = arith.constant 19 : index
    %665 = memref.load %arg3[%c19_248] : memref<32xf32, #tpu.memory_space<smem>>
    %666 = vector.broadcast %665 : f32 to vector<8x256xf32>
    %667 = arith.addf %664, %666 : vector<8x256xf32>
    %668 = arith.mulf %667, %667 : vector<8x256xf32>
    %669 = arith.mulf %667, %668 : vector<8x256xf32>
    %cst_249 = arith.constant 4.471500e-02 : f32
    %670 = vector.broadcast %cst_249 : f32 to vector<8x256xf32>
    %671 = arith.mulf %670, %669 : vector<8x256xf32>
    %672 = arith.addf %667, %671 : vector<8x256xf32>
    %cst_250 = arith.constant 0.797884583 : f32
    %673 = vector.broadcast %cst_250 : f32 to vector<8x256xf32>
    %674 = arith.mulf %673, %672 : vector<8x256xf32>
    %675 = math.tanh %674 : vector<8x256xf32>
    %cst_251 = arith.constant 1.000000e+00 : f32
    %676 = vector.broadcast %cst_251 : f32 to vector<8x256xf32>
    %677 = arith.addf %676, %675 : vector<8x256xf32>
    %cst_252 = arith.constant 5.000000e-01 : f32
    %678 = vector.broadcast %cst_252 : f32 to vector<8x256xf32>
    %679 = arith.mulf %678, %677 : vector<8x256xf32>
    %680 = arith.mulf %667, %679 : vector<8x256xf32>
    %c0_253 = arith.constant 0 : index
    %c19_254 = arith.constant 19 : index
    %681 = memref.load %arg4[%c0_253, %c19_254] : memref<4x32xf32, #tpu.memory_space<smem>>
    %682 = vector.broadcast %681 : f32 to vector<8x256xf32>
    %683 = arith.mulf %682, %680 : vector<8x256xf32>
    %c1_255 = arith.constant 1 : index
    %c19_256 = arith.constant 19 : index
    %684 = memref.load %arg4[%c1_255, %c19_256] : memref<4x32xf32, #tpu.memory_space<smem>>
    %685 = vector.broadcast %684 : f32 to vector<8x256xf32>
    %686 = arith.mulf %685, %680 : vector<8x256xf32>
    %c2_257 = arith.constant 2 : index
    %c19_258 = arith.constant 19 : index
    %687 = memref.load %arg4[%c2_257, %c19_258] : memref<4x32xf32, #tpu.memory_space<smem>>
    %688 = vector.broadcast %687 : f32 to vector<8x256xf32>
    %689 = arith.mulf %688, %680 : vector<8x256xf32>
    %c3_259 = arith.constant 3 : index
    %c19_260 = arith.constant 19 : index
    %690 = memref.load %arg4[%c3_259, %c19_260] : memref<4x32xf32, #tpu.memory_space<smem>>
    %691 = vector.broadcast %690 : f32 to vector<8x256xf32>
    %692 = arith.mulf %691, %680 : vector<8x256xf32>
    %693 = arith.addf %658, %683 : vector<8x256xf32>
    %694 = arith.addf %659, %686 : vector<8x256xf32>
    %695 = arith.addf %660, %689 : vector<8x256xf32>
    %696 = arith.addf %661, %692 : vector<8x256xf32>
    %c20 = arith.constant 20 : index
    %697 = memref.load %arg2[%c20] : memref<32xf32, #tpu.memory_space<smem>>
    %698 = vector.broadcast %697 : f32 to vector<8x256xf32>
    %699 = arith.mulf %0, %698 : vector<8x256xf32>
    %c20_261 = arith.constant 20 : index
    %700 = memref.load %arg3[%c20_261] : memref<32xf32, #tpu.memory_space<smem>>
    %701 = vector.broadcast %700 : f32 to vector<8x256xf32>
    %702 = arith.addf %699, %701 : vector<8x256xf32>
    %703 = arith.mulf %702, %702 : vector<8x256xf32>
    %704 = arith.mulf %702, %703 : vector<8x256xf32>
    %cst_262 = arith.constant 4.471500e-02 : f32
    %705 = vector.broadcast %cst_262 : f32 to vector<8x256xf32>
    %706 = arith.mulf %705, %704 : vector<8x256xf32>
    %707 = arith.addf %702, %706 : vector<8x256xf32>
    %cst_263 = arith.constant 0.797884583 : f32
    %708 = vector.broadcast %cst_263 : f32 to vector<8x256xf32>
    %709 = arith.mulf %708, %707 : vector<8x256xf32>
    %710 = math.tanh %709 : vector<8x256xf32>
    %cst_264 = arith.constant 1.000000e+00 : f32
    %711 = vector.broadcast %cst_264 : f32 to vector<8x256xf32>
    %712 = arith.addf %711, %710 : vector<8x256xf32>
    %cst_265 = arith.constant 5.000000e-01 : f32
    %713 = vector.broadcast %cst_265 : f32 to vector<8x256xf32>
    %714 = arith.mulf %713, %712 : vector<8x256xf32>
    %715 = arith.mulf %702, %714 : vector<8x256xf32>
    %c0_266 = arith.constant 0 : index
    %c20_267 = arith.constant 20 : index
    %716 = memref.load %arg4[%c0_266, %c20_267] : memref<4x32xf32, #tpu.memory_space<smem>>
    %717 = vector.broadcast %716 : f32 to vector<8x256xf32>
    %718 = arith.mulf %717, %715 : vector<8x256xf32>
    %c1_268 = arith.constant 1 : index
    %c20_269 = arith.constant 20 : index
    %719 = memref.load %arg4[%c1_268, %c20_269] : memref<4x32xf32, #tpu.memory_space<smem>>
    %720 = vector.broadcast %719 : f32 to vector<8x256xf32>
    %721 = arith.mulf %720, %715 : vector<8x256xf32>
    %c2_270 = arith.constant 2 : index
    %c20_271 = arith.constant 20 : index
    %722 = memref.load %arg4[%c2_270, %c20_271] : memref<4x32xf32, #tpu.memory_space<smem>>
    %723 = vector.broadcast %722 : f32 to vector<8x256xf32>
    %724 = arith.mulf %723, %715 : vector<8x256xf32>
    %c3_272 = arith.constant 3 : index
    %c20_273 = arith.constant 20 : index
    %725 = memref.load %arg4[%c3_272, %c20_273] : memref<4x32xf32, #tpu.memory_space<smem>>
    %726 = vector.broadcast %725 : f32 to vector<8x256xf32>
    %727 = arith.mulf %726, %715 : vector<8x256xf32>
    %728 = arith.addf %693, %718 : vector<8x256xf32>
    %729 = arith.addf %694, %721 : vector<8x256xf32>
    %730 = arith.addf %695, %724 : vector<8x256xf32>
    %731 = arith.addf %696, %727 : vector<8x256xf32>
    %c21 = arith.constant 21 : index
    %732 = memref.load %arg2[%c21] : memref<32xf32, #tpu.memory_space<smem>>
    %733 = vector.broadcast %732 : f32 to vector<8x256xf32>
    %734 = arith.mulf %0, %733 : vector<8x256xf32>
    %c21_274 = arith.constant 21 : index
    %735 = memref.load %arg3[%c21_274] : memref<32xf32, #tpu.memory_space<smem>>
    %736 = vector.broadcast %735 : f32 to vector<8x256xf32>
    %737 = arith.addf %734, %736 : vector<8x256xf32>
    %738 = arith.mulf %737, %737 : vector<8x256xf32>
    %739 = arith.mulf %737, %738 : vector<8x256xf32>
    %cst_275 = arith.constant 4.471500e-02 : f32
    %740 = vector.broadcast %cst_275 : f32 to vector<8x256xf32>
    %741 = arith.mulf %740, %739 : vector<8x256xf32>
    %742 = arith.addf %737, %741 : vector<8x256xf32>
    %cst_276 = arith.constant 0.797884583 : f32
    %743 = vector.broadcast %cst_276 : f32 to vector<8x256xf32>
    %744 = arith.mulf %743, %742 : vector<8x256xf32>
    %745 = math.tanh %744 : vector<8x256xf32>
    %cst_277 = arith.constant 1.000000e+00 : f32
    %746 = vector.broadcast %cst_277 : f32 to vector<8x256xf32>
    %747 = arith.addf %746, %745 : vector<8x256xf32>
    %cst_278 = arith.constant 5.000000e-01 : f32
    %748 = vector.broadcast %cst_278 : f32 to vector<8x256xf32>
    %749 = arith.mulf %748, %747 : vector<8x256xf32>
    %750 = arith.mulf %737, %749 : vector<8x256xf32>
    %c0_279 = arith.constant 0 : index
    %c21_280 = arith.constant 21 : index
    %751 = memref.load %arg4[%c0_279, %c21_280] : memref<4x32xf32, #tpu.memory_space<smem>>
    %752 = vector.broadcast %751 : f32 to vector<8x256xf32>
    %753 = arith.mulf %752, %750 : vector<8x256xf32>
    %c1_281 = arith.constant 1 : index
    %c21_282 = arith.constant 21 : index
    %754 = memref.load %arg4[%c1_281, %c21_282] : memref<4x32xf32, #tpu.memory_space<smem>>
    %755 = vector.broadcast %754 : f32 to vector<8x256xf32>
    %756 = arith.mulf %755, %750 : vector<8x256xf32>
    %c2_283 = arith.constant 2 : index
    %c21_284 = arith.constant 21 : index
    %757 = memref.load %arg4[%c2_283, %c21_284] : memref<4x32xf32, #tpu.memory_space<smem>>
    %758 = vector.broadcast %757 : f32 to vector<8x256xf32>
    %759 = arith.mulf %758, %750 : vector<8x256xf32>
    %c3_285 = arith.constant 3 : index
    %c21_286 = arith.constant 21 : index
    %760 = memref.load %arg4[%c3_285, %c21_286] : memref<4x32xf32, #tpu.memory_space<smem>>
    %761 = vector.broadcast %760 : f32 to vector<8x256xf32>
    %762 = arith.mulf %761, %750 : vector<8x256xf32>
    %763 = arith.addf %728, %753 : vector<8x256xf32>
    %764 = arith.addf %729, %756 : vector<8x256xf32>
    %765 = arith.addf %730, %759 : vector<8x256xf32>
    %766 = arith.addf %731, %762 : vector<8x256xf32>
    %c22 = arith.constant 22 : index
    %767 = memref.load %arg2[%c22] : memref<32xf32, #tpu.memory_space<smem>>
    %768 = vector.broadcast %767 : f32 to vector<8x256xf32>
    %769 = arith.mulf %0, %768 : vector<8x256xf32>
    %c22_287 = arith.constant 22 : index
    %770 = memref.load %arg3[%c22_287] : memref<32xf32, #tpu.memory_space<smem>>
    %771 = vector.broadcast %770 : f32 to vector<8x256xf32>
    %772 = arith.addf %769, %771 : vector<8x256xf32>
    %773 = arith.mulf %772, %772 : vector<8x256xf32>
    %774 = arith.mulf %772, %773 : vector<8x256xf32>
    %cst_288 = arith.constant 4.471500e-02 : f32
    %775 = vector.broadcast %cst_288 : f32 to vector<8x256xf32>
    %776 = arith.mulf %775, %774 : vector<8x256xf32>
    %777 = arith.addf %772, %776 : vector<8x256xf32>
    %cst_289 = arith.constant 0.797884583 : f32
    %778 = vector.broadcast %cst_289 : f32 to vector<8x256xf32>
    %779 = arith.mulf %778, %777 : vector<8x256xf32>
    %780 = math.tanh %779 : vector<8x256xf32>
    %cst_290 = arith.constant 1.000000e+00 : f32
    %781 = vector.broadcast %cst_290 : f32 to vector<8x256xf32>
    %782 = arith.addf %781, %780 : vector<8x256xf32>
    %cst_291 = arith.constant 5.000000e-01 : f32
    %783 = vector.broadcast %cst_291 : f32 to vector<8x256xf32>
    %784 = arith.mulf %783, %782 : vector<8x256xf32>
    %785 = arith.mulf %772, %784 : vector<8x256xf32>
    %c0_292 = arith.constant 0 : index
    %c22_293 = arith.constant 22 : index
    %786 = memref.load %arg4[%c0_292, %c22_293] : memref<4x32xf32, #tpu.memory_space<smem>>
    %787 = vector.broadcast %786 : f32 to vector<8x256xf32>
    %788 = arith.mulf %787, %785 : vector<8x256xf32>
    %c1_294 = arith.constant 1 : index
    %c22_295 = arith.constant 22 : index
    %789 = memref.load %arg4[%c1_294, %c22_295] : memref<4x32xf32, #tpu.memory_space<smem>>
    %790 = vector.broadcast %789 : f32 to vector<8x256xf32>
    %791 = arith.mulf %790, %785 : vector<8x256xf32>
    %c2_296 = arith.constant 2 : index
    %c22_297 = arith.constant 22 : index
    %792 = memref.load %arg4[%c2_296, %c22_297] : memref<4x32xf32, #tpu.memory_space<smem>>
    %793 = vector.broadcast %792 : f32 to vector<8x256xf32>
    %794 = arith.mulf %793, %785 : vector<8x256xf32>
    %c3_298 = arith.constant 3 : index
    %c22_299 = arith.constant 22 : index
    %795 = memref.load %arg4[%c3_298, %c22_299] : memref<4x32xf32, #tpu.memory_space<smem>>
    %796 = vector.broadcast %795 : f32 to vector<8x256xf32>
    %797 = arith.mulf %796, %785 : vector<8x256xf32>
    %798 = arith.addf %763, %788 : vector<8x256xf32>
    %799 = arith.addf %764, %791 : vector<8x256xf32>
    %800 = arith.addf %765, %794 : vector<8x256xf32>
    %801 = arith.addf %766, %797 : vector<8x256xf32>
    %c23 = arith.constant 23 : index
    %802 = memref.load %arg2[%c23] : memref<32xf32, #tpu.memory_space<smem>>
    %803 = vector.broadcast %802 : f32 to vector<8x256xf32>
    %804 = arith.mulf %0, %803 : vector<8x256xf32>
    %c23_300 = arith.constant 23 : index
    %805 = memref.load %arg3[%c23_300] : memref<32xf32, #tpu.memory_space<smem>>
    %806 = vector.broadcast %805 : f32 to vector<8x256xf32>
    %807 = arith.addf %804, %806 : vector<8x256xf32>
    %808 = arith.mulf %807, %807 : vector<8x256xf32>
    %809 = arith.mulf %807, %808 : vector<8x256xf32>
    %cst_301 = arith.constant 4.471500e-02 : f32
    %810 = vector.broadcast %cst_301 : f32 to vector<8x256xf32>
    %811 = arith.mulf %810, %809 : vector<8x256xf32>
    %812 = arith.addf %807, %811 : vector<8x256xf32>
    %cst_302 = arith.constant 0.797884583 : f32
    %813 = vector.broadcast %cst_302 : f32 to vector<8x256xf32>
    %814 = arith.mulf %813, %812 : vector<8x256xf32>
    %815 = math.tanh %814 : vector<8x256xf32>
    %cst_303 = arith.constant 1.000000e+00 : f32
    %816 = vector.broadcast %cst_303 : f32 to vector<8x256xf32>
    %817 = arith.addf %816, %815 : vector<8x256xf32>
    %cst_304 = arith.constant 5.000000e-01 : f32
    %818 = vector.broadcast %cst_304 : f32 to vector<8x256xf32>
    %819 = arith.mulf %818, %817 : vector<8x256xf32>
    %820 = arith.mulf %807, %819 : vector<8x256xf32>
    %c0_305 = arith.constant 0 : index
    %c23_306 = arith.constant 23 : index
    %821 = memref.load %arg4[%c0_305, %c23_306] : memref<4x32xf32, #tpu.memory_space<smem>>
    %822 = vector.broadcast %821 : f32 to vector<8x256xf32>
    %823 = arith.mulf %822, %820 : vector<8x256xf32>
    %c1_307 = arith.constant 1 : index
    %c23_308 = arith.constant 23 : index
    %824 = memref.load %arg4[%c1_307, %c23_308] : memref<4x32xf32, #tpu.memory_space<smem>>
    %825 = vector.broadcast %824 : f32 to vector<8x256xf32>
    %826 = arith.mulf %825, %820 : vector<8x256xf32>
    %c2_309 = arith.constant 2 : index
    %c23_310 = arith.constant 23 : index
    %827 = memref.load %arg4[%c2_309, %c23_310] : memref<4x32xf32, #tpu.memory_space<smem>>
    %828 = vector.broadcast %827 : f32 to vector<8x256xf32>
    %829 = arith.mulf %828, %820 : vector<8x256xf32>
    %c3_311 = arith.constant 3 : index
    %c23_312 = arith.constant 23 : index
    %830 = memref.load %arg4[%c3_311, %c23_312] : memref<4x32xf32, #tpu.memory_space<smem>>
    %831 = vector.broadcast %830 : f32 to vector<8x256xf32>
    %832 = arith.mulf %831, %820 : vector<8x256xf32>
    %833 = arith.addf %798, %823 : vector<8x256xf32>
    %834 = arith.addf %799, %826 : vector<8x256xf32>
    %835 = arith.addf %800, %829 : vector<8x256xf32>
    %836 = arith.addf %801, %832 : vector<8x256xf32>
    %c24 = arith.constant 24 : index
    %837 = memref.load %arg2[%c24] : memref<32xf32, #tpu.memory_space<smem>>
    %838 = vector.broadcast %837 : f32 to vector<8x256xf32>
    %839 = arith.mulf %0, %838 : vector<8x256xf32>
    %c24_313 = arith.constant 24 : index
    %840 = memref.load %arg3[%c24_313] : memref<32xf32, #tpu.memory_space<smem>>
    %841 = vector.broadcast %840 : f32 to vector<8x256xf32>
    %842 = arith.addf %839, %841 : vector<8x256xf32>
    %843 = arith.mulf %842, %842 : vector<8x256xf32>
    %844 = arith.mulf %842, %843 : vector<8x256xf32>
    %cst_314 = arith.constant 4.471500e-02 : f32
    %845 = vector.broadcast %cst_314 : f32 to vector<8x256xf32>
    %846 = arith.mulf %845, %844 : vector<8x256xf32>
    %847 = arith.addf %842, %846 : vector<8x256xf32>
    %cst_315 = arith.constant 0.797884583 : f32
    %848 = vector.broadcast %cst_315 : f32 to vector<8x256xf32>
    %849 = arith.mulf %848, %847 : vector<8x256xf32>
    %850 = math.tanh %849 : vector<8x256xf32>
    %cst_316 = arith.constant 1.000000e+00 : f32
    %851 = vector.broadcast %cst_316 : f32 to vector<8x256xf32>
    %852 = arith.addf %851, %850 : vector<8x256xf32>
    %cst_317 = arith.constant 5.000000e-01 : f32
    %853 = vector.broadcast %cst_317 : f32 to vector<8x256xf32>
    %854 = arith.mulf %853, %852 : vector<8x256xf32>
    %855 = arith.mulf %842, %854 : vector<8x256xf32>
    %c0_318 = arith.constant 0 : index
    %c24_319 = arith.constant 24 : index
    %856 = memref.load %arg4[%c0_318, %c24_319] : memref<4x32xf32, #tpu.memory_space<smem>>
    %857 = vector.broadcast %856 : f32 to vector<8x256xf32>
    %858 = arith.mulf %857, %855 : vector<8x256xf32>
    %c1_320 = arith.constant 1 : index
    %c24_321 = arith.constant 24 : index
    %859 = memref.load %arg4[%c1_320, %c24_321] : memref<4x32xf32, #tpu.memory_space<smem>>
    %860 = vector.broadcast %859 : f32 to vector<8x256xf32>
    %861 = arith.mulf %860, %855 : vector<8x256xf32>
    %c2_322 = arith.constant 2 : index
    %c24_323 = arith.constant 24 : index
    %862 = memref.load %arg4[%c2_322, %c24_323] : memref<4x32xf32, #tpu.memory_space<smem>>
    %863 = vector.broadcast %862 : f32 to vector<8x256xf32>
    %864 = arith.mulf %863, %855 : vector<8x256xf32>
    %c3_324 = arith.constant 3 : index
    %c24_325 = arith.constant 24 : index
    %865 = memref.load %arg4[%c3_324, %c24_325] : memref<4x32xf32, #tpu.memory_space<smem>>
    %866 = vector.broadcast %865 : f32 to vector<8x256xf32>
    %867 = arith.mulf %866, %855 : vector<8x256xf32>
    %868 = arith.addf %833, %858 : vector<8x256xf32>
    %869 = arith.addf %834, %861 : vector<8x256xf32>
    %870 = arith.addf %835, %864 : vector<8x256xf32>
    %871 = arith.addf %836, %867 : vector<8x256xf32>
    %c25 = arith.constant 25 : index
    %872 = memref.load %arg2[%c25] : memref<32xf32, #tpu.memory_space<smem>>
    %873 = vector.broadcast %872 : f32 to vector<8x256xf32>
    %874 = arith.mulf %0, %873 : vector<8x256xf32>
    %c25_326 = arith.constant 25 : index
    %875 = memref.load %arg3[%c25_326] : memref<32xf32, #tpu.memory_space<smem>>
    %876 = vector.broadcast %875 : f32 to vector<8x256xf32>
    %877 = arith.addf %874, %876 : vector<8x256xf32>
    %878 = arith.mulf %877, %877 : vector<8x256xf32>
    %879 = arith.mulf %877, %878 : vector<8x256xf32>
    %cst_327 = arith.constant 4.471500e-02 : f32
    %880 = vector.broadcast %cst_327 : f32 to vector<8x256xf32>
    %881 = arith.mulf %880, %879 : vector<8x256xf32>
    %882 = arith.addf %877, %881 : vector<8x256xf32>
    %cst_328 = arith.constant 0.797884583 : f32
    %883 = vector.broadcast %cst_328 : f32 to vector<8x256xf32>
    %884 = arith.mulf %883, %882 : vector<8x256xf32>
    %885 = math.tanh %884 : vector<8x256xf32>
    %cst_329 = arith.constant 1.000000e+00 : f32
    %886 = vector.broadcast %cst_329 : f32 to vector<8x256xf32>
    %887 = arith.addf %886, %885 : vector<8x256xf32>
    %cst_330 = arith.constant 5.000000e-01 : f32
    %888 = vector.broadcast %cst_330 : f32 to vector<8x256xf32>
    %889 = arith.mulf %888, %887 : vector<8x256xf32>
    %890 = arith.mulf %877, %889 : vector<8x256xf32>
    %c0_331 = arith.constant 0 : index
    %c25_332 = arith.constant 25 : index
    %891 = memref.load %arg4[%c0_331, %c25_332] : memref<4x32xf32, #tpu.memory_space<smem>>
    %892 = vector.broadcast %891 : f32 to vector<8x256xf32>
    %893 = arith.mulf %892, %890 : vector<8x256xf32>
    %c1_333 = arith.constant 1 : index
    %c25_334 = arith.constant 25 : index
    %894 = memref.load %arg4[%c1_333, %c25_334] : memref<4x32xf32, #tpu.memory_space<smem>>
    %895 = vector.broadcast %894 : f32 to vector<8x256xf32>
    %896 = arith.mulf %895, %890 : vector<8x256xf32>
    %c2_335 = arith.constant 2 : index
    %c25_336 = arith.constant 25 : index
    %897 = memref.load %arg4[%c2_335, %c25_336] : memref<4x32xf32, #tpu.memory_space<smem>>
    %898 = vector.broadcast %897 : f32 to vector<8x256xf32>
    %899 = arith.mulf %898, %890 : vector<8x256xf32>
    %c3_337 = arith.constant 3 : index
    %c25_338 = arith.constant 25 : index
    %900 = memref.load %arg4[%c3_337, %c25_338] : memref<4x32xf32, #tpu.memory_space<smem>>
    %901 = vector.broadcast %900 : f32 to vector<8x256xf32>
    %902 = arith.mulf %901, %890 : vector<8x256xf32>
    %903 = arith.addf %868, %893 : vector<8x256xf32>
    %904 = arith.addf %869, %896 : vector<8x256xf32>
    %905 = arith.addf %870, %899 : vector<8x256xf32>
    %906 = arith.addf %871, %902 : vector<8x256xf32>
    %c26 = arith.constant 26 : index
    %907 = memref.load %arg2[%c26] : memref<32xf32, #tpu.memory_space<smem>>
    %908 = vector.broadcast %907 : f32 to vector<8x256xf32>
    %909 = arith.mulf %0, %908 : vector<8x256xf32>
    %c26_339 = arith.constant 26 : index
    %910 = memref.load %arg3[%c26_339] : memref<32xf32, #tpu.memory_space<smem>>
    %911 = vector.broadcast %910 : f32 to vector<8x256xf32>
    %912 = arith.addf %909, %911 : vector<8x256xf32>
    %913 = arith.mulf %912, %912 : vector<8x256xf32>
    %914 = arith.mulf %912, %913 : vector<8x256xf32>
    %cst_340 = arith.constant 4.471500e-02 : f32
    %915 = vector.broadcast %cst_340 : f32 to vector<8x256xf32>
    %916 = arith.mulf %915, %914 : vector<8x256xf32>
    %917 = arith.addf %912, %916 : vector<8x256xf32>
    %cst_341 = arith.constant 0.797884583 : f32
    %918 = vector.broadcast %cst_341 : f32 to vector<8x256xf32>
    %919 = arith.mulf %918, %917 : vector<8x256xf32>
    %920 = math.tanh %919 : vector<8x256xf32>
    %cst_342 = arith.constant 1.000000e+00 : f32
    %921 = vector.broadcast %cst_342 : f32 to vector<8x256xf32>
    %922 = arith.addf %921, %920 : vector<8x256xf32>
    %cst_343 = arith.constant 5.000000e-01 : f32
    %923 = vector.broadcast %cst_343 : f32 to vector<8x256xf32>
    %924 = arith.mulf %923, %922 : vector<8x256xf32>
    %925 = arith.mulf %912, %924 : vector<8x256xf32>
    %c0_344 = arith.constant 0 : index
    %c26_345 = arith.constant 26 : index
    %926 = memref.load %arg4[%c0_344, %c26_345] : memref<4x32xf32, #tpu.memory_space<smem>>
    %927 = vector.broadcast %926 : f32 to vector<8x256xf32>
    %928 = arith.mulf %927, %925 : vector<8x256xf32>
    %c1_346 = arith.constant 1 : index
    %c26_347 = arith.constant 26 : index
    %929 = memref.load %arg4[%c1_346, %c26_347] : memref<4x32xf32, #tpu.memory_space<smem>>
    %930 = vector.broadcast %929 : f32 to vector<8x256xf32>
    %931 = arith.mulf %930, %925 : vector<8x256xf32>
    %c2_348 = arith.constant 2 : index
    %c26_349 = arith.constant 26 : index
    %932 = memref.load %arg4[%c2_348, %c26_349] : memref<4x32xf32, #tpu.memory_space<smem>>
    %933 = vector.broadcast %932 : f32 to vector<8x256xf32>
    %934 = arith.mulf %933, %925 : vector<8x256xf32>
    %c3_350 = arith.constant 3 : index
    %c26_351 = arith.constant 26 : index
    %935 = memref.load %arg4[%c3_350, %c26_351] : memref<4x32xf32, #tpu.memory_space<smem>>
    %936 = vector.broadcast %935 : f32 to vector<8x256xf32>
    %937 = arith.mulf %936, %925 : vector<8x256xf32>
    %938 = arith.addf %903, %928 : vector<8x256xf32>
    %939 = arith.addf %904, %931 : vector<8x256xf32>
    %940 = arith.addf %905, %934 : vector<8x256xf32>
    %941 = arith.addf %906, %937 : vector<8x256xf32>
    %c27 = arith.constant 27 : index
    %942 = memref.load %arg2[%c27] : memref<32xf32, #tpu.memory_space<smem>>
    %943 = vector.broadcast %942 : f32 to vector<8x256xf32>
    %944 = arith.mulf %0, %943 : vector<8x256xf32>
    %c27_352 = arith.constant 27 : index
    %945 = memref.load %arg3[%c27_352] : memref<32xf32, #tpu.memory_space<smem>>
    %946 = vector.broadcast %945 : f32 to vector<8x256xf32>
    %947 = arith.addf %944, %946 : vector<8x256xf32>
    %948 = arith.mulf %947, %947 : vector<8x256xf32>
    %949 = arith.mulf %947, %948 : vector<8x256xf32>
    %cst_353 = arith.constant 4.471500e-02 : f32
    %950 = vector.broadcast %cst_353 : f32 to vector<8x256xf32>
    %951 = arith.mulf %950, %949 : vector<8x256xf32>
    %952 = arith.addf %947, %951 : vector<8x256xf32>
    %cst_354 = arith.constant 0.797884583 : f32
    %953 = vector.broadcast %cst_354 : f32 to vector<8x256xf32>
    %954 = arith.mulf %953, %952 : vector<8x256xf32>
    %955 = math.tanh %954 : vector<8x256xf32>
    %cst_355 = arith.constant 1.000000e+00 : f32
    %956 = vector.broadcast %cst_355 : f32 to vector<8x256xf32>
    %957 = arith.addf %956, %955 : vector<8x256xf32>
    %cst_356 = arith.constant 5.000000e-01 : f32
    %958 = vector.broadcast %cst_356 : f32 to vector<8x256xf32>
    %959 = arith.mulf %958, %957 : vector<8x256xf32>
    %960 = arith.mulf %947, %959 : vector<8x256xf32>
    %c0_357 = arith.constant 0 : index
    %c27_358 = arith.constant 27 : index
    %961 = memref.load %arg4[%c0_357, %c27_358] : memref<4x32xf32, #tpu.memory_space<smem>>
    %962 = vector.broadcast %961 : f32 to vector<8x256xf32>
    %963 = arith.mulf %962, %960 : vector<8x256xf32>
    %c1_359 = arith.constant 1 : index
    %c27_360 = arith.constant 27 : index
    %964 = memref.load %arg4[%c1_359, %c27_360] : memref<4x32xf32, #tpu.memory_space<smem>>
    %965 = vector.broadcast %964 : f32 to vector<8x256xf32>
    %966 = arith.mulf %965, %960 : vector<8x256xf32>
    %c2_361 = arith.constant 2 : index
    %c27_362 = arith.constant 27 : index
    %967 = memref.load %arg4[%c2_361, %c27_362] : memref<4x32xf32, #tpu.memory_space<smem>>
    %968 = vector.broadcast %967 : f32 to vector<8x256xf32>
    %969 = arith.mulf %968, %960 : vector<8x256xf32>
    %c3_363 = arith.constant 3 : index
    %c27_364 = arith.constant 27 : index
    %970 = memref.load %arg4[%c3_363, %c27_364] : memref<4x32xf32, #tpu.memory_space<smem>>
    %971 = vector.broadcast %970 : f32 to vector<8x256xf32>
    %972 = arith.mulf %971, %960 : vector<8x256xf32>
    %973 = arith.addf %938, %963 : vector<8x256xf32>
    %974 = arith.addf %939, %966 : vector<8x256xf32>
    %975 = arith.addf %940, %969 : vector<8x256xf32>
    %976 = arith.addf %941, %972 : vector<8x256xf32>
    %c28 = arith.constant 28 : index
    %977 = memref.load %arg2[%c28] : memref<32xf32, #tpu.memory_space<smem>>
    %978 = vector.broadcast %977 : f32 to vector<8x256xf32>
    %979 = arith.mulf %0, %978 : vector<8x256xf32>
    %c28_365 = arith.constant 28 : index
    %980 = memref.load %arg3[%c28_365] : memref<32xf32, #tpu.memory_space<smem>>
    %981 = vector.broadcast %980 : f32 to vector<8x256xf32>
    %982 = arith.addf %979, %981 : vector<8x256xf32>
    %983 = arith.mulf %982, %982 : vector<8x256xf32>
    %984 = arith.mulf %982, %983 : vector<8x256xf32>
    %cst_366 = arith.constant 4.471500e-02 : f32
    %985 = vector.broadcast %cst_366 : f32 to vector<8x256xf32>
    %986 = arith.mulf %985, %984 : vector<8x256xf32>
    %987 = arith.addf %982, %986 : vector<8x256xf32>
    %cst_367 = arith.constant 0.797884583 : f32
    %988 = vector.broadcast %cst_367 : f32 to vector<8x256xf32>
    %989 = arith.mulf %988, %987 : vector<8x256xf32>
    %990 = math.tanh %989 : vector<8x256xf32>
    %cst_368 = arith.constant 1.000000e+00 : f32
    %991 = vector.broadcast %cst_368 : f32 to vector<8x256xf32>
    %992 = arith.addf %991, %990 : vector<8x256xf32>
    %cst_369 = arith.constant 5.000000e-01 : f32
    %993 = vector.broadcast %cst_369 : f32 to vector<8x256xf32>
    %994 = arith.mulf %993, %992 : vector<8x256xf32>
    %995 = arith.mulf %982, %994 : vector<8x256xf32>
    %c0_370 = arith.constant 0 : index
    %c28_371 = arith.constant 28 : index
    %996 = memref.load %arg4[%c0_370, %c28_371] : memref<4x32xf32, #tpu.memory_space<smem>>
    %997 = vector.broadcast %996 : f32 to vector<8x256xf32>
    %998 = arith.mulf %997, %995 : vector<8x256xf32>
    %c1_372 = arith.constant 1 : index
    %c28_373 = arith.constant 28 : index
    %999 = memref.load %arg4[%c1_372, %c28_373] : memref<4x32xf32, #tpu.memory_space<smem>>
    %1000 = vector.broadcast %999 : f32 to vector<8x256xf32>
    %1001 = arith.mulf %1000, %995 : vector<8x256xf32>
    %c2_374 = arith.constant 2 : index
    %c28_375 = arith.constant 28 : index
    %1002 = memref.load %arg4[%c2_374, %c28_375] : memref<4x32xf32, #tpu.memory_space<smem>>
    %1003 = vector.broadcast %1002 : f32 to vector<8x256xf32>
    %1004 = arith.mulf %1003, %995 : vector<8x256xf32>
    %c3_376 = arith.constant 3 : index
    %c28_377 = arith.constant 28 : index
    %1005 = memref.load %arg4[%c3_376, %c28_377] : memref<4x32xf32, #tpu.memory_space<smem>>
    %1006 = vector.broadcast %1005 : f32 to vector<8x256xf32>
    %1007 = arith.mulf %1006, %995 : vector<8x256xf32>
    %1008 = arith.addf %973, %998 : vector<8x256xf32>
    %1009 = arith.addf %974, %1001 : vector<8x256xf32>
    %1010 = arith.addf %975, %1004 : vector<8x256xf32>
    %1011 = arith.addf %976, %1007 : vector<8x256xf32>
    %c29 = arith.constant 29 : index
    %1012 = memref.load %arg2[%c29] : memref<32xf32, #tpu.memory_space<smem>>
    %1013 = vector.broadcast %1012 : f32 to vector<8x256xf32>
    %1014 = arith.mulf %0, %1013 : vector<8x256xf32>
    %c29_378 = arith.constant 29 : index
    %1015 = memref.load %arg3[%c29_378] : memref<32xf32, #tpu.memory_space<smem>>
    %1016 = vector.broadcast %1015 : f32 to vector<8x256xf32>
    %1017 = arith.addf %1014, %1016 : vector<8x256xf32>
    %1018 = arith.mulf %1017, %1017 : vector<8x256xf32>
    %1019 = arith.mulf %1017, %1018 : vector<8x256xf32>
    %cst_379 = arith.constant 4.471500e-02 : f32
    %1020 = vector.broadcast %cst_379 : f32 to vector<8x256xf32>
    %1021 = arith.mulf %1020, %1019 : vector<8x256xf32>
    %1022 = arith.addf %1017, %1021 : vector<8x256xf32>
    %cst_380 = arith.constant 0.797884583 : f32
    %1023 = vector.broadcast %cst_380 : f32 to vector<8x256xf32>
    %1024 = arith.mulf %1023, %1022 : vector<8x256xf32>
    %1025 = math.tanh %1024 : vector<8x256xf32>
    %cst_381 = arith.constant 1.000000e+00 : f32
    %1026 = vector.broadcast %cst_381 : f32 to vector<8x256xf32>
    %1027 = arith.addf %1026, %1025 : vector<8x256xf32>
    %cst_382 = arith.constant 5.000000e-01 : f32
    %1028 = vector.broadcast %cst_382 : f32 to vector<8x256xf32>
    %1029 = arith.mulf %1028, %1027 : vector<8x256xf32>
    %1030 = arith.mulf %1017, %1029 : vector<8x256xf32>
    %c0_383 = arith.constant 0 : index
    %c29_384 = arith.constant 29 : index
    %1031 = memref.load %arg4[%c0_383, %c29_384] : memref<4x32xf32, #tpu.memory_space<smem>>
    %1032 = vector.broadcast %1031 : f32 to vector<8x256xf32>
    %1033 = arith.mulf %1032, %1030 : vector<8x256xf32>
    %c1_385 = arith.constant 1 : index
    %c29_386 = arith.constant 29 : index
    %1034 = memref.load %arg4[%c1_385, %c29_386] : memref<4x32xf32, #tpu.memory_space<smem>>
    %1035 = vector.broadcast %1034 : f32 to vector<8x256xf32>
    %1036 = arith.mulf %1035, %1030 : vector<8x256xf32>
    %c2_387 = arith.constant 2 : index
    %c29_388 = arith.constant 29 : index
    %1037 = memref.load %arg4[%c2_387, %c29_388] : memref<4x32xf32, #tpu.memory_space<smem>>
    %1038 = vector.broadcast %1037 : f32 to vector<8x256xf32>
    %1039 = arith.mulf %1038, %1030 : vector<8x256xf32>
    %c3_389 = arith.constant 3 : index
    %c29_390 = arith.constant 29 : index
    %1040 = memref.load %arg4[%c3_389, %c29_390] : memref<4x32xf32, #tpu.memory_space<smem>>
    %1041 = vector.broadcast %1040 : f32 to vector<8x256xf32>
    %1042 = arith.mulf %1041, %1030 : vector<8x256xf32>
    %1043 = arith.addf %1008, %1033 : vector<8x256xf32>
    %1044 = arith.addf %1009, %1036 : vector<8x256xf32>
    %1045 = arith.addf %1010, %1039 : vector<8x256xf32>
    %1046 = arith.addf %1011, %1042 : vector<8x256xf32>
    %c30 = arith.constant 30 : index
    %1047 = memref.load %arg2[%c30] : memref<32xf32, #tpu.memory_space<smem>>
    %1048 = vector.broadcast %1047 : f32 to vector<8x256xf32>
    %1049 = arith.mulf %0, %1048 : vector<8x256xf32>
    %c30_391 = arith.constant 30 : index
    %1050 = memref.load %arg3[%c30_391] : memref<32xf32, #tpu.memory_space<smem>>
    %1051 = vector.broadcast %1050 : f32 to vector<8x256xf32>
    %1052 = arith.addf %1049, %1051 : vector<8x256xf32>
    %1053 = arith.mulf %1052, %1052 : vector<8x256xf32>
    %1054 = arith.mulf %1052, %1053 : vector<8x256xf32>
    %cst_392 = arith.constant 4.471500e-02 : f32
    %1055 = vector.broadcast %cst_392 : f32 to vector<8x256xf32>
    %1056 = arith.mulf %1055, %1054 : vector<8x256xf32>
    %1057 = arith.addf %1052, %1056 : vector<8x256xf32>
    %cst_393 = arith.constant 0.797884583 : f32
    %1058 = vector.broadcast %cst_393 : f32 to vector<8x256xf32>
    %1059 = arith.mulf %1058, %1057 : vector<8x256xf32>
    %1060 = math.tanh %1059 : vector<8x256xf32>
    %cst_394 = arith.constant 1.000000e+00 : f32
    %1061 = vector.broadcast %cst_394 : f32 to vector<8x256xf32>
    %1062 = arith.addf %1061, %1060 : vector<8x256xf32>
    %cst_395 = arith.constant 5.000000e-01 : f32
    %1063 = vector.broadcast %cst_395 : f32 to vector<8x256xf32>
    %1064 = arith.mulf %1063, %1062 : vector<8x256xf32>
    %1065 = arith.mulf %1052, %1064 : vector<8x256xf32>
    %c0_396 = arith.constant 0 : index
    %c30_397 = arith.constant 30 : index
    %1066 = memref.load %arg4[%c0_396, %c30_397] : memref<4x32xf32, #tpu.memory_space<smem>>
    %1067 = vector.broadcast %1066 : f32 to vector<8x256xf32>
    %1068 = arith.mulf %1067, %1065 : vector<8x256xf32>
    %c1_398 = arith.constant 1 : index
    %c30_399 = arith.constant 30 : index
    %1069 = memref.load %arg4[%c1_398, %c30_399] : memref<4x32xf32, #tpu.memory_space<smem>>
    %1070 = vector.broadcast %1069 : f32 to vector<8x256xf32>
    %1071 = arith.mulf %1070, %1065 : vector<8x256xf32>
    %c2_400 = arith.constant 2 : index
    %c30_401 = arith.constant 30 : index
    %1072 = memref.load %arg4[%c2_400, %c30_401] : memref<4x32xf32, #tpu.memory_space<smem>>
    %1073 = vector.broadcast %1072 : f32 to vector<8x256xf32>
    %1074 = arith.mulf %1073, %1065 : vector<8x256xf32>
    %c3_402 = arith.constant 3 : index
    %c30_403 = arith.constant 30 : index
    %1075 = memref.load %arg4[%c3_402, %c30_403] : memref<4x32xf32, #tpu.memory_space<smem>>
    %1076 = vector.broadcast %1075 : f32 to vector<8x256xf32>
    %1077 = arith.mulf %1076, %1065 : vector<8x256xf32>
    %1078 = arith.addf %1043, %1068 : vector<8x256xf32>
    %1079 = arith.addf %1044, %1071 : vector<8x256xf32>
    %1080 = arith.addf %1045, %1074 : vector<8x256xf32>
    %1081 = arith.addf %1046, %1077 : vector<8x256xf32>
    %c31 = arith.constant 31 : index
    %1082 = memref.load %arg2[%c31] : memref<32xf32, #tpu.memory_space<smem>>
    %1083 = vector.broadcast %1082 : f32 to vector<8x256xf32>
    %1084 = arith.mulf %0, %1083 : vector<8x256xf32>
    %c31_404 = arith.constant 31 : index
    %1085 = memref.load %arg3[%c31_404] : memref<32xf32, #tpu.memory_space<smem>>
    %1086 = vector.broadcast %1085 : f32 to vector<8x256xf32>
    %1087 = arith.addf %1084, %1086 : vector<8x256xf32>
    %1088 = arith.mulf %1087, %1087 : vector<8x256xf32>
    %1089 = arith.mulf %1087, %1088 : vector<8x256xf32>
    %cst_405 = arith.constant 4.471500e-02 : f32
    %1090 = vector.broadcast %cst_405 : f32 to vector<8x256xf32>
    %1091 = arith.mulf %1090, %1089 : vector<8x256xf32>
    %1092 = arith.addf %1087, %1091 : vector<8x256xf32>
    %cst_406 = arith.constant 0.797884583 : f32
    %1093 = vector.broadcast %cst_406 : f32 to vector<8x256xf32>
    %1094 = arith.mulf %1093, %1092 : vector<8x256xf32>
    %1095 = math.tanh %1094 : vector<8x256xf32>
    %cst_407 = arith.constant 1.000000e+00 : f32
    %1096 = vector.broadcast %cst_407 : f32 to vector<8x256xf32>
    %1097 = arith.addf %1096, %1095 : vector<8x256xf32>
    %cst_408 = arith.constant 5.000000e-01 : f32
    %1098 = vector.broadcast %cst_408 : f32 to vector<8x256xf32>
    %1099 = arith.mulf %1098, %1097 : vector<8x256xf32>
    %1100 = arith.mulf %1087, %1099 : vector<8x256xf32>
    %c0_409 = arith.constant 0 : index
    %c31_410 = arith.constant 31 : index
    %1101 = memref.load %arg4[%c0_409, %c31_410] : memref<4x32xf32, #tpu.memory_space<smem>>
    %1102 = vector.broadcast %1101 : f32 to vector<8x256xf32>
    %1103 = arith.mulf %1102, %1100 : vector<8x256xf32>
    %c1_411 = arith.constant 1 : index
    %c31_412 = arith.constant 31 : index
    %1104 = memref.load %arg4[%c1_411, %c31_412] : memref<4x32xf32, #tpu.memory_space<smem>>
    %1105 = vector.broadcast %1104 : f32 to vector<8x256xf32>
    %1106 = arith.mulf %1105, %1100 : vector<8x256xf32>
    %c2_413 = arith.constant 2 : index
    %c31_414 = arith.constant 31 : index
    %1107 = memref.load %arg4[%c2_413, %c31_414] : memref<4x32xf32, #tpu.memory_space<smem>>
    %1108 = vector.broadcast %1107 : f32 to vector<8x256xf32>
    %1109 = arith.mulf %1108, %1100 : vector<8x256xf32>
    %c3_415 = arith.constant 3 : index
    %c31_416 = arith.constant 31 : index
    %1110 = memref.load %arg4[%c3_415, %c31_416] : memref<4x32xf32, #tpu.memory_space<smem>>
    %1111 = vector.broadcast %1110 : f32 to vector<8x256xf32>
    %1112 = arith.mulf %1111, %1100 : vector<8x256xf32>
    %1113 = arith.addf %1078, %1103 : vector<8x256xf32>
    %1114 = arith.addf %1079, %1106 : vector<8x256xf32>
    %1115 = arith.addf %1080, %1109 : vector<8x256xf32>
    %1116 = arith.addf %1081, %1112 : vector<8x256xf32>
    %c8_i32 = arith.constant 8 : i32
    %1117 = arith.muli %arg0, %c8_i32 : i32
    %1118 = tpu.iota {dimensions = array<i32: 0>} : vector<8x1xi32>
    %1119 = vector.broadcast %1117 : i32 to vector<8x1xi32>
    %1120 = arith.addi %1119, %1118 : vector<8x1xi32>
    %1121 = arith.sitofp %1120 : vector<8x1xi32> to vector<8x1xf32>
    %c0_417 = arith.constant 0 : index
    %c0_418 = arith.constant 0 : index
    %1122 = vector.load %arg8[%c0_417, %c0_418] : memref<1x256xf32, #tpu.memory_space<vmem>>, vector<1x256xf32>
    %c0_419 = arith.constant 0 : index
    %c0_420 = arith.constant 0 : index
    %1123 = vector.load %arg9[%c0_419, %c0_420] : memref<1x256xf32, #tpu.memory_space<vmem>>, vector<1x256xf32>
    %cst_421 = arith.constant 0.000000e+00 : f32
    %1124 = vector.broadcast %cst_421 : f32 to vector<8x256xf32>
    %c0_422 = arith.constant 0 : index
    %c0_423 = arith.constant 0 : index
    %1125 = vector.load %arg11[%c0_422, %c0_423] : memref<8x256xf32, #tpu.memory_space<vmem>>, vector<8x256xf32>
    tpu.vector_store %arg11[%c0_422, %c0_423], %1124 {strides = array<i32>} : memref<8x256xf32, #tpu.memory_space<vmem>>, vector<8x256xf32>,
    %c0_424 = arith.constant 0 : index
    %c0_425 = arith.constant 0 : index
    %1126 = memref.load %arg7[%c0_424, %c0_425] : memref<2x4xi32, #tpu.memory_space<smem>>
    %c-1_i32 = arith.constant -1 : i32
    %1127 = arith.cmpi ne, %1126, %c-1_i32 : i32
    %1128 = arith.extui %1127 : i1 to i32
    %c0_i32 = arith.constant 0 : i32
    %1129 = arith.cmpi ne, %1128, %c0_i32 : i32
    scf.if %1129 {
      %c0_477 = arith.constant 0 : index
      %c0_478 = arith.constant 0 : index
      %c0_479 = arith.constant 0 : index
      %1198 = memref.load %arg6[%c0_477, %c0_478, %c0_479] : memref<2x4x3xf32, #tpu.memory_space<smem>>
      %c0_480 = arith.constant 0 : index
      %c0_481 = arith.constant 0 : index
      %c1_482 = arith.constant 1 : index
      %1199 = memref.load %arg6[%c0_480, %c0_481, %c1_482] : memref<2x4x3xf32, #tpu.memory_space<smem>>
      %c0_483 = arith.constant 0 : index
      %c0_484 = arith.constant 0 : index
      %c2_485 = arith.constant 2 : index
      %1200 = memref.load %arg6[%c0_483, %c0_484, %c2_485] : memref<2x4x3xf32, #tpu.memory_space<smem>>
      %1201 = vector.broadcast %1198 : f32 to vector<8x1xf32>
      %1202 = arith.subf %1121, %1201 : vector<8x1xf32>
      %cst_486 = arith.constant -0.055555556 : f32
      %1203 = vector.broadcast %cst_486 : f32 to vector<8x1xf32>
      %1204 = arith.mulf %1203, %1202 : vector<8x1xf32>
      %1205 = vector.broadcast %1198 : f32 to vector<8x1xf32>
      %1206 = arith.subf %1121, %1205 : vector<8x1xf32>
      %1207 = arith.mulf %1204, %1206 : vector<8x1xf32>
      %1208 = math.exp %1207 : vector<8x1xf32>
      %1209 = vector.broadcast %1199 : f32 to vector<1x256xf32>
      %1210 = arith.subf %1122, %1209 : vector<1x256xf32>
      %1211 = vector.broadcast %1199 : f32 to vector<1x256xf32>
      %1212 = arith.subf %1122, %1211 : vector<1x256xf32>
      %1213 = arith.mulf %1210, %1212 : vector<1x256xf32>
      %1214 = vector.broadcast %1200 : f32 to vector<1x256xf32>
      %1215 = arith.subf %1123, %1214 : vector<1x256xf32>
      %1216 = vector.broadcast %1200 : f32 to vector<1x256xf32>
      %1217 = arith.subf %1123, %1216 : vector<1x256xf32>
      %1218 = arith.mulf %1215, %1217 : vector<1x256xf32>
      %1219 = arith.addf %1213, %1218 : vector<1x256xf32>
      %cst_487 = arith.constant -0.055555556 : f32
      %1220 = vector.broadcast %cst_487 : f32 to vector<1x256xf32>
      %1221 = arith.mulf %1220, %1219 : vector<1x256xf32>
      %1222 = math.exp %1221 : vector<1x256xf32>
      %c0_488 = arith.constant 0 : index
      %c0_489 = arith.constant 0 : index
      %1223 = vector.load %arg11[%c0_488, %c0_489] : memref<8x256xf32, #tpu.memory_space<vmem>>, vector<8x256xf32>
      %1224 = vector.broadcast %1208 : vector<8x1xf32> to vector<8x256xf32>
      %1225 = vector.broadcast %1222 : vector<1x256xf32> to vector<8x256xf32>
      %1226 = arith.mulf %1224, %1225 : vector<8x256xf32>
      %1227 = arith.addf %1223, %1226 : vector<8x256xf32>
      %c0_490 = arith.constant 0 : index
      %c0_491 = arith.constant 0 : index
      %1228 = vector.load %arg11[%c0_490, %c0_491] : memref<8x256xf32, #tpu.memory_space<vmem>>, vector<8x256xf32>
      tpu.vector_store %arg11[%c0_490, %c0_491], %1227 {strides = array<i32>} : memref<8x256xf32, #tpu.memory_space<vmem>>, vector<8x256xf32>,
    } else {
    }
    %c0_426 = arith.constant 0 : index
    %c1_427 = arith.constant 1 : index
    %1130 = memref.load %arg7[%c0_426, %c1_427] : memref<2x4xi32, #tpu.memory_space<smem>>
    %c-1_i32_428 = arith.constant -1 : i32
    %1131 = arith.cmpi ne, %1130, %c-1_i32_428 : i32
    %1132 = arith.extui %1131 : i1 to i32
    %c0_i32_429 = arith.constant 0 : i32
    %1133 = arith.cmpi ne, %1132, %c0_i32_429 : i32
    scf.if %1133 {
      %c0_477 = arith.constant 0 : index
      %c1_478 = arith.constant 1 : index
      %c0_479 = arith.constant 0 : index
      %1198 = memref.load %arg6[%c0_477, %c1_478, %c0_479] : memref<2x4x3xf32, #tpu.memory_space<smem>>
      %c0_480 = arith.constant 0 : index
      %c1_481 = arith.constant 1 : index
      %c1_482 = arith.constant 1 : index
      %1199 = memref.load %arg6[%c0_480, %c1_481, %c1_482] : memref<2x4x3xf32, #tpu.memory_space<smem>>
      %c0_483 = arith.constant 0 : index
      %c1_484 = arith.constant 1 : index
      %c2_485 = arith.constant 2 : index
      %1200 = memref.load %arg6[%c0_483, %c1_484, %c2_485] : memref<2x4x3xf32, #tpu.memory_space<smem>>
      %1201 = vector.broadcast %1198 : f32 to vector<8x1xf32>
      %1202 = arith.subf %1121, %1201 : vector<8x1xf32>
      %cst_486 = arith.constant -0.055555556 : f32
      %1203 = vector.broadcast %cst_486 : f32 to vector<8x1xf32>
      %1204 = arith.mulf %1203, %1202 : vector<8x1xf32>
      %1205 = vector.broadcast %1198 : f32 to vector<8x1xf32>
      %1206 = arith.subf %1121, %1205 : vector<8x1xf32>
      %1207 = arith.mulf %1204, %1206 : vector<8x1xf32>
      %1208 = math.exp %1207 : vector<8x1xf32>
      %1209 = vector.broadcast %1199 : f32 to vector<1x256xf32>
      %1210 = arith.subf %1122, %1209 : vector<1x256xf32>
      %1211 = vector.broadcast %1199 : f32 to vector<1x256xf32>
      %1212 = arith.subf %1122, %1211 : vector<1x256xf32>
      %1213 = arith.mulf %1210, %1212 : vector<1x256xf32>
      %1214 = vector.broadcast %1200 : f32 to vector<1x256xf32>
      %1215 = arith.subf %1123, %1214 : vector<1x256xf32>
      %1216 = vector.broadcast %1200 : f32 to vector<1x256xf32>
      %1217 = arith.subf %1123, %1216 : vector<1x256xf32>
      %1218 = arith.mulf %1215, %1217 : vector<1x256xf32>
      %1219 = arith.addf %1213, %1218 : vector<1x256xf32>
      %cst_487 = arith.constant -0.055555556 : f32
      %1220 = vector.broadcast %cst_487 : f32 to vector<1x256xf32>
      %1221 = arith.mulf %1220, %1219 : vector<1x256xf32>
      %1222 = math.exp %1221 : vector<1x256xf32>
      %c0_488 = arith.constant 0 : index
      %c0_489 = arith.constant 0 : index
      %1223 = vector.load %arg11[%c0_488, %c0_489] : memref<8x256xf32, #tpu.memory_space<vmem>>, vector<8x256xf32>
      %1224 = vector.broadcast %1208 : vector<8x1xf32> to vector<8x256xf32>
      %1225 = vector.broadcast %1222 : vector<1x256xf32> to vector<8x256xf32>
      %1226 = arith.mulf %1224, %1225 : vector<8x256xf32>
      %1227 = arith.addf %1223, %1226 : vector<8x256xf32>
      %c0_490 = arith.constant 0 : index
      %c0_491 = arith.constant 0 : index
      %1228 = vector.load %arg11[%c0_490, %c0_491] : memref<8x256xf32, #tpu.memory_space<vmem>>, vector<8x256xf32>
      tpu.vector_store %arg11[%c0_490, %c0_491], %1227 {strides = array<i32>} : memref<8x256xf32, #tpu.memory_space<vmem>>, vector<8x256xf32>,
    } else {
    }
    %c0_430 = arith.constant 0 : index
    %c2_431 = arith.constant 2 : index
    %1134 = memref.load %arg7[%c0_430, %c2_431] : memref<2x4xi32, #tpu.memory_space<smem>>
    %c-1_i32_432 = arith.constant -1 : i32
    %1135 = arith.cmpi ne, %1134, %c-1_i32_432 : i32
    %1136 = arith.extui %1135 : i1 to i32
    %c0_i32_433 = arith.constant 0 : i32
    %1137 = arith.cmpi ne, %1136, %c0_i32_433 : i32
    scf.if %1137 {
      %c0_477 = arith.constant 0 : index
      %c2_478 = arith.constant 2 : index
      %c0_479 = arith.constant 0 : index
      %1198 = memref.load %arg6[%c0_477, %c2_478, %c0_479] : memref<2x4x3xf32, #tpu.memory_space<smem>>
      %c0_480 = arith.constant 0 : index
      %c2_481 = arith.constant 2 : index
      %c1_482 = arith.constant 1 : index
      %1199 = memref.load %arg6[%c0_480, %c2_481, %c1_482] : memref<2x4x3xf32, #tpu.memory_space<smem>>
      %c0_483 = arith.constant 0 : index
      %c2_484 = arith.constant 2 : index
      %c2_485 = arith.constant 2 : index
      %1200 = memref.load %arg6[%c0_483, %c2_484, %c2_485] : memref<2x4x3xf32, #tpu.memory_space<smem>>
      %1201 = vector.broadcast %1198 : f32 to vector<8x1xf32>
      %1202 = arith.subf %1121, %1201 : vector<8x1xf32>
      %cst_486 = arith.constant -0.055555556 : f32
      %1203 = vector.broadcast %cst_486 : f32 to vector<8x1xf32>
      %1204 = arith.mulf %1203, %1202 : vector<8x1xf32>
      %1205 = vector.broadcast %1198 : f32 to vector<8x1xf32>
      %1206 = arith.subf %1121, %1205 : vector<8x1xf32>
      %1207 = arith.mulf %1204, %1206 : vector<8x1xf32>
      %1208 = math.exp %1207 : vector<8x1xf32>
      %1209 = vector.broadcast %1199 : f32 to vector<1x256xf32>
      %1210 = arith.subf %1122, %1209 : vector<1x256xf32>
      %1211 = vector.broadcast %1199 : f32 to vector<1x256xf32>
      %1212 = arith.subf %1122, %1211 : vector<1x256xf32>
      %1213 = arith.mulf %1210, %1212 : vector<1x256xf32>
      %1214 = vector.broadcast %1200 : f32 to vector<1x256xf32>
      %1215 = arith.subf %1123, %1214 : vector<1x256xf32>
      %1216 = vector.broadcast %1200 : f32 to vector<1x256xf32>
      %1217 = arith.subf %1123, %1216 : vector<1x256xf32>
      %1218 = arith.mulf %1215, %1217 : vector<1x256xf32>
      %1219 = arith.addf %1213, %1218 : vector<1x256xf32>
      %cst_487 = arith.constant -0.055555556 : f32
      %1220 = vector.broadcast %cst_487 : f32 to vector<1x256xf32>
      %1221 = arith.mulf %1220, %1219 : vector<1x256xf32>
      %1222 = math.exp %1221 : vector<1x256xf32>
      %c0_488 = arith.constant 0 : index
      %c0_489 = arith.constant 0 : index
      %1223 = vector.load %arg11[%c0_488, %c0_489] : memref<8x256xf32, #tpu.memory_space<vmem>>, vector<8x256xf32>
      %1224 = vector.broadcast %1208 : vector<8x1xf32> to vector<8x256xf32>
      %1225 = vector.broadcast %1222 : vector<1x256xf32> to vector<8x256xf32>
      %1226 = arith.mulf %1224, %1225 : vector<8x256xf32>
      %1227 = arith.addf %1223, %1226 : vector<8x256xf32>
      %c0_490 = arith.constant 0 : index
      %c0_491 = arith.constant 0 : index
      %1228 = vector.load %arg11[%c0_490, %c0_491] : memref<8x256xf32, #tpu.memory_space<vmem>>, vector<8x256xf32>
      tpu.vector_store %arg11[%c0_490, %c0_491], %1227 {strides = array<i32>} : memref<8x256xf32, #tpu.memory_space<vmem>>, vector<8x256xf32>,
    } else {
    }
    %c0_434 = arith.constant 0 : index
    %c3_435 = arith.constant 3 : index
    %1138 = memref.load %arg7[%c0_434, %c3_435] : memref<2x4xi32, #tpu.memory_space<smem>>
    %c-1_i32_436 = arith.constant -1 : i32
    %1139 = arith.cmpi ne, %1138, %c-1_i32_436 : i32
    %1140 = arith.extui %1139 : i1 to i32
    %c0_i32_437 = arith.constant 0 : i32
    %1141 = arith.cmpi ne, %1140, %c0_i32_437 : i32
    scf.if %1141 {
      %c0_477 = arith.constant 0 : index
      %c3_478 = arith.constant 3 : index
      %c0_479 = arith.constant 0 : index
      %1198 = memref.load %arg6[%c0_477, %c3_478, %c0_479] : memref<2x4x3xf32, #tpu.memory_space<smem>>
      %c0_480 = arith.constant 0 : index
      %c3_481 = arith.constant 3 : index
      %c1_482 = arith.constant 1 : index
      %1199 = memref.load %arg6[%c0_480, %c3_481, %c1_482] : memref<2x4x3xf32, #tpu.memory_space<smem>>
      %c0_483 = arith.constant 0 : index
      %c3_484 = arith.constant 3 : index
      %c2_485 = arith.constant 2 : index
      %1200 = memref.load %arg6[%c0_483, %c3_484, %c2_485] : memref<2x4x3xf32, #tpu.memory_space<smem>>
      %1201 = vector.broadcast %1198 : f32 to vector<8x1xf32>
      %1202 = arith.subf %1121, %1201 : vector<8x1xf32>
      %cst_486 = arith.constant -0.055555556 : f32
      %1203 = vector.broadcast %cst_486 : f32 to vector<8x1xf32>
      %1204 = arith.mulf %1203, %1202 : vector<8x1xf32>
      %1205 = vector.broadcast %1198 : f32 to vector<8x1xf32>
      %1206 = arith.subf %1121, %1205 : vector<8x1xf32>
      %1207 = arith.mulf %1204, %1206 : vector<8x1xf32>
      %1208 = math.exp %1207 : vector<8x1xf32>
      %1209 = vector.broadcast %1199 : f32 to vector<1x256xf32>
      %1210 = arith.subf %1122, %1209 : vector<1x256xf32>
      %1211 = vector.broadcast %1199 : f32 to vector<1x256xf32>
      %1212 = arith.subf %1122, %1211 : vector<1x256xf32>
      %1213 = arith.mulf %1210, %1212 : vector<1x256xf32>
      %1214 = vector.broadcast %1200 : f32 to vector<1x256xf32>
      %1215 = arith.subf %1123, %1214 : vector<1x256xf32>
      %1216 = vector.broadcast %1200 : f32 to vector<1x256xf32>
      %1217 = arith.subf %1123, %1216 : vector<1x256xf32>
      %1218 = arith.mulf %1215, %1217 : vector<1x256xf32>
      %1219 = arith.addf %1213, %1218 : vector<1x256xf32>
      %cst_487 = arith.constant -0.055555556 : f32
      %1220 = vector.broadcast %cst_487 : f32 to vector<1x256xf32>
      %1221 = arith.mulf %1220, %1219 : vector<1x256xf32>
      %1222 = math.exp %1221 : vector<1x256xf32>
      %c0_488 = arith.constant 0 : index
      %c0_489 = arith.constant 0 : index
      %1223 = vector.load %arg11[%c0_488, %c0_489] : memref<8x256xf32, #tpu.memory_space<vmem>>, vector<8x256xf32>
      %1224 = vector.broadcast %1208 : vector<8x1xf32> to vector<8x256xf32>
      %1225 = vector.broadcast %1222 : vector<1x256xf32> to vector<8x256xf32>
      %1226 = arith.mulf %1224, %1225 : vector<8x256xf32>
      %1227 = arith.addf %1223, %1226 : vector<8x256xf32>
      %c0_490 = arith.constant 0 : index
      %c0_491 = arith.constant 0 : index
      %1228 = vector.load %arg11[%c0_490, %c0_491] : memref<8x256xf32, #tpu.memory_space<vmem>>, vector<8x256xf32>
      tpu.vector_store %arg11[%c0_490, %c0_491], %1227 {strides = array<i32>} : memref<8x256xf32, #tpu.memory_space<vmem>>, vector<8x256xf32>,
    } else {
    }
    %c0_438 = arith.constant 0 : index
    %c0_439 = arith.constant 0 : index
    %1142 = vector.load %arg11[%c0_438, %c0_439] : memref<8x256xf32, #tpu.memory_space<vmem>>, vector<8x256xf32>
    %cst_440 = arith.constant 1.000000e+00 : f32
    %1143 = vector.broadcast %cst_440 : f32 to vector<8x256xf32>
    %1144 = arith.subf %1143, %1142 : vector<8x256xf32>
    %cst_441 = arith.constant 0.000000e+00 : f32
    %1145 = vector.broadcast %cst_441 : f32 to vector<8x256xf32>
    %1146 = arith.maximumf %1144, %1145 : vector<8x256xf32>
    %c0_442 = arith.constant 0 : index
    %1147 = memref.load %arg5[%c0_442] : memref<4xf32, #tpu.memory_space<smem>>
    %1148 = vector.broadcast %1147 : f32 to vector<8x256xf32>
    %1149 = arith.addf %1113, %1148 : vector<8x256xf32>
    %c2_443 = arith.constant 2 : index
    %1150 = memref.load %arg5[%c2_443] : memref<4xf32, #tpu.memory_space<smem>>
    %1151 = vector.broadcast %1150 : f32 to vector<8x256xf32>
    %1152 = arith.addf %1115, %1151 : vector<8x256xf32>
    %1153 = arith.mulf %1149, %1146 : vector<8x256xf32>
    %cst_444 = arith.constant 1.000000e+00 : f32
    %1154 = vector.broadcast %cst_444 : f32 to vector<8x256xf32>
    %1155 = arith.subf %1154, %1146 : vector<8x256xf32>
    %1156 = arith.mulf %1155, %1152 : vector<8x256xf32>
    %1157 = arith.addf %1153, %1156 : vector<8x256xf32>
    %c0_445 = arith.constant 0 : index
    %c0_446 = arith.constant 0 : index
    %c0_447 = arith.constant 0 : index
    %1158 = vector.load %arg10[%c0_445, %c0_446, %c0_447] : memref<2x8x256xf32, #tpu.memory_space<vmem>>, vector<1x8x256xf32>
    %1159 = vector.shape_cast %1158 : vector<1x8x256xf32> to vector<8x256xf32>
    %1160 = vector.shape_cast %1157 : vector<8x256xf32> to vector<1x8x256xf32>
    tpu.vector_store %arg10[%c0_445, %c0_446, %c0_447], %1160 {strides = array<i32>} : memref<2x8x256xf32, #tpu.memory_space<vmem>>, vector<1x8x256xf32>,
    %cst_448 = arith.constant 0.000000e+00 : f32
    %1161 = vector.broadcast %cst_448 : f32 to vector<8x256xf32>
    %c0_449 = arith.constant 0 : index
    %c0_450 = arith.constant 0 : index
    %1162 = vector.load %arg11[%c0_449, %c0_450] : memref<8x256xf32, #tpu.memory_space<vmem>>, vector<8x256xf32>
    tpu.vector_store %arg11[%c0_449, %c0_450], %1161 {strides = array<i32>} : memref<8x256xf32, #tpu.memory_space<vmem>>, vector<8x256xf32>,
    %c1_451 = arith.constant 1 : index
    %c0_452 = arith.constant 0 : index
    %1163 = memref.load %arg7[%c1_451, %c0_452] : memref<2x4xi32, #tpu.memory_space<smem>>
    %c-1_i32_453 = arith.constant -1 : i32
    %1164 = arith.cmpi ne, %1163, %c-1_i32_453 : i32
    %1165 = arith.extui %1164 : i1 to i32
    %c0_i32_454 = arith.constant 0 : i32
    %1166 = arith.cmpi ne, %1165, %c0_i32_454 : i32
    scf.if %1166 {
      %c1_477 = arith.constant 1 : index
      %c0_478 = arith.constant 0 : index
      %c0_479 = arith.constant 0 : index
      %1198 = memref.load %arg6[%c1_477, %c0_478, %c0_479] : memref<2x4x3xf32, #tpu.memory_space<smem>>
      %c1_480 = arith.constant 1 : index
      %c0_481 = arith.constant 0 : index
      %c1_482 = arith.constant 1 : index
      %1199 = memref.load %arg6[%c1_480, %c0_481, %c1_482] : memref<2x4x3xf32, #tpu.memory_space<smem>>
      %c1_483 = arith.constant 1 : index
      %c0_484 = arith.constant 0 : index
      %c2_485 = arith.constant 2 : index
      %1200 = memref.load %arg6[%c1_483, %c0_484, %c2_485] : memref<2x4x3xf32, #tpu.memory_space<smem>>
      %1201 = vector.broadcast %1198 : f32 to vector<8x1xf32>
      %1202 = arith.subf %1121, %1201 : vector<8x1xf32>
      %cst_486 = arith.constant -0.055555556 : f32
      %1203 = vector.broadcast %cst_486 : f32 to vector<8x1xf32>
      %1204 = arith.mulf %1203, %1202 : vector<8x1xf32>
      %1205 = vector.broadcast %1198 : f32 to vector<8x1xf32>
      %1206 = arith.subf %1121, %1205 : vector<8x1xf32>
      %1207 = arith.mulf %1204, %1206 : vector<8x1xf32>
      %1208 = math.exp %1207 : vector<8x1xf32>
      %1209 = vector.broadcast %1199 : f32 to vector<1x256xf32>
      %1210 = arith.subf %1122, %1209 : vector<1x256xf32>
      %1211 = vector.broadcast %1199 : f32 to vector<1x256xf32>
      %1212 = arith.subf %1122, %1211 : vector<1x256xf32>
      %1213 = arith.mulf %1210, %1212 : vector<1x256xf32>
      %1214 = vector.broadcast %1200 : f32 to vector<1x256xf32>
      %1215 = arith.subf %1123, %1214 : vector<1x256xf32>
      %1216 = vector.broadcast %1200 : f32 to vector<1x256xf32>
      %1217 = arith.subf %1123, %1216 : vector<1x256xf32>
      %1218 = arith.mulf %1215, %1217 : vector<1x256xf32>
      %1219 = arith.addf %1213, %1218 : vector<1x256xf32>
      %cst_487 = arith.constant -0.055555556 : f32
      %1220 = vector.broadcast %cst_487 : f32 to vector<1x256xf32>
      %1221 = arith.mulf %1220, %1219 : vector<1x256xf32>
      %1222 = math.exp %1221 : vector<1x256xf32>
      %c0_488 = arith.constant 0 : index
      %c0_489 = arith.constant 0 : index
      %1223 = vector.load %arg11[%c0_488, %c0_489] : memref<8x256xf32, #tpu.memory_space<vmem>>, vector<8x256xf32>
      %1224 = vector.broadcast %1208 : vector<8x1xf32> to vector<8x256xf32>
      %1225 = vector.broadcast %1222 : vector<1x256xf32> to vector<8x256xf32>
      %1226 = arith.mulf %1224, %1225 : vector<8x256xf32>
      %1227 = arith.addf %1223, %1226 : vector<8x256xf32>
      %c0_490 = arith.constant 0 : index
      %c0_491 = arith.constant 0 : index
      %1228 = vector.load %arg11[%c0_490, %c0_491] : memref<8x256xf32, #tpu.memory_space<vmem>>, vector<8x256xf32>
      tpu.vector_store %arg11[%c0_490, %c0_491], %1227 {strides = array<i32>} : memref<8x256xf32, #tpu.memory_space<vmem>>, vector<8x256xf32>,
    } else {
    }
    %c1_455 = arith.constant 1 : index
    %c1_456 = arith.constant 1 : index
    %1167 = memref.load %arg7[%c1_455, %c1_456] : memref<2x4xi32, #tpu.memory_space<smem>>
    %c-1_i32_457 = arith.constant -1 : i32
    %1168 = arith.cmpi ne, %1167, %c-1_i32_457 : i32
    %1169 = arith.extui %1168 : i1 to i32
    %c0_i32_458 = arith.constant 0 : i32
    %1170 = arith.cmpi ne, %1169, %c0_i32_458 : i32
    scf.if %1170 {
      %c1_477 = arith.constant 1 : index
      %c1_478 = arith.constant 1 : index
      %c0_479 = arith.constant 0 : index
      %1198 = memref.load %arg6[%c1_477, %c1_478, %c0_479] : memref<2x4x3xf32, #tpu.memory_space<smem>>
      %c1_480 = arith.constant 1 : index
      %c1_481 = arith.constant 1 : index
      %c1_482 = arith.constant 1 : index
      %1199 = memref.load %arg6[%c1_480, %c1_481, %c1_482] : memref<2x4x3xf32, #tpu.memory_space<smem>>
      %c1_483 = arith.constant 1 : index
      %c1_484 = arith.constant 1 : index
      %c2_485 = arith.constant 2 : index
      %1200 = memref.load %arg6[%c1_483, %c1_484, %c2_485] : memref<2x4x3xf32, #tpu.memory_space<smem>>
      %1201 = vector.broadcast %1198 : f32 to vector<8x1xf32>
      %1202 = arith.subf %1121, %1201 : vector<8x1xf32>
      %cst_486 = arith.constant -0.055555556 : f32
      %1203 = vector.broadcast %cst_486 : f32 to vector<8x1xf32>
      %1204 = arith.mulf %1203, %1202 : vector<8x1xf32>
      %1205 = vector.broadcast %1198 : f32 to vector<8x1xf32>
      %1206 = arith.subf %1121, %1205 : vector<8x1xf32>
      %1207 = arith.mulf %1204, %1206 : vector<8x1xf32>
      %1208 = math.exp %1207 : vector<8x1xf32>
      %1209 = vector.broadcast %1199 : f32 to vector<1x256xf32>
      %1210 = arith.subf %1122, %1209 : vector<1x256xf32>
      %1211 = vector.broadcast %1199 : f32 to vector<1x256xf32>
      %1212 = arith.subf %1122, %1211 : vector<1x256xf32>
      %1213 = arith.mulf %1210, %1212 : vector<1x256xf32>
      %1214 = vector.broadcast %1200 : f32 to vector<1x256xf32>
      %1215 = arith.subf %1123, %1214 : vector<1x256xf32>
      %1216 = vector.broadcast %1200 : f32 to vector<1x256xf32>
      %1217 = arith.subf %1123, %1216 : vector<1x256xf32>
      %1218 = arith.mulf %1215, %1217 : vector<1x256xf32>
      %1219 = arith.addf %1213, %1218 : vector<1x256xf32>
      %cst_487 = arith.constant -0.055555556 : f32
      %1220 = vector.broadcast %cst_487 : f32 to vector<1x256xf32>
      %1221 = arith.mulf %1220, %1219 : vector<1x256xf32>
      %1222 = math.exp %1221 : vector<1x256xf32>
      %c0_488 = arith.constant 0 : index
      %c0_489 = arith.constant 0 : index
      %1223 = vector.load %arg11[%c0_488, %c0_489] : memref<8x256xf32, #tpu.memory_space<vmem>>, vector<8x256xf32>
      %1224 = vector.broadcast %1208 : vector<8x1xf32> to vector<8x256xf32>
      %1225 = vector.broadcast %1222 : vector<1x256xf32> to vector<8x256xf32>
      %1226 = arith.mulf %1224, %1225 : vector<8x256xf32>
      %1227 = arith.addf %1223, %1226 : vector<8x256xf32>
      %c0_490 = arith.constant 0 : index
      %c0_491 = arith.constant 0 : index
      %1228 = vector.load %arg11[%c0_490, %c0_491] : memref<8x256xf32, #tpu.memory_space<vmem>>, vector<8x256xf32>
      tpu.vector_store %arg11[%c0_490, %c0_491], %1227 {strides = array<i32>} : memref<8x256xf32, #tpu.memory_space<vmem>>, vector<8x256xf32>,
    } else {
    }
    %c1_459 = arith.constant 1 : index
    %c2_460 = arith.constant 2 : index
    %1171 = memref.load %arg7[%c1_459, %c2_460] : memref<2x4xi32, #tpu.memory_space<smem>>
    %c-1_i32_461 = arith.constant -1 : i32
    %1172 = arith.cmpi ne, %1171, %c-1_i32_461 : i32
    %1173 = arith.extui %1172 : i1 to i32
    %c0_i32_462 = arith.constant 0 : i32
    %1174 = arith.cmpi ne, %1173, %c0_i32_462 : i32
    scf.if %1174 {
      %c1_477 = arith.constant 1 : index
      %c2_478 = arith.constant 2 : index
      %c0_479 = arith.constant 0 : index
      %1198 = memref.load %arg6[%c1_477, %c2_478, %c0_479] : memref<2x4x3xf32, #tpu.memory_space<smem>>
      %c1_480 = arith.constant 1 : index
      %c2_481 = arith.constant 2 : index
      %c1_482 = arith.constant 1 : index
      %1199 = memref.load %arg6[%c1_480, %c2_481, %c1_482] : memref<2x4x3xf32, #tpu.memory_space<smem>>
      %c1_483 = arith.constant 1 : index
      %c2_484 = arith.constant 2 : index
      %c2_485 = arith.constant 2 : index
      %1200 = memref.load %arg6[%c1_483, %c2_484, %c2_485] : memref<2x4x3xf32, #tpu.memory_space<smem>>
      %1201 = vector.broadcast %1198 : f32 to vector<8x1xf32>
      %1202 = arith.subf %1121, %1201 : vector<8x1xf32>
      %cst_486 = arith.constant -0.055555556 : f32
      %1203 = vector.broadcast %cst_486 : f32 to vector<8x1xf32>
      %1204 = arith.mulf %1203, %1202 : vector<8x1xf32>
      %1205 = vector.broadcast %1198 : f32 to vector<8x1xf32>
      %1206 = arith.subf %1121, %1205 : vector<8x1xf32>
      %1207 = arith.mulf %1204, %1206 : vector<8x1xf32>
      %1208 = math.exp %1207 : vector<8x1xf32>
      %1209 = vector.broadcast %1199 : f32 to vector<1x256xf32>
      %1210 = arith.subf %1122, %1209 : vector<1x256xf32>
      %1211 = vector.broadcast %1199 : f32 to vector<1x256xf32>
      %1212 = arith.subf %1122, %1211 : vector<1x256xf32>
      %1213 = arith.mulf %1210, %1212 : vector<1x256xf32>
      %1214 = vector.broadcast %1200 : f32 to vector<1x256xf32>
      %1215 = arith.subf %1123, %1214 : vector<1x256xf32>
      %1216 = vector.broadcast %1200 : f32 to vector<1x256xf32>
      %1217 = arith.subf %1123, %1216 : vector<1x256xf32>
      %1218 = arith.mulf %1215, %1217 : vector<1x256xf32>
      %1219 = arith.addf %1213, %1218 : vector<1x256xf32>
      %cst_487 = arith.constant -0.055555556 : f32
      %1220 = vector.broadcast %cst_487 : f32 to vector<1x256xf32>
      %1221 = arith.mulf %1220, %1219 : vector<1x256xf32>
      %1222 = math.exp %1221 : vector<1x256xf32>
      %c0_488 = arith.constant 0 : index
      %c0_489 = arith.constant 0 : index
      %1223 = vector.load %arg11[%c0_488, %c0_489] : memref<8x256xf32, #tpu.memory_space<vmem>>, vector<8x256xf32>
      %1224 = vector.broadcast %1208 : vector<8x1xf32> to vector<8x256xf32>
      %1225 = vector.broadcast %1222 : vector<1x256xf32> to vector<8x256xf32>
      %1226 = arith.mulf %1224, %1225 : vector<8x256xf32>
      %1227 = arith.addf %1223, %1226 : vector<8x256xf32>
      %c0_490 = arith.constant 0 : index
      %c0_491 = arith.constant 0 : index
      %1228 = vector.load %arg11[%c0_490, %c0_491] : memref<8x256xf32, #tpu.memory_space<vmem>>, vector<8x256xf32>
      tpu.vector_store %arg11[%c0_490, %c0_491], %1227 {strides = array<i32>} : memref<8x256xf32, #tpu.memory_space<vmem>>, vector<8x256xf32>,
    } else {
    }
    %c1_463 = arith.constant 1 : index
    %c3_464 = arith.constant 3 : index
    %1175 = memref.load %arg7[%c1_463, %c3_464] : memref<2x4xi32, #tpu.memory_space<smem>>
    %c-1_i32_465 = arith.constant -1 : i32
    %1176 = arith.cmpi ne, %1175, %c-1_i32_465 : i32
    %1177 = arith.extui %1176 : i1 to i32
    %c0_i32_466 = arith.constant 0 : i32
    %1178 = arith.cmpi ne, %1177, %c0_i32_466 : i32
    scf.if %1178 {
      %c1_477 = arith.constant 1 : index
      %c3_478 = arith.constant 3 : index
      %c0_479 = arith.constant 0 : index
      %1198 = memref.load %arg6[%c1_477, %c3_478, %c0_479] : memref<2x4x3xf32, #tpu.memory_space<smem>>
      %c1_480 = arith.constant 1 : index
      %c3_481 = arith.constant 3 : index
      %c1_482 = arith.constant 1 : index
      %1199 = memref.load %arg6[%c1_480, %c3_481, %c1_482] : memref<2x4x3xf32, #tpu.memory_space<smem>>
      %c1_483 = arith.constant 1 : index
      %c3_484 = arith.constant 3 : index
      %c2_485 = arith.constant 2 : index
      %1200 = memref.load %arg6[%c1_483, %c3_484, %c2_485] : memref<2x4x3xf32, #tpu.memory_space<smem>>
      %1201 = vector.broadcast %1198 : f32 to vector<8x1xf32>
      %1202 = arith.subf %1121, %1201 : vector<8x1xf32>
      %cst_486 = arith.constant -0.055555556 : f32
      %1203 = vector.broadcast %cst_486 : f32 to vector<8x1xf32>
      %1204 = arith.mulf %1203, %1202 : vector<8x1xf32>
      %1205 = vector.broadcast %1198 : f32 to vector<8x1xf32>
      %1206 = arith.subf %1121, %1205 : vector<8x1xf32>
      %1207 = arith.mulf %1204, %1206 : vector<8x1xf32>
      %1208 = math.exp %1207 : vector<8x1xf32>
      %1209 = vector.broadcast %1199 : f32 to vector<1x256xf32>
      %1210 = arith.subf %1122, %1209 : vector<1x256xf32>
      %1211 = vector.broadcast %1199 : f32 to vector<1x256xf32>
      %1212 = arith.subf %1122, %1211 : vector<1x256xf32>
      %1213 = arith.mulf %1210, %1212 : vector<1x256xf32>
      %1214 = vector.broadcast %1200 : f32 to vector<1x256xf32>
      %1215 = arith.subf %1123, %1214 : vector<1x256xf32>
      %1216 = vector.broadcast %1200 : f32 to vector<1x256xf32>
      %1217 = arith.subf %1123, %1216 : vector<1x256xf32>
      %1218 = arith.mulf %1215, %1217 : vector<1x256xf32>
      %1219 = arith.addf %1213, %1218 : vector<1x256xf32>
      %cst_487 = arith.constant -0.055555556 : f32
      %1220 = vector.broadcast %cst_487 : f32 to vector<1x256xf32>
      %1221 = arith.mulf %1220, %1219 : vector<1x256xf32>
      %1222 = math.exp %1221 : vector<1x256xf32>
      %c0_488 = arith.constant 0 : index
      %c0_489 = arith.constant 0 : index
      %1223 = vector.load %arg11[%c0_488, %c0_489] : memref<8x256xf32, #tpu.memory_space<vmem>>, vector<8x256xf32>
      %1224 = vector.broadcast %1208 : vector<8x1xf32> to vector<8x256xf32>
      %1225 = vector.broadcast %1222 : vector<1x256xf32> to vector<8x256xf32>
      %1226 = arith.mulf %1224, %1225 : vector<8x256xf32>
      %1227 = arith.addf %1223, %1226 : vector<8x256xf32>
      %c0_490 = arith.constant 0 : index
      %c0_491 = arith.constant 0 : index
      %1228 = vector.load %arg11[%c0_490, %c0_491] : memref<8x256xf32, #tpu.memory_space<vmem>>, vector<8x256xf32>
      tpu.vector_store %arg11[%c0_490, %c0_491], %1227 {strides = array<i32>} : memref<8x256xf32, #tpu.memory_space<vmem>>, vector<8x256xf32>,
    } else {
    }
    %c0_467 = arith.constant 0 : index
    %c0_468 = arith.constant 0 : index
    %1179 = vector.load %arg11[%c0_467, %c0_468] : memref<8x256xf32, #tpu.memory_space<vmem>>, vector<8x256xf32>
    %cst_469 = arith.constant 1.000000e+00 : f32
    %1180 = vector.broadcast %cst_469 : f32 to vector<8x256xf32>
    %1181 = arith.subf %1180, %1179 : vector<8x256xf32>
    %cst_470 = arith.constant 0.000000e+00 : f32
    %1182 = vector.broadcast %cst_470 : f32 to vector<8x256xf32>
    %1183 = arith.maximumf %1181, %1182 : vector<8x256xf32>
    %c1_471 = arith.constant 1 : index
    %1184 = memref.load %arg5[%c1_471] : memref<4xf32, #tpu.memory_space<smem>>
    %1185 = vector.broadcast %1184 : f32 to vector<8x256xf32>
    %1186 = arith.addf %1114, %1185 : vector<8x256xf32>
    %c3_472 = arith.constant 3 : index
    %1187 = memref.load %arg5[%c3_472] : memref<4xf32, #tpu.memory_space<smem>>
    %1188 = vector.broadcast %1187 : f32 to vector<8x256xf32>
    %1189 = arith.addf %1116, %1188 : vector<8x256xf32>
    %1190 = arith.mulf %1186, %1183 : vector<8x256xf32>
    %cst_473 = arith.constant 1.000000e+00 : f32
    %1191 = vector.broadcast %cst_473 : f32 to vector<8x256xf32>
    %1192 = arith.subf %1191, %1183 : vector<8x256xf32>
    %1193 = arith.mulf %1192, %1189 : vector<8x256xf32>
    %1194 = arith.addf %1190, %1193 : vector<8x256xf32>
    %c1_474 = arith.constant 1 : index
    %c0_475 = arith.constant 0 : index
    %c0_476 = arith.constant 0 : index
    %1195 = vector.load %arg10[%c1_474, %c0_475, %c0_476] : memref<2x8x256xf32, #tpu.memory_space<vmem>>, vector<1x8x256xf32>
    %1196 = vector.shape_cast %1195 : vector<1x8x256xf32> to vector<8x256xf32>
    %1197 = vector.shape_cast %1194 : vector<8x256xf32> to vector<1x8x256xf32>
    tpu.vector_store %arg10[%c1_474, %c0_475, %c0_476], %1197 {strides = array<i32>} : memref<2x8x256xf32, #tpu.memory_space<vmem>>, vector<1x8x256xf32>,
    return
  }
  func.func @transform_0(%arg0: i32) -> (i32, i32) {
    %c0_i32 = arith.constant 0 : i32
    %c0_i32_0 = arith.constant 0 : i32
    return %arg0, %c0_i32 : i32, i32
  }
  func.func @transform_1(%arg0: i32) -> i32 {
    %c0_i32 = arith.constant 0 : i32
    %c0_i32_0 = arith.constant 0 : i32
    return %c0_i32 : i32
  }
  func.func @transform_2(%arg0: i32) -> i32 {
    %c0_i32 = arith.constant 0 : i32
    %c0_i32_0 = arith.constant 0 : i32
    return %c0_i32 : i32
  }
  func.func @transform_3(%arg0: i32) -> (i32, i32) {
    %c0_i32 = arith.constant 0 : i32
    %c0_i32_0 = arith.constant 0 : i32
    %c0_i32_1 = arith.constant 0 : i32
    return %c0_i32, %c0_i32_0 : i32, i32
  }
  func.func @transform_4(%arg0: i32) -> i32 {
    %c0_i32 = arith.constant 0 : i32
    %c0_i32_0 = arith.constant 0 : i32
    return %c0_i32 : i32
  }
  func.func @transform_5(%arg0: i32) -> (i32, i32, i32) {
    %c0_i32 = arith.constant 0 : i32
    %c0_i32_0 = arith.constant 0 : i32
    %c0_i32_1 = arith.constant 0 : i32
    %c0_i32_2 = arith.constant 0 : i32
    return %c0_i32, %c0_i32_0, %c0_i32_1 : i32, i32, i32
  }
  func.func @transform_6(%arg0: i32) -> (i32, i32) {
    %c0_i32 = arith.constant 0 : i32
    %c0_i32_0 = arith.constant 0 : i32
    %c0_i32_1 = arith.constant 0 : i32
    return %c0_i32, %c0_i32_0 : i32, i32
  }
  func.func @transform_7(%arg0: i32) -> (i32, i32) {
    %c0_i32 = arith.constant 0 : i32
    %c0_i32_0 = arith.constant 0 : i32
    %c0_i32_1 = arith.constant 0 : i32
    return %c0_i32, %c0_i32_0 : i32, i32
  }
  func.func @transform_8(%arg0: i32) -> (i32, i32) {
    %c0_i32 = arith.constant 0 : i32
    %c0_i32_0 = arith.constant 0 : i32
    %c0_i32_1 = arith.constant 0 : i32
    return %c0_i32, %c0_i32_0 : i32, i32
  }
  func.func @transform_9(%arg0: i32) -> (i32, i32, i32) {
    %c0_i32 = arith.constant 0 : i32
    %c0_i32_0 = arith.constant 0 : i32
    %c0_i32_1 = arith.constant 0 : i32
    return %c0_i32, %arg0, %c0_i32_0 : i32, i32, i32
  }
}

</mosaic_0001>

<bundles_post_ra>
// kernel: tpu_custom_call.1
= control target key start
LH: loop header
LB: loop body
LE: loop exit
PB: predicated region body
PF: predicated region fallthrough
CT: control target
= control target key end

     0   :  { %s5277_s0 = inlined_call_operand.hbm [shape: f32[16,256], index: 0, kind: input, shape index: {}]   ;;  %s5278_s1 = inlined_call_operand.vmem [shape: f32[32], index: 1, kind: input, shape index: {}]   ;;  %s5279_s2 = inlined_call_operand.vmem [shape: f32[32], index: 2, kind: input, shape index: {}]   ;;  %s5280_s3 = inlined_call_operand.vmem [shape: f32[4,32], index: 3, kind: input, shape index: {}]   ;;  %s5281_s4 = inlined_call_operand.vmem [shape: f32[4], index: 4, kind: input, shape index: {}]   ;;  %s5282_s5 = inlined_call_operand.vmem [shape: f32[2,4,3], index: 5, kind: input, shape index: {}]   ;;  %s5283_s6 = inlined_call_operand.vmem [shape: s32[2,4], index: 6, kind: input, shape index: {}]   ;;  %s5284_s7 = inlined_call_operand.vmem [shape: f32[1,256], index: 7, kind: input, shape index: {}]   ;;  %s5285_s8 = inlined_call_operand.vmem [shape: f32[1,256], index: 8, kind: input, shape index: {}]   ;;  %s5286_s9 = inlined_call_operand.hbm [shape: f32[2,16,256], index: 9, kind: output, shape index: {}]  }
   0x1   :  { %5289 = sst [smem:[#allocation26_spill]] %s5277_s0 }
   0x2   :  { %5290 = sst [smem:[#allocation27_spill]] %s5278_s1 }
   0x3   :  { %5291 = sst [smem:[#allocation28_spill]] %s5279_s2 }
   0x4   :  { %5292 = sst [smem:[#allocation29_spill]] %s5280_s3 }
   0x5   :  { %5293 = sst [smem:[#allocation30_spill]] %s5281_s4 }
   0x6   :  { %5294 = sst [smem:[#allocation31_spill]] %s5282_s5 }
   0x7   :  { %5295 = sst [smem:[#allocation32_spill]] %s5283_s6 }
   0x8   :  { %14 = vsyncpa [#allocation4], 0 }
   0x9   :  { %16 = vsyncpa [#allocation4 + $0x1], 0 }
   0xa   :  { %17 = vsyncpa [#allocation6], 0 }
   0xb   :  { %18 = vsyncpa [#allocation9], 0 }
   0xc   :  { %19 = vsyncpa [#allocation12], 0 }
   0xd   :  { %20 = vsyncpa [#allocation15], 0 }
   0xe   :  { %21 = vsyncpa [#allocation5], 0 }
   0xf   :  { %23 = vsyncpa [#allocation5 + $0x1], 0  ;;  %s3334_s30 = smov 0   ;;  %s3336_s10 = smov 0  }
  0x10   :  { %s3338_s11 = smov 0   ;;  %s3340_s12 = smov 0  }
  0x11 LB: > { %5296 = sst [smem:[#allocation23_spill]] %s3262_s10  ;;  %s3358_s16 = sadd.s32 4294967295, %s3270_s12   ;;  %s3270_s12 = sphi %s3340_s12, %s5318_s12   ;;  %s3266_s11 = sphi %s3338_s11, %s5317_s11   ;;  %s3262_s10 = sphi %s3336_s10, %s5316_s10   ;;  %s3258_s30 = sphi %s3334_s30, %s5315_s30  }
  0x12   : > { %5297 = sst [smem:[#allocation24_spill]] %s3266_s11  ;;  %p2531_p0 = scmp.ge.s32.totalorder %s3270_s12, 1 }
  0x13   : > { %s5298_s2 = sld [smem:[#allocation28_spill]]  ;;  %p50_p1 = scmp.eq.s32.totalorder %s3358_s16, 0 }
  0x14   : > { %p254_p2 = scmp.lt.s32.totalorder %s3270_s12, 3  ;;  %s5300_s4 = sld [smem:[#allocation30_spill]] }
  0x15   : > { %s5301_s1 = sld [smem:[#allocation27_spill]]  ;;  %s3272_s28 = smov [#allocation8]  }
  0x16   : > { %p3363_p3 = pnand %p2531_p0, %p254_p2  ;;  %s5303_s3 = sld [smem:[#allocation29_spill]] }
  0x17   : > { %s3273_s29 = smov [#allocation11]   ;;  %s3274_s13 = smov [#allocation7]  }
  0x18   : > { %p2819_p5 = pneg %p3363_p3  ;;  %s3275_s14 = smov [#allocation10]  }
  0x19   : > { %s276_s15 = sshll.u32 %s5298_s2, 4  ;;  %s5304_s5 = sld [smem:[#allocation31_spill]]  ;;  %s277_s15 = int_to_ptr.vmem [resolvable:$true] %s276_s15 }
  0x1a   : > { %s296_s20 = sshll.u32 %s5300_s4, 4  ;;  %p3378_p6 = pnand %p2819_p5, %p50_p1  ;;  %s297_s20 = int_to_ptr.vmem [resolvable:$true] %s296_s20 }
  0x1b   : > { %s266_s23 = sshll.u32 %s5301_s1, 4  ;;  %s5305_s6 = sld [smem:[#allocation32_spill]]  ;;  %s267_s23 = int_to_ptr.vmem [resolvable:$true] %s266_s23 }
  0x1c   : > { %s286_s27 = sshll.u32 %s5303_s3, 4  ;;  %s3277_s25 = smov 64   ;;  %s287_s27 = int_to_ptr.vmem [resolvable:$true] %s286_s27 }
  0x1d   : > { %2825 = dma.vmem_to_smem (!%p3378_p6), %s277_s15, 16, %s3272_s28, [#allocation9]  }
  0x1e   : > { %2831 = dma.vmem_to_smem (!%p3378_p6), %s297_s20, 16, %s3273_s29, [#allocation12]  }
  0x1f   : > { %2822 = dma.vmem_to_smem (!%p3378_p6), %s267_s23, 16, %s3274_s13, [#allocation6]  }
  0x20   : > { %2828 = dma.vmem_to_smem (!%p3378_p6), %s287_s27, 64, %s3275_s14, [#allocation9]  }
  0x21   : > { %s305_s15 = sshll.u32 %s5304_s5, 4  ;;  %s318_s20 = sshll.u32 %s5305_s6, 4  ;;  %s306_s15 = int_to_ptr.vmem [resolvable:$true] %s305_s15  ;;  %s319_s20 = int_to_ptr.vmem [resolvable:$true] %s318_s20 }
  0x22   : > { %s3276_s23 = smov [#allocation13]   ;;  %s3278_s26 = smov 4  }
  0x23   : > { %2834 = dma.vmem_to_smem (!%p3378_p6), %s306_s15, 128, %s3276_s23, [#allocation12], %s3277_s25, %s3277_s25, %s3278_s26  }
  0x24   : > { %s3279_s27 = smov [#allocation14]   ;;  %s2530_s28 = sadd.s32 4294967294, %s3270_s12  }
  0x25   : > { %2837 = dma.vmem_to_smem (!%p3378_p6), %s319_s20, 32, %s3279_s27, [#allocation15]  }
  0x26   : > { %s3405_s29 = sadd.s32 1, %s3270_s12   ;;  %s36_s14 = sadd.s32 1, %s3266_s11 }
  0x27   : > { %s33_s13 = ssub.s32 %s3270_s12, %s3405_s29  ;;  %p43_p8 = scmp.ne.s32.totalorder %s3266_s11, %s3262_s10 }
  0x28   : > { %p34_p7 = scmp.eq.s32.totalorder %s33_s13, 0  ;;  %p44_p9 = scmp.eq.s32.totalorder %s3270_s12, 0 }
  0x29   : > { %p49_p10 = scmp.ne.s32.totalorder %s3262_s10, %s3258_s30  ;;  %p241_p13 = scmp.eq.s32.totalorder %s3358_s16, 1 }
  0x2a   : > { %s3416_s18 = scalar_select %p34_p7, %s3266_s11, %s36_s14  }
  0x2b   : > { %p3418_p11 = por %p44_p9, %p43_p8  ;;  %p3424_p12 = por %p50_p1, %p49_p10 }
  0x2c   : > { %5306 = sst [smem:[#allocation25_spill]] %s3416_s18  ;;  %p247_p0 = scmp.eq.s32.totalorder %s2530_s28, 1 }
  0x2d   : > { %p2852_p2 = scmp.lt.s32.totalorder %s3270_s12, 2  ;;  %s335_s15 = sand.u32 1, %s3266_s11  }
  0x2e   : > { %p3431_p5 = por %p241_p13, %p43_p8  ;;  %p3435_p6 = por %p247_p0, %p49_p10 }
  0x2f   : > { %s2539_s20 = sshll.u32 %s335_s15, 4  ;;  %s2789_s23 = sshll.u32 %s3270_s12, 4 }
  0x30   : > { %s5311_s0 = sld [smem:[#allocation26_spill]]  ;;  %s339_s13 = scalar_lea.vmem [#allocation3], %s2539_s20 }
  0x31   : > { %s348_s14 = sshll.u32 %s339_s13, 4  ;;  %p3445_p7 = pnand %p2852_p2, %p3418_p11  ;;  %s349_s14 = int_to_ptr.vmem [resolvable:$true] %s348_s14 }
  0x32   : > { %s336_s2 = scalar_lea.sflag [#allocation4], %s335_s15 }
  0x33   : > { %p3162_p9 = pneg %p3445_p7 }
  0x36   : > { %s344_s27 = scalar_lea.hbm %s5311_s0, %s2789_s23  ;;  %s3165_s25 = scalar_lea.hbm %s5311_s0, 32 }
  0x37   : > { %s346_s1 = sshll.u32 %s344_s27, 4  ;;  %s347_s1 = int_to_ptr.hbm [resolvable:$true] %s346_s1 }
  0x38   : > { %s3158_s3 = sshra.s32 %s347_s1, 4  ;;  %s3159_s3 = int_to_ptr.hbm [resolvable:$true] %s3158_s3 }
  0x39   : > { %s3160_s4 = scalar_lea.hbm %s3159_s3, 16  ;;  %p3166_p11 = scmp.lt.s32.totalorder %s3159_s3, %s5311_s0 }
  0x3a   : > { %p3161_p8 = scmp.ne.s32.totalorder %s3159_s3, %s3160_s4  ;;  %p3167_p0 = scmp.lt.s32.totalorder %s3165_s25, %s3160_s4 }
  0x3c   : > { %p3163_p10 = pnand %p3162_p9, %p3161_p8  ;;  %p3168_p2 = por %p3167_p0, %p3166_p11 }
  0x3e   : > { %p3164_p13 = pneg %p3163_p10 }
  0x40   : > { %p3169_p4 = pnand %p3168_p2, %p3164_p13 }
  0x42   : > { %3172 = shalt.err (!%p3169_p4)
}
  0x43   : > { %2841 = dma.hbm_to_vmem [thread:$0]  (!%p3445_p7), %s347_s1, 256, %s349_s14, %s336_s2  }
  0x44   : > { %357 = sbr.rel (%p3363_p3) target bundleno = 783 (0x30f), region = 56  ;;  %s3462_s15 = sand.u32 (!%p3363_p3), 1, %s3262_s10  }
  0x45   : > { %s2543_s27 = sshll.u32 (!%p3363_p3), %s3462_s15, 4  ;;  %s360_s13 = scalar_lea.sflag (!%p3363_p3), [#allocation4], %s3462_s15 }
  0x46   : > { %s3466_s20 = scalar_lea.vmem (!%p3363_p3), [#allocation3], %s2543_s27 }
  0x49   : > { %3233 = dma.done.wait (%p3424_p12), %s360_s13, 256  }
  0x4a   : > { %3235 = vsyncadd (%p3424_p12), %s360_s13, 4294967040 }
  0x4b   : > { %3237 = dma.done.wait (%p50_p1), [#allocation6], 16  }
  0x4c   : > { %3239 = vsyncadd (%p50_p1), [#allocation6], 4294967280 }
  0x4d   : > { %3241 = dma.done.wait (%p50_p1), [#allocation9], 80  }
  0x4e   : > { %3243 = vsyncadd (%p50_p1), [#allocation9], 4294967216 }
  0x4f   : > { %3245 = dma.done.wait (%p50_p1), [#allocation12], 144  }
  0x50   : > { %3247 = vsyncadd (%p50_p1), [#allocation12], 4294967152 }
  0x51   : > { %3249 = dma.done.wait (%p50_p1), [#allocation15], 32  }
  0x52   : > { %3251 = vsyncadd (%p50_p1), [#allocation15], 4294967264 }
  0x53   : > { %399 = sfence }
  0x54   : > { %s432_s2 = sld [smem:[#allocation7]]  ;;  %v3490_v0 = vld [vmem:[%s3466_s20] sm:$0xff]  ;;  %v3493_v1 = vld [vmem:[%s3466_s20 + $0x8] sm:$0xff] }
  0x55   : > { %s436_s3 = sld [smem:[#allocation8]] }
  0x56   : > { %s2554_s4 = sld [smem:[#allocation7 + $0x1]] }
  0x57   : > { %s2555_s17 = sld [smem:[#allocation8 + $0x1]] }
  0x58   : > { %s2560_s24 = sld [smem:[#allocation7 + $0x2]] }
  0x59   : > { %s2561_s14 = sld [smem:[#allocation8 + $0x2]] }
  0x5a   : > { %v433_v2 = vstv %s432_s2  ;;  %s3513_s28 = sld [smem:[#allocation10]] }
  0x5b   : > { %v434_v3 = vmul.f32 %v433_v2, %v3490_v0  ;;  %v435_v4 = vmul.f32 %v433_v2, %v3493_v1  ;;  %v437_v5 = vstv %s436_s3  ;;  %s3516_s23 = sld [smem:[#allocation10 + $0x80]] }
  0x5c   : > { %v475_v10 = vstv %s2554_s4  ;;  %s2566_s25 = sld [smem:[#allocation7 + $0x3]] }
  0x5d   : > { %v3497_v6 = vadd.f32 %v437_v5, %v434_v3  ;;  %v3499_v7 = vadd.f32 %v437_v5, %v435_v4  ;;  %v476_v13 = vmul.f32 %v475_v10, %v3490_v0  ;;  %v477_v14 = vmul.f32 %v475_v10, %v3493_v1  ;;  %s3524_s26 = sld [smem:[#allocation8 + $0x3]] }
  0x5e   : > { %v479_v15 = vstv %s2555_s17  ;;  %v525_v23 = vstv %s2560_s24  ;;  %s3527_s19 = sld [smem:[#allocation10 + $0x100]] }
  0x5f   : > { %v440_v8 = vmul.f32 %v3497_v6, %v3497_v6  ;;  %v441_v9 = vmul.f32 %v3499_v7, %v3499_v7  ;;  %v3509_v17 = vadd.f32 %v479_v15, %v476_v13  ;;  %v3511_v18 = vadd.f32 %v479_v15, %v477_v14  ;;  %s3531_s27 = sld [smem:[#allocation10 + $0x180]] }
  0x60   : > { %v526_v27 = vmul.f32 %v525_v23, %v3490_v0  ;;  %v527_v28 = vmul.f32 %v525_v23, %v3493_v1  ;;  %v529_v29 = vstv %s2561_s14  ;;  %s3539_s13 = sld [smem:[#allocation10 + $0x1]]  ;;  %v459_v10 = vstv %s3513_s28 }
  0x61   : > { %v442_v11 = vmul.f32 %v440_v8, %v3497_v6  ;;  %v443_v12 = vmul.f32 %v441_v9, %v3499_v7  ;;  %v482_v21 = vmul.f32 %v3509_v17, %v3509_v17  ;;  %v483_v22 = vmul.f32 %v3511_v18, %v3511_v18  ;;  %s3541_s2 = sld [smem:[#allocation10 + $0x81]] }
  0x62   : > { %v3533_v33 = vadd.f32 %v529_v29, %v526_v27  ;;  %v3535_v34 = vadd.f32 %v529_v29, %v527_v28  ;;  %v575_v40 = vstv %s2566_s25  ;;  %s3549_s3 = sld [smem:[#allocation7 + $0x4]] }
  0x63   : > { %v444_v16 = vmul.f32 0.044715, %v442_v11  ;;  %v445_v19 = vmul.f32 0.044715, %v443_v12  ;;  %v484_v24 = vmul.f32 %v482_v21, %v3509_v17  ;;  %v485_v25 = vmul.f32 %v483_v22, %v3511_v18  ;;  %s3551_s4 = sld [smem:[#allocation10 + $0x101]] }
  0x64   : > { %v532_v38 = vmul.f32 %v3533_v33, %v3533_v33  ;;  %v533_v39 = vmul.f32 %v3535_v34, %v3535_v34  ;;  %v576_v42 = vmul.f32 %v575_v40, %v3490_v0  ;;  %v577_v43 = vmul.f32 %v575_v40, %v3493_v1  ;;  %s3556_s17 = sld [smem:[#allocation10 + $0x181]] }
  0x65   : > { %v446_v20 = vadd.f32 %v444_v16, %v3497_v6  ;;  %v447_v26 = vadd.f32 %v445_v19, %v3499_v7  ;;  %v486_v31 = vmul.f32 0.044715, %v484_v24  ;;  %v487_v32 = vmul.f32 0.044715, %v485_v25  ;;  %s3562_s24 = sld [smem:[#allocation10 + $0x2]] }
  0x66   : > { %v534_v45 = vmul.f32 %v532_v38, %v3533_v33  ;;  %v535_v46 = vmul.f32 %v533_v39, %v3535_v34  ;;  %v579_v47 = vstv %s3524_s26  ;;  %s3568_s14 = sld [smem:[#allocation8 + $0x4]]  ;;  %v463_v11 = vstv %s3516_s23 }
  0x67   : > { %v448_v30 = vmul.f32 0.7978846, %v446_v20  ;;  %v488_v35 = vadd.f32 %v486_v31, %v3509_v17  ;;  %v489_v36 = vadd.f32 %v487_v32, %v3511_v18  ;;  %v449_v37 = vmul.f32 0.7978846, %v447_v26  ;;  %s3570_s25 = sld [smem:[#allocation10 + $0x82]] }
  0x68   : > { %v3558_v48 = vadd.f32 %v579_v47, %v576_v42  ;;  %v3560_v49 = vadd.f32 %v579_v47, %v577_v43  ;;  %v536_v50 = vmul.f32 0.044715, %v534_v45  ;;  %v537_v51 = vmul.f32 0.044715, %v535_v46  ;;  %s3573_s26 = sld [smem:[#allocation10 + $0x102]] }
  0x69   : > { %2904 = vtanh.f32 %v448_v30  ;;  %v490_v41 = vmul.f32 0.7978846, %v488_v35  ;;  %v491_v44 = vmul.f32 0.7978846, %v489_v36  ;;  %s3578_s1 = sld [smem:[#allocation10 + $0x182]]  ;;  %v625_v60 = vstv %s3549_s3 }
  0x6a   : > { %2906 = vtanh.f32 %v449_v37  ;;  %v582_v52 = vmul.f32 %v3558_v48, %v3558_v48  ;;  %v583_v53 = vmul.f32 %v3560_v49, %v3560_v49  ;;  %v538_v55 = vadd.f32 %v536_v50, %v3533_v33  ;;  %s3580_s0 = sld [smem:[#allocation10 + $0x3]] }
  0x6b   : > { %2908 = vtanh.f32 %v490_v41  ;;  %v539_v58 = vadd.f32 %v537_v51, %v3535_v34  ;;  %s3583_s5 = sld [smem:[#allocation7 + $0x5]]  ;;  %v626_v9 = vmul.f32 %v625_v60, %v3490_v0  ;;  %v627_v12 = vmul.f32 %v625_v60, %v3493_v1 }
  0x6c   : > { %2910 = vtanh.f32 %v491_v44  ;;  %v584_v56 = vmul.f32 %v582_v52, %v3558_v48  ;;  %v585_v57 = vmul.f32 %v583_v53, %v3560_v49  ;;  %v540_v2 = vmul.f32 0.7978846, %v538_v55  ;;  %s3585_s6 = sld [smem:[#allocation10 + $0x83]] }
  0x6d   : > { %v541_v5 = vmul.f32 0.7978846, %v539_v58  ;;  %s3588_s18 = sld [smem:[#allocation10 + $0x103]]  ;;  %v629_v13 = vstv %s3568_s14  ;;  %v467_v16 = vstv %s3527_s19  ;;  %v471_v23 = vstv %s3531_s27 }
  0x6e   : > { %v586_v59 = vmul.f32 0.044715, %v584_v56  ;;  %v587_v3 = vmul.f32 0.044715, %v585_v57  ;;  %s3593_s3 = sld [smem:[#allocation10 + $0x183]]  ;;  %2912 = vtanh.f32 %v540_v2  ;;  %v501_v24 = vstv %s3539_s13 }
  0x6f   : > { %v2905_v54 = vpop.eup %2904  ;;  %s3598_s11 = sld [smem:[#allocation8 + $0x5]]  ;;  %2914 = vtanh.f32 %v541_v5  ;;  %v3603_v25 = vadd.f32 %v629_v13, %v626_v9  ;;  %v505_v26 = vstv %s3541_s2  ;;  %v509_v27 = vstv %s3551_s4 }
  0x70   : > { %v2907_v61 = vpop.eup %2906  ;;  %v452_v62 = vadd.f32 1.0, %v2905_v54  ;;  %v588_v8 = vadd.f32 %v586_v59, %v3558_v48  ;;  %v589_v21 = vadd.f32 %v587_v3, %v3560_v49  ;;  %v513_v28 = vstv %s3556_s17  ;;  %s3618_s28 = sld [smem:[#allocation10 + $0x4]] }
  0x71   : > { %v2909_v63 = vpop.eup %2908  ;;  %v453_v14 = vadd.f32 1.0, %v2907_v61  ;;  %v3608_v29 = vadd.f32 %v629_v13, %v627_v12  ;;  %v551_v32 = vstv %s3562_s24  ;;  %v675_v35 = vstv %s3583_s5  ;;  %s3633_s5 = sld [smem:[#allocation10 + $0x84]] }
  0x72   : > { %v2911_v4 = vpop.eup %2910  ;;  %v454_v15 = vmul.f32 0.5, %v452_v62  ;;  %v494_v19 = vadd.f32 1.0, %v2909_v63  ;;  %v590_v22 = vmul.f32 0.7978846, %v588_v8  ;;  %v591_v38 = vmul.f32 0.7978846, %v589_v21 }
  0x73   : > { %v495_v20 = vadd.f32 1.0, %v2911_v4  ;;  %v455_v30 = vmul.f32 0.5, %v453_v14  ;;  %v555_v39 = vstv %s3570_s25  ;;  %v559_v40 = vstv %s3573_s26  ;;  %s3640_s23 = sld [smem:[#allocation10 + $0x184]] }
  0x74   : > { %v456_v31 = vmul.f32 %v454_v15, %v3497_v6  ;;  %v496_v36 = vmul.f32 0.5, %v494_v19  ;;  %2916 = vtanh.f32 %v590_v22  ;;  %v563_v41 = vstv %s3578_s1  ;;  %v2913_v43 = vpop.eup %2912  ;;  %s3649_s19 = sld [smem:[#allocation7 + $0x6]] }
  0x75   : > { %v497_v37 = vmul.f32 0.5, %v495_v20  ;;  %v632_v42 = vmul.f32 %v3603_v25, %v3603_v25  ;;  %v601_v44 = vstv %s3580_s0  ;;  %v605_v6 = vstv %s3585_s6  ;;  %v2915_v47 = vpop.eup %2914  ;;  %s3653_s27 = sld [smem:[#allocation8 + $0x6]] }
  0x76   : > { %v633_v45 = vmul.f32 %v3608_v29, %v3608_v29  ;;  %v676_v46 = vmul.f32 %v675_v35, %v3490_v0  ;;  %v457_v50 = vmul.f32 %v455_v30, %v3499_v7  ;;  %v609_v51 = vstv %s3588_s18  ;;  %s3662_s13 = sld [smem:[#allocation7 + $0x7]] }
  0x77   : > { %v613_v52 = vstv %s3593_s3  ;;  %v679_v53 = vstv %s3598_s11  ;;  %v460_v54 = vmul.f32 %v459_v10, %v456_v31  ;;  %v498_v55 = vmul.f32 %v496_v36, %v3509_v17  ;;  %s3638_s11 = sld [smem:[#allocation10 + $0x104]] }
  0x78   : > { %v499_v56 = vmul.f32 %v497_v37, %v3511_v18  ;;  %2918 = vtanh.f32 %v591_v38  ;;  %v464_v57 = vmul.f32 %v463_v11, %v456_v31  ;;  %v468_v58 = vmul.f32 %v467_v16, %v456_v31  ;;  %s3667_s2 = sld [smem:[#allocation8 + $0x7]] }
  0x79   : > { %v544_v59 = vadd.f32 1.0, %v2913_v43  ;;  %v634_v60 = vmul.f32 %v632_v42, %v3603_v25  ;;  %v545_v62 = vadd.f32 1.0, %v2915_v47  ;;  %v635_v63 = vmul.f32 %v633_v45, %v3608_v29  ;;  %s3692_s4 = sld [smem:[#allocation10 + $0x5]] }
  0x7a   : > { %v2917_v61 = vpop.eup %2916  ;;  %v677_v7 = vmul.f32 %v675_v35, %v3493_v1  ;;  %v3636_v2 = vadd.f32 %v679_v53, %v676_v46  ;;  %v461_v17 = vmul.f32 %v459_v10, %v457_v50  ;;  %v465_v3 = vmul.f32 %v463_v11, %v457_v50  ;;  %s3695_s17 = sld [smem:[#allocation10 + $0x85]] }
  0x7b   : > { %v469_v18 = vmul.f32 %v467_v16, %v457_v50  ;;  %v472_v4 = vmul.f32 %v471_v23, %v456_v31  ;;  %v473_v5 = vmul.f32 %v471_v23, %v457_v50  ;;  %v502_v8 = vmul.f32 %v501_v24, %v498_v55  ;;  %s3702_s1 = sld [smem:[#allocation10 + $0x105]] }
  0x7c   : > { %v503_v9 = vmul.f32 %v501_v24, %v499_v56  ;;  %v506_v12 = vmul.f32 %v505_v26, %v498_v55  ;;  %v546_v13 = vmul.f32 0.5, %v544_v59  ;;  %v594_v14 = vadd.f32 1.0, %v2917_v61  ;;  %s3708_s24 = sld [smem:[#allocation10 + $0x185]] }
  0x7d   : > { %v636_v15 = vmul.f32 0.044715, %v634_v60  ;;  %v651_v19 = vstv %s3618_s28  ;;  %v547_v21 = vmul.f32 0.5, %v545_v62  ;;  %v637_v10 = vmul.f32 0.044715, %v635_v63  ;;  %s3714_s14 = sld [smem:[#allocation7 + $0x8]] }
  0x7e   : > { %v2919_v20 = vpop.eup %2918  ;;  %v3643_v11 = vadd.f32 %v679_v53, %v677_v7  ;;  %v682_v16 = vmul.f32 %v3636_v2, %v3636_v2  ;;  %v507_v22 = vmul.f32 %v505_v26, %v499_v56  ;;  %v510_v23 = vmul.f32 %v509_v27, %v498_v55  ;;  %s3717_s25 = sld [smem:[#allocation10 + $0x6]] }
  0x7f   : > { %v511_v30 = vmul.f32 %v509_v27, %v499_v56  ;;  %v514_v24 = vmul.f32 %v513_v28, %v498_v55  ;;  %v515_v31 = vmul.f32 %v513_v28, %v499_v56  ;;  %v516_v35 = vadd.f32 %v502_v8, %v460_v54  ;;  %s3726_s26 = sld [smem:[#allocation10 + $0x86]] }
  0x80   : > { %v517_v36 = vadd.f32 %v503_v9, %v461_v17  ;;  %v518_v37 = vadd.f32 %v506_v12, %v464_v57  ;;  %v548_v38 = vmul.f32 %v546_v13, %v3533_v33  ;;  %v595_v42 = vadd.f32 1.0, %v2919_v20  ;;  %s3746_s0 = sld [smem:[#allocation10 + $0x186]] }
  0x81   : > { %v596_v26 = vmul.f32 0.5, %v594_v14  ;;  %v638_v27 = vadd.f32 %v636_v15, %v3603_v25  ;;  %v549_v43 = vmul.f32 %v547_v21, %v3535_v34  ;;  %v639_v45 = vadd.f32 %v637_v10, %v3608_v29  ;;  %s3756_s6 = sld [smem:[#allocation10 + $0x7]] }
  0x82   : > { %v683_v28 = vmul.f32 %v3643_v11, %v3643_v11  ;;  %v684_v46 = vmul.f32 %v682_v16, %v3636_v2  ;;  %v519_v47 = vadd.f32 %v507_v22, %v465_v3  ;;  %v520_v50 = vadd.f32 %v510_v23, %v468_v58  ;;  %s3764_s18 = sld [smem:[#allocation10 + $0x87]] }
  0x83   : > { %v521_v53 = vadd.f32 %v511_v30, %v469_v18  ;;  %v522_v33 = vadd.f32 %v514_v24, %v472_v4  ;;  %v523_v54 = vadd.f32 %v515_v31, %v473_v5  ;;  %v655_v34 = vstv %s3633_s5  ;;  %s3774_s3 = sld [smem:[#allocation10 + $0x107]] }
  0x84   : > { %v659_v55 = vstv %s3638_s11  ;;  %v663_v56 = vstv %s3640_s23  ;;  %v552_v57 = vmul.f32 %v551_v32, %v548_v38  ;;  %v597_v58 = vmul.f32 0.5, %v595_v42  ;;  %s3829_s28 = sld [smem:[#allocation10 + $0x8]] }
  0x85   : > { %v598_v59 = vmul.f32 %v596_v26, %v3558_v48  ;;  %v640_v60 = vmul.f32 0.7978846, %v638_v27  ;;  %v553_v61 = vmul.f32 %v551_v32, %v549_v43  ;;  %v641_v62 = vmul.f32 0.7978846, %v639_v45  ;;  %s3835_s5 = sld [smem:[#allocation7 + $0xa]] }
  0x86   : > { %v685_v63 = vmul.f32 %v683_v28, %v3643_v11  ;;  %v686_v7 = vmul.f32 0.044715, %v684_v46  ;;  %v556_v17 = vmul.f32 %v555_v39, %v548_v38  ;;  %v557_v3 = vmul.f32 %v555_v39, %v549_v43  ;;  %s3851_s11 = sld [smem:[#allocation8 + $0xa]] }
  0x87   : > { %v560_v18 = vmul.f32 %v559_v40, %v548_v38  ;;  %v561_v4 = vmul.f32 %v559_v40, %v549_v43  ;;  %v564_v5 = vmul.f32 %v563_v41, %v548_v38  ;;  %v725_v48 = vstv %s3649_s19  ;;  %s3738_s19 = sld [smem:[#allocation10 + $0x106]] }
  0x88   : > { %v687_v8 = vmul.f32 0.044715, %v685_v63  ;;  %v729_v9 = vstv %s3653_s27  ;;  %v565_v32 = vmul.f32 %v563_v41, %v549_v43  ;;  %2920 = vtanh.f32 %v640_v60  ;;  %s3744_s27 = sld [smem:[#allocation8 + $0x8]] }
  0x89   : > { %v726_v12 = vmul.f32 %v725_v48, %v3490_v0  ;;  %v727_v13 = vmul.f32 %v725_v48, %v3493_v1  ;;  %v566_v14 = vadd.f32 %v552_v57, %v516_v35  ;;  %v567_v39 = vadd.f32 %v553_v61, %v517_v36  ;;  %s3854_s23 = sld [smem:[#allocation10 + $0x88]] }
  0x8a   : > { %2922 = vtanh.f32 %v641_v62  ;;  %v688_v15 = vadd.f32 %v686_v7, %v3636_v2  ;;  %v689_v40 = vadd.f32 %v687_v8, %v3643_v11  ;;  %v775_v21 = vstv %s3662_s13  ;;  %s3790_s13 = sld [smem:[#allocation7 + $0x9]] }
  0x8b   : > { %v3697_v20 = vadd.f32 %v729_v9, %v726_v12  ;;  %v3699_v41 = vadd.f32 %v729_v9, %v727_v13  ;;  %v568_v10 = vadd.f32 %v556_v17, %v518_v37  ;;  %v776_v16 = vmul.f32 %v775_v21, %v3490_v0  ;;  %s4155_s10 = sld [smem:[#allocation10 + $0x8e]] }
  0x8c   : > { %v777_v22 = vmul.f32 %v775_v21, %v3493_v1  ;;  %v779_v23 = vstv %s3667_s2  ;;  %v569_v30 = vadd.f32 %v557_v3, %v519_v47  ;;  %v599_v24 = vmul.f32 %v597_v58, %v3560_v49  ;;  %s3804_s2 = sld [smem:[#allocation8 + $0x9]] }
  0x8d   : > { %v732_v31 = vmul.f32 %v3697_v20, %v3697_v20  ;;  %v733_v35 = vmul.f32 %v3699_v41, %v3699_v41  ;;  %v570_v36 = vadd.f32 %v560_v18, %v520_v50  ;;  %v571_v37 = vadd.f32 %v561_v4, %v521_v53 }
  0x8e   : > { %v572_v38 = vadd.f32 %v564_v5, %v522_v33  ;;  %v690_v42 = vmul.f32 0.7978846, %v688_v15  ;;  %v2921_v49 = vpop.eup %2920  ;;  %v573_v26 = vadd.f32 %v565_v32, %v523_v54  ;;  %v691_v27 = vmul.f32 0.7978846, %v689_v40 }
  0x8f   : > { %v734_v43 = vmul.f32 %v732_v31, %v3697_v20  ;;  %v3719_v45 = vadd.f32 %v779_v23, %v776_v16  ;;  %v602_v46 = vmul.f32 %v601_v44, %v598_v59  ;;  %v606_v47 = vmul.f32 %v605_v6, %v598_v59 }
  0x90   : > { %v2923_v28 = vpop.eup %2922  ;;  %v735_v50 = vmul.f32 %v733_v35, %v3699_v41  ;;  %v3728_v53 = vadd.f32 %v779_v23, %v777_v22  ;;  %v603_v33 = vmul.f32 %v601_v44, %v599_v24  ;;  %v607_v54 = vmul.f32 %v605_v6, %v599_v24 }
  0x91   : > { %v610_v57 = vmul.f32 %v609_v51, %v598_v59  ;;  %v614_v58 = vmul.f32 %v613_v52, %v598_v59  ;;  %v611_v60 = vmul.f32 %v609_v51, %v599_v24  ;;  %v615_v61 = vmul.f32 %v613_v52, %v599_v24 }
  0x92   : > { %v644_v62 = vadd.f32 1.0, %v2921_v49  ;;  %2924 = vtanh.f32 %v690_v42  ;;  %v645_v63 = vadd.f32 1.0, %v2923_v28  ;;  %v736_v7 = vmul.f32 0.044715, %v734_v43 }
  0x93   : > { %2926 = vtanh.f32 %v691_v27  ;;  %v782_v44 = vmul.f32 %v3719_v45, %v3719_v45  ;;  %v3750_v6 = vadd.f32 %v602_v46, %v566_v14  ;;  %v3752_v59 = vadd.f32 %v606_v47, %v568_v10 }
  0x94   : > { %v737_v51 = vmul.f32 0.044715, %v735_v50  ;;  %v783_v52 = vmul.f32 %v3728_v53, %v3728_v53  ;;  %v3758_v17 = vadd.f32 %v603_v33, %v567_v39  ;;  %v3760_v3 = vadd.f32 %v607_v54, %v569_v30 }
  0x95   : > { %v620_v18 = vadd.f32 %v610_v57, %v570_v36  ;;  %v3762_v4 = vadd.f32 %v614_v58, %v572_v38  ;;  %v3766_v5 = vadd.f32 %v611_v60, %v571_v37  ;;  %v3768_v8 = vadd.f32 %v615_v61, %v573_v26 }
  0x96   : > { %v646_v48 = vmul.f32 0.5, %v644_v62  ;;  %v825_v9 = vstv %s3714_s14  ;;  %v647_v32 = vmul.f32 0.5, %v645_v63  ;;  %v701_v12 = vstv %s3692_s4  ;;  %s3812_s14 = sld [smem:[#allocation10 + $0x187]] }
  0x97   : > { %v738_v13 = vadd.f32 %v736_v7, %v3697_v20  ;;  %v784_v14 = vmul.f32 %v782_v44, %v3719_v45  ;;  %v705_v15 = vstv %s3695_s17  ;;  %v709_v40 = vstv %s3702_s1  ;;  %s3867_s4 = sld [smem:[#allocation10 + $0x108]] }
  0x98   : > { %v2925_v39 = vpop.eup %2924  ;;  %v739_v21 = vadd.f32 %v737_v51, %v3699_v41  ;;  %v785_v10 = vmul.f32 %v783_v52, %v3728_v53  ;;  %v713_v22 = vstv %s3708_s24  ;;  %v751_v23 = vstv %s3717_s25  ;;  %s3876_s17 = sld [smem:[#allocation10 + $0x9]] }
  0x99   : > { %v2927_v16 = vpop.eup %2926  ;;  %v826_v30 = vmul.f32 %v825_v9, %v3490_v0  ;;  %v827_v24 = vmul.f32 %v825_v9, %v3493_v1  ;;  %v648_v31 = vmul.f32 %v646_v48, %v3603_v25  ;;  %v740_v35 = vmul.f32 0.7978846, %v738_v13  ;;  %s3883_s1 = sld [smem:[#allocation10 + $0x89]] }
  0x9a   : > { %v755_v36 = vstv %s3726_s26  ;;  %v829_v37 = vstv %s3744_s27  ;;  %v649_v38 = vmul.f32 %v647_v32, %v3608_v29  ;;  %v759_v42 = vstv %s3738_s19  ;;  %s3874_s27 = sld [smem:[#allocation10 + $0x188]] }
  0x9b   : > { %v763_v49 = vstv %s3746_s0  ;;  %v786_v26 = vmul.f32 0.044715, %v784_v14  ;;  %v694_v27 = vadd.f32 1.0, %v2925_v39  ;;  %v695_v43 = vadd.f32 1.0, %v2927_v16  ;;  %s3893_s24 = sld [smem:[#allocation7 + $0xb]] }
  0x9c   : > { %v741_v28 = vmul.f32 0.7978846, %v739_v21  ;;  %v787_v25 = vmul.f32 0.044715, %v785_v10  ;;  %v801_v46 = vstv %s3756_s6  ;;  %v805_v47 = vstv %s3764_s18  ;;  %s3927_s25 = sld [smem:[#allocation10 + $0xa]] }
  0x9d   : > { %v3794_v50 = vadd.f32 %v829_v37, %v826_v30  ;;  %v3796_v33 = vadd.f32 %v829_v37, %v827_v24  ;;  %v652_v29 = vmul.f32 %v651_v19, %v648_v31  ;;  %v656_v54 = vmul.f32 %v655_v34, %v648_v31  ;;  %s3931_s26 = sld [smem:[#allocation8 + $0xb]] }
  0x9e   : > { %v660_v57 = vmul.f32 %v659_v55, %v648_v31  ;;  %2928 = vtanh.f32 %v740_v35  ;;  %v653_v58 = vmul.f32 %v651_v19, %v649_v38  ;;  %v664_v60 = vmul.f32 %v663_v56, %v648_v31  ;;  %s3937_s19 = sld [smem:[#allocation10 + $0x8a]] }
  0x9f   : > { %v788_v61 = vadd.f32 %v786_v26, %v3719_v45  ;;  %v809_v62 = vstv %s3774_s3  ;;  %v696_v63 = vmul.f32 0.5, %v694_v27  ;;  %v697_v7 = vmul.f32 0.5, %v695_v43  ;;  %s3942_s0 = sld [smem:[#allocation7 + $0xc]] }
  0xa0   : > { %2930 = vtanh.f32 %v741_v28  ;;  %v789_v44 = vadd.f32 %v787_v25, %v3728_v53  ;;  %v657_v51 = vmul.f32 %v655_v34, %v649_v38  ;;  %v661_v52 = vmul.f32 %v659_v55, %v649_v38  ;;  %s3966_s6 = sld [smem:[#allocation8 + $0xc]] }
  0xa1   : > { %v832_v19 = vmul.f32 %v3794_v50, %v3794_v50  ;;  %v833_v48 = vmul.f32 %v3796_v33, %v3796_v33  ;;  %v665_v9 = vmul.f32 %v663_v56, %v649_v38  ;;  %v666_v32 = vadd.f32 %v652_v29, %v3750_v6  ;;  %s3983_s18 = sld [smem:[#allocation10 + $0xb]] }
  0xa2   : > { %v668_v13 = vadd.f32 %v656_v54, %v3752_v59  ;;  %v670_v14 = vadd.f32 %v660_v57, %v620_v18  ;;  %v790_v39 = vmul.f32 0.7978846, %v788_v61  ;;  %v875_v55 = vstv %s3790_s13  ;;  %s3899_s13 = sld [smem:[#allocation10 + $0x109]] }
  0xa3   : > { %v834_v21 = vmul.f32 %v832_v19, %v3794_v50  ;;  %v835_v34 = vmul.f32 %v833_v48, %v3796_v33  ;;  %v672_v16 = vadd.f32 %v664_v60, %v3762_v4  ;;  %v698_v30 = vmul.f32 %v696_v63, %v3636_v2  ;;  %s3990_s3 = sld [smem:[#allocation10 + $0x8b]] }
  0xa4   : > { %v2929_v10 = vpop.eup %2928  ;;  %v699_v56 = vmul.f32 %v697_v7, %v3643_v11  ;;  %v791_v6 = vmul.f32 0.7978846, %v789_v44  ;;  %v667_v59 = vadd.f32 %v653_v58, %v3758_v17  ;;  %v876_v24 = vmul.f32 %v875_v55, %v3490_v0 }
  0xa5   : > { %v836_v18 = vmul.f32 0.044715, %v834_v21  ;;  %v877_v31 = vmul.f32 %v875_v55, %v3493_v1  ;;  %v669_v4 = vadd.f32 %v657_v51, %v3760_v3  ;;  %v671_v2 = vadd.f32 %v661_v52, %v3766_v5 }
  0xa6   : > { %v2931_v35 = vpop.eup %2930  ;;  %v837_v37 = vmul.f32 0.044715, %v835_v34  ;;  %v879_v11 = vstv %s3804_s2  ;;  %v673_v38 = vadd.f32 %v665_v9, %v3768_v8  ;;  %v744_v26 = vadd.f32 1.0, %v2929_v10  ;;  %s3908_s2 = sld [smem:[#allocation10 + $0x189]] }
  0xa7   : > { %2932 = vtanh.f32 %v790_v39  ;;  %v813_v17 = vstv %s3812_s14  ;;  %v702_v27 = vmul.f32 %v701_v12, %v698_v30  ;;  %v703_v43 = vmul.f32 %v701_v12, %v699_v56  ;;  %s3999_s14 = sld [smem:[#allocation7 + $0xd]] }
  0xa8   : > { %v706_v3 = vmul.f32 %v705_v15, %v698_v30  ;;  %2934 = vtanh.f32 %v791_v6  ;;  %v745_v5 = vadd.f32 1.0, %v2931_v35  ;;  %v838_v28 = vadd.f32 %v836_v18, %v3794_v50 }
  0xa9   : > { %v3856_v8 = vadd.f32 %v879_v11, %v876_v24  ;;  %v3858_v25 = vadd.f32 %v879_v11, %v877_v31  ;;  %v707_v29 = vmul.f32 %v705_v15, %v699_v56  ;;  %v710_v12 = vmul.f32 %v709_v40, %v698_v30 }
  0xaa   : > { %v711_v54 = vmul.f32 %v709_v40, %v699_v56  ;;  %v839_v57 = vadd.f32 %v837_v37, %v3796_v33  ;;  %v714_v58 = vmul.f32 %v713_v22, %v698_v30  ;;  %v715_v60 = vmul.f32 %v713_v22, %v699_v56 }
  0xab   : > { %v746_v61 = vmul.f32 0.5, %v744_v26  ;;  %v851_v63 = vstv %s3829_s28  ;;  %v716_v7 = vadd.f32 %v702_v27, %v666_v32  ;;  %v717_v44 = vadd.f32 %v703_v43, %v667_v59  ;;  %s4016_s28 = sld [smem:[#allocation10 + $0x18b]] }
  0xac   : > { %v718_v51 = vadd.f32 %v706_v3, %v668_v13  ;;  %v925_v15 = vstv %s3835_s5  ;;  %v747_v40 = vmul.f32 0.5, %v745_v5  ;;  %v840_v19 = vmul.f32 0.7978846, %v838_v28  ;;  %s3950_s5 = sld [smem:[#allocation10 + $0x10a]] }
  0xad   : > { %v2933_v52 = vpop.eup %2932  ;;  %v882_v48 = vmul.f32 %v3856_v8, %v3856_v8  ;;  %v883_v22 = vmul.f32 %v3858_v25, %v3858_v25  ;;  %v719_v39 = vadd.f32 %v707_v29, %v669_v4  ;;  %v720_v21 = vadd.f32 %v710_v12, %v670_v14 }
  0xae   : > { %v2935_v9 = vpop.eup %2934  ;;  %v721_v34 = vadd.f32 %v711_v54, %v671_v2  ;;  %v841_v32 = vmul.f32 0.7978846, %v839_v57  ;;  %v748_v13 = vmul.f32 %v746_v61, %v3697_v20  ;;  %v926_v30 = vmul.f32 %v925_v15, %v3490_v0 }
  0xaf   : > { %v884_v55 = vmul.f32 %v882_v48, %v3856_v8  ;;  %v885_v10 = vmul.f32 %v883_v22, %v3858_v25  ;;  %v722_v56 = vadd.f32 %v714_v58, %v672_v16  ;;  %v723_v6 = vadd.f32 %v715_v60, %v673_v38 }
  0xb0   : > { %v927_v14 = vmul.f32 %v925_v15, %v3493_v1  ;;  %v929_v59 = vstv %s3851_s11  ;;  %v749_v18 = vmul.f32 %v747_v40, %v3699_v41  ;;  %v794_v20 = vadd.f32 1.0, %v2933_v52  ;;  %s3953_s11 = sld [smem:[#allocation10 + $0x18a]] }
  0xb1   : > { %v795_v24 = vadd.f32 1.0, %v2935_v9  ;;  %2936 = vtanh.f32 %v840_v19  ;;  %v855_v31 = vstv %s3854_s23  ;;  %v886_v35 = vmul.f32 0.044715, %v884_v55  ;;  %s4034_s23 = sld [smem:[#allocation8 + $0xd]] }
  0xb2   : > { %2938 = vtanh.f32 %v841_v32  ;;  %v887_v4 = vmul.f32 0.044715, %v885_v10  ;;  %v752_v16 = vmul.f32 %v751_v23, %v748_v13  ;;  %v859_v2 = vstv %s3867_s4  ;;  %s4050_s4 = sld [smem:[#allocation7 + $0xe]] }
  0xb3   : > { %v863_v37 = vstv %s3874_s27  ;;  %v3901_v41 = vadd.f32 %v929_v59, %v926_v30  ;;  %v756_v11 = vmul.f32 %v755_v36, %v748_v13  ;;  %v760_v38 = vmul.f32 %v759_v42, %v748_v13  ;;  %s4062_s27 = sld [smem:[#allocation8 + $0xe]] }
  0xb4   : > { %v901_v26 = vstv %s3876_s17  ;;  %v3910_v27 = vadd.f32 %v929_v59, %v927_v14  ;;  %v753_v43 = vmul.f32 %v751_v23, %v749_v18  ;;  %v764_v3 = vmul.f32 %v763_v49, %v748_v13  ;;  %s4081_s17 = sld [smem:[#allocation10 + $0x8c]] }
  0xb5   : > { %v796_v5 = vmul.f32 0.5, %v794_v20  ;;  %v797_v28 = vmul.f32 0.5, %v795_v24  ;;  %v757_v29 = vmul.f32 %v755_v36, %v749_v18  ;;  %v888_v12 = vadd.f32 %v886_v35, %v3856_v8 }
  0xb6   : > { %v889_v54 = vadd.f32 %v887_v4, %v3858_v25  ;;  %v905_v57 = vstv %s3883_s1  ;;  %v761_v60 = vmul.f32 %v759_v42, %v749_v18  ;;  %v765_v61 = vmul.f32 %v763_v49, %v749_v18  ;;  %s4090_s1 = sld [smem:[#allocation10 + $0x10c]] }
  0xb7   : > { %v2937_v58 = vpop.eup %2936  ;;  %v766_v15 = vadd.f32 %v752_v16, %v716_v7  ;;  %v932_v23 = vmul.f32 %v3901_v41, %v3901_v41  ;;  %v768_v40 = vadd.f32 %v756_v11, %v718_v51  ;;  %v770_v36 = vadd.f32 %v760_v38, %v720_v21 }
  0xb8   : > { %v2939_v52 = vpop.eup %2938  ;;  %v890_v19 = vmul.f32 0.7978846, %v888_v12  ;;  %v933_v48 = vmul.f32 %v3910_v27, %v3910_v27  ;;  %v767_v42 = vadd.f32 %v753_v43, %v717_v44  ;;  %v772_v49 = vadd.f32 %v764_v3, %v722_v56 }
  0xb9   : > { %v798_v7 = vmul.f32 %v796_v5, %v3719_v45  ;;  %v799_v22 = vmul.f32 %v797_v28, %v3728_v53  ;;  %v844_v9 = vadd.f32 1.0, %v2937_v58  ;;  %v891_v51 = vmul.f32 0.7978846, %v889_v54 }
  0xba   : > { %v934_v21 = vmul.f32 %v932_v23, %v3901_v41  ;;  %v975_v32 = vstv %s3893_s24  ;;  %v769_v13 = vadd.f32 %v757_v29, %v719_v39  ;;  %v771_v55 = vadd.f32 %v761_v60, %v721_v34  ;;  %s4001_s24 = sld [smem:[#allocation10 + $0x10b]] }
  0xbb   : > { %v845_v10 = vadd.f32 1.0, %v2939_v52  ;;  %2940 = vtanh.f32 %v890_v19  ;;  %v773_v44 = vadd.f32 %v765_v61, %v723_v6  ;;  %v909_v45 = vstv %s3899_s13  ;;  %s4102_s13 = sld [smem:[#allocation10 + $0x18c]] }
  0xbc   : > { %v913_v30 = vstv %s3908_s2  ;;  %v935_v53 = vmul.f32 %v933_v48, %v3910_v27  ;;  %v802_v56 = vmul.f32 %v801_v46, %v798_v7  ;;  %v803_v39 = vmul.f32 %v801_v46, %v799_v22  ;;  %s4112_s2 = sld [smem:[#allocation7 + $0xf]] }
  0xbd   : > { %v806_v34 = vmul.f32 %v805_v47, %v798_v7  ;;  %v976_v6 = vmul.f32 %v975_v32, %v3490_v0  ;;  %v846_v14 = vmul.f32 0.5, %v844_v9  ;;  %2942 = vtanh.f32 %v891_v51  ;;  %v3996_v51 = vld [vmem:[%s3466_s20] sm:$0xff] }
  0xbe   : > { %v936_v59 = vmul.f32 0.044715, %v934_v21  ;;  %v977_v18 = vmul.f32 %v975_v32, %v3493_v1  ;;  %v807_v20 = vmul.f32 %v805_v47, %v799_v22  ;;  %v810_v24 = vmul.f32 %v809_v62, %v798_v7 }
  0xbf   : > { %v847_v46 = vmul.f32 0.5, %v845_v10  ;;  %v951_v35 = vstv %s3927_s25  ;;  %v811_v4 = vmul.f32 %v809_v62, %v799_v22  ;;  %v814_v16 = vmul.f32 %v813_v17, %v798_v7  ;;  %s4161_s25 = sld [smem:[#allocation10 + $0x10e]] }
  0xc0   : > { %v937_v11 = vmul.f32 0.044715, %v935_v53  ;;  %v979_v0 = vstv %s3931_s26  ;;  %v815_v43 = vmul.f32 %v813_v17, %v799_v22  ;;  %v816_v3 = vadd.f32 %v802_v56, %v766_v15  ;;  %s4076_s26 = sld [smem:[#allocation10 + $0xc]] }
  0xc1   : > { %v2941_v38 = vpop.eup %2940  ;;  %v817_v1 = vadd.f32 %v803_v39, %v767_v42  ;;  %v3970_v5 = vadd.f32 %v979_v0, %v976_v6  ;;  %v818_v47 = vadd.f32 %v806_v34, %v768_v40  ;;  %v848_v28 = vmul.f32 %v846_v14, %v3794_v50 }
  0xc2   : > { %v938_v62 = vadd.f32 %v936_v59, %v3901_v41  ;;  %v3974_v29 = vadd.f32 %v979_v0, %v977_v18  ;;  %v819_v12 = vadd.f32 %v807_v20, %v769_v13  ;;  %v820_v54 = vadd.f32 %v810_v24, %v770_v36 }
  0xc3   : > { %v849_v17 = vmul.f32 %v847_v46, %v3796_v33  ;;  %v982_v58 = vmul.f32 %v3970_v5, %v3970_v5  ;;  %v2943_v60 = vpop.eup %2942  ;;  %v821_v61 = vadd.f32 %v811_v4, %v771_v55  ;;  %v894_v15 = vadd.f32 1.0, %v2941_v38  ;;  %v4004_v55 = vld [vmem:[%s3466_s20 + $0x8] sm:$0xff] }
  0xc4   : > { %v939_v50 = vadd.f32 %v937_v11, %v3910_v27  ;;  %v1025_v23 = vstv %s3942_s0  ;;  %v822_v52 = vadd.f32 %v814_v16, %v772_v49  ;;  %v823_v40 = vadd.f32 %v815_v43, %v773_v44  ;;  %s4117_s0 = sld [smem:[#allocation10 + $0xd]] }
  0xc5   : > { %v955_v19 = vstv %s3937_s19  ;;  %v959_v48 = vstv %s3950_s5  ;;  %v852_v33 = vmul.f32 %v851_v63, %v848_v28  ;;  %v940_v36 = vmul.f32 0.7978846, %v938_v62  ;;  %s4171_s19 = sld [smem:[#allocation7 + $0x10]] }
  0xc6   : > { %v963_v42 = vstv %s3953_s11  ;;  %v983_v7 = vmul.f32 %v3974_v29, %v3974_v29  ;;  %v853_v49 = vmul.f32 %v851_v63, %v849_v17  ;;  %v895_v22 = vadd.f32 1.0, %v2943_v60  ;;  %s4181_s5 = sld [smem:[#allocation10 + $0x18e]] }
  0xc7   : > { %v984_v9 = vmul.f32 %v982_v58, %v3970_v5  ;;  %v1026_v21 = vmul.f32 %v3996_v51, %v1025_v23  ;;  %v896_v32 = vmul.f32 0.5, %v894_v15  ;;  %v941_v13 = vmul.f32 0.7978846, %v939_v50  ;;  %s4188_s11 = sld [smem:[#allocation8 + $0x10]] }
  0xc8   : > { %v1027_v10 = vmul.f32 %v4004_v55, %v1025_v23  ;;  %v1029_v63 = vstv %s3966_s6  ;;  %v856_v44 = vmul.f32 %v855_v31, %v848_v28  ;;  %v857_v53 = vmul.f32 %v855_v31, %v849_v17  ;;  %s4120_s6 = sld [smem:[#allocation10 + $0x8d]] }
  0xc9   : > { %v860_v56 = vmul.f32 %v859_v2, %v848_v28  ;;  %v861_v39 = vmul.f32 %v859_v2, %v849_v17  ;;  %v864_v34 = vmul.f32 %v863_v37, %v848_v28  ;;  %v865_v6 = vmul.f32 %v863_v37, %v849_v17 }
  0xca   : > { %2944 = vtanh.f32 %v940_v36  ;;  %v985_v14 = vmul.f32 %v983_v7, %v3974_v29  ;;  %v866_v59 = vadd.f32 %v852_v33, %v816_v3  ;;  %v897_v18 = vmul.f32 0.5, %v895_v22 }
  0xcb   : > { %v986_v20 = vmul.f32 0.044715, %v984_v9  ;;  %v4023_v24 = vadd.f32 %v1029_v63, %v1026_v21  ;;  %v4025_v46 = vadd.f32 %v853_v49, %v817_v1  ;;  %v898_v31 = vmul.f32 %v896_v32, %v3856_v8 }
  0xcc   : > { %2946 = vtanh.f32 %v941_v13  ;;  %v4028_v2 = vadd.f32 %v1029_v63, %v1027_v10  ;;  %v868_v4 = vadd.f32 %v856_v44, %v818_v47  ;;  %v4030_v37 = vadd.f32 %v857_v53, %v819_v12 }
  0xcd   : > { %v870_v16 = vadd.f32 %v860_v56, %v820_v54  ;;  %v1032_v11 = vmul.f32 %v4023_v24, %v4023_v24  ;;  %v4036_v0 = vadd.f32 %v861_v39, %v821_v61  ;;  %v872_v8 = vadd.f32 %v864_v34, %v822_v52 }
  0xce   : > { %v987_v38 = vmul.f32 0.044715, %v985_v14  ;;  %v1033_v43 = vmul.f32 %v4028_v2, %v4028_v2  ;;  %v4040_v3 = vadd.f32 %v865_v6, %v823_v40  ;;  %v899_v1 = vmul.f32 %v897_v18, %v3858_v25 }
  0xcf   : > { %v988_v47 = vadd.f32 %v986_v20, %v3970_v5  ;;  %v1075_v28 = vstv %s3999_s14  ;;  %v902_v12 = vmul.f32 %v901_v26, %v898_v31  ;;  %v1001_v54 = vstv %s3983_s18  ;;  %s4129_s14 = sld [smem:[#allocation10 + $0x10d]] }
  0xd0   : > { %v2945_v62 = vpop.eup %2944  ;;  %v1005_v17 = vstv %s3990_s3  ;;  %v1009_v58 = vstv %s4001_s24  ;;  %v906_v60 = vmul.f32 %v905_v57, %v898_v31  ;;  %v1013_v61 = vstv %s4016_s28  ;;  %s4234_s18 = sld [smem:[#allocation10 + $0x8f]] }
  0xd1   : > { %v1034_v25 = vmul.f32 %v1032_v11, %v4023_v24  ;;  %v1035_v15 = vmul.f32 %v1033_v43, %v4028_v2  ;;  %v910_v23 = vmul.f32 %v909_v45, %v898_v31  ;;  %v989_v52 = vadd.f32 %v987_v38, %v3974_v29  ;;  %s4242_s3 = sld [smem:[#allocation10 + $0x10f]] }
  0xd2   : > { %v2947_v50 = vpop.eup %2946  ;;  %v1076_v40 = vmul.f32 %v3996_v51, %v1075_v28  ;;  %v1077_v33 = vmul.f32 %v4004_v55, %v1075_v28  ;;  %v903_v36 = vmul.f32 %v901_v26, %v899_v1  ;;  %v914_v7 = vmul.f32 %v913_v30, %v898_v31  ;;  %s4250_s24 = sld [smem:[#allocation10 + $0x18f]] }
  0xd3   : > { %v944_v49 = vadd.f32 1.0, %v2945_v62  ;;  %v990_v22 = vmul.f32 0.7978846, %v988_v47  ;;  %v907_v9 = vmul.f32 %v905_v57, %v899_v1  ;;  %v911_v21 = vmul.f32 %v909_v45, %v899_v1  ;;  %s4265_s28 = sld [smem:[#allocation7 + $0x11]] }
  0xd4   : > { %v915_v32 = vmul.f32 %v913_v30, %v899_v1  ;;  %v4074_v13 = vadd.f32 %v902_v12, %v866_v59  ;;  %v945_v10 = vadd.f32 1.0, %v2947_v50  ;;  %v1036_v63 = vmul.f32 0.044715, %v1034_v25 }
  0xd5   : > { %v1037_v44 = vmul.f32 0.044715, %v1035_v15  ;;  %v1079_v53 = vstv %s4034_s23  ;;  %v4079_v26 = vadd.f32 %v906_v60, %v868_v4  ;;  %v991_v56 = vmul.f32 0.7978846, %v989_v52  ;;  %s4135_s23 = sld [smem:[#allocation8 + $0xf]] }
  0xd6   : > { %v4083_v39 = vadd.f32 %v1079_v53, %v1076_v40  ;;  %v4085_v57 = vadd.f32 %v1079_v53, %v1077_v33  ;;  %v4087_v45 = vadd.f32 %v910_v23, %v870_v16  ;;  %v946_v30 = vmul.f32 0.5, %v944_v49 }
  0xd7   : > { %2948 = vtanh.f32 %v990_v22  ;;  %v1038_v34 = vadd.f32 %v1036_v63, %v4023_v24  ;;  %v1039_v6 = vadd.f32 %v1037_v44, %v4028_v2  ;;  %v1125_v18 = vstv %s4050_s4  ;;  %s4141_s4 = sld [smem:[#allocation10 + $0x18d]] }
  0xd8   : > { %v1082_v14 = vmul.f32 %v4083_v39, %v4083_v39  ;;  %v1083_v59 = vmul.f32 %v4085_v57, %v4085_v57  ;;  %v4098_v20 = vadd.f32 %v914_v7, %v872_v8  ;;  %v947_v31 = vmul.f32 0.5, %v945_v10 }
  0xd9   : > { %v1126_v4 = vmul.f32 %v3996_v51, %v1125_v18  ;;  %v1127_v16 = vmul.f32 %v4004_v55, %v1125_v18  ;;  %2950 = vtanh.f32 %v991_v56  ;;  %v1129_v43 = vstv %s4062_s27  ;;  %s4149_s27 = sld [smem:[#allocation10 + $0xe]] }
  0xda   : > { %v1084_v11 = vmul.f32 %v1082_v14, %v4083_v39  ;;  %v1085_v38 = vmul.f32 %v1083_v59, %v4085_v57  ;;  %v948_v1 = vmul.f32 %v946_v30, %v3901_v41  ;;  %v1040_v47 = vmul.f32 0.7978846, %v1038_v34 }
  0xdb   : > { %v4108_v28 = vadd.f32 %v1129_v43, %v1126_v4  ;;  %v4110_v8 = vadd.f32 %v1129_v43, %v1127_v16  ;;  %v917_v62 = vadd.f32 %v903_v36, %v4025_v46  ;;  %v919_v12 = vadd.f32 %v907_v9, %v4030_v37 }
  0xdc   : > { %v921_v60 = vadd.f32 %v911_v21, %v4036_v0  ;;  %v1041_v25 = vmul.f32 0.7978846, %v1039_v6  ;;  %v949_v15 = vmul.f32 %v947_v31, %v3910_v27  ;;  %v1086_v50 = vmul.f32 0.044715, %v1084_v11 }
  0xdd   : > { %v2949_v41 = vpop.eup %2948  ;;  %v1132_v46 = vmul.f32 %v4108_v28, %v4108_v28  ;;  %v1133_v37 = vmul.f32 %v4110_v8, %v4110_v8  ;;  %v923_v0 = vadd.f32 %v915_v32, %v4040_v3  ;;  %v1051_v23 = vstv %s4076_s26  ;;  %s4269_s26 = sld [smem:[#allocation8 + $0x11]] }
  0xde   : > { %v1055_v52 = vstv %s4081_s17  ;;  %v1087_v40 = vmul.f32 0.044715, %v1085_v38  ;;  %v952_v27 = vmul.f32 %v951_v35, %v948_v1  ;;  %2952 = vtanh.f32 %v1040_v47  ;;  %s4278_s17 = sld [smem:[#allocation7 + $0x12]] }
  0xdf   : > { %v1059_v33 = vstv %s4090_s1  ;;  %v1134_v36 = vmul.f32 %v1132_v46, %v4108_v28  ;;  %v2951_v7 = vpop.eup %2950  ;;  %v956_v3 = vmul.f32 %v955_v19, %v948_v1  ;;  %v960_v49 = vmul.f32 %v959_v48, %v948_v1  ;;  %s4283_s1 = sld [smem:[#allocation8 + $0x12]] }
  0xe0   : > { %v994_v22 = vadd.f32 1.0, %v2949_v41  ;;  %2954 = vtanh.f32 %v1041_v25  ;;  %v953_v9 = vmul.f32 %v951_v35, %v949_v15  ;;  %v964_v21 = vmul.f32 %v963_v42, %v948_v1 }
  0xe1   : > { %v1088_v32 = vadd.f32 %v1086_v50, %v4083_v39  ;;  %v1135_v10 = vmul.f32 %v1133_v37, %v4110_v8  ;;  %v957_v63 = vmul.f32 %v955_v19, %v949_v15  ;;  %v1063_v44 = vstv %s4102_s13  ;;  %s4308_s13 = sld [smem:[#allocation10 + $0x10]] }
  0xe2   : > { %v1089_v53 = vadd.f32 %v1087_v40, %v4085_v57  ;;  %v1136_v56 = vmul.f32 0.044715, %v1134_v36  ;;  %v961_v30 = vmul.f32 %v959_v48, %v949_v15  ;;  %v965_v35 = vmul.f32 %v963_v42, %v949_v15 }
  0xe3   : > { %v995_v34 = vadd.f32 1.0, %v2951_v7  ;;  %v1175_v6 = vstv %s4112_s2  ;;  %v966_v14 = vadd.f32 %v952_v27, %v4074_v13  ;;  %v4166_v59 = vadd.f32 %v956_v3, %v4079_v26  ;;  %s4212_s2 = sld [smem:[#allocation10 + $0xf]] }
  0xe4   : > { %v4169_v19 = vadd.f32 %v960_v49, %v4087_v45  ;;  %v996_v18 = vmul.f32 0.5, %v994_v22  ;;  %v2953_v31 = vpop.eup %2952  ;;  %v4173_v48 = vadd.f32 %v953_v9, %v917_v62  ;;  %v4176_v42 = vadd.f32 %v964_v21, %v4098_v20 }
  0xe5   : > { %v1090_v4 = vmul.f32 0.7978846, %v1088_v32  ;;  %v1137_v16 = vmul.f32 0.044715, %v1135_v10  ;;  %v4178_v11 = vadd.f32 %v957_v63, %v919_v12  ;;  %v1091_v26 = vmul.f32 0.7978846, %v1089_v53 }
  0xe6   : > { %v2955_v13 = vpop.eup %2954  ;;  %v1138_v45 = vadd.f32 %v1136_v56, %v4108_v28  ;;  %v1176_v38 = vmul.f32 %v3996_v51, %v1175_v6  ;;  %v971_v43 = vadd.f32 %v961_v30, %v921_v60  ;;  %v997_v1 = vmul.f32 0.5, %v995_v34 }
  0xe7   : > { %v1177_v20 = vmul.f32 %v4004_v55, %v1175_v6  ;;  %v1179_v47 = vstv %s4135_s23  ;;  %v973_v62 = vadd.f32 %v965_v35, %v923_v0  ;;  %v998_v12 = vmul.f32 %v996_v18, %v3970_v5  ;;  %s4330_s23 = sld [smem:[#allocation7 + $0x13]] }
  0xe8   : > { %v1044_v25 = vadd.f32 1.0, %v2953_v31  ;;  %v1101_v41 = vstv %s4117_s0  ;;  %v1045_v15 = vadd.f32 1.0, %v2955_v13  ;;  %2956 = vtanh.f32 %v1090_v4  ;;  %s4311_s0 = sld [smem:[#allocation10 + $0x90]] }
  0xe9   : > { %v1139_v60 = vadd.f32 %v1137_v16, %v4110_v8  ;;  %v1140_v50 = vmul.f32 0.7978846, %v1138_v45  ;;  %2958 = vtanh.f32 %v1091_v26  ;;  %v1105_v46 = vstv %s4120_s6  ;;  %s4318_s6 = sld [smem:[#allocation10 + $0x110]] }
  0xea   : > { %v1109_v37 = vstv %s4129_s14  ;;  %v4193_v5 = vadd.f32 %v1179_v47, %v1176_v38  ;;  %v999_v0 = vmul.f32 %v997_v1, %v3974_v29  ;;  %v1113_v40 = vstv %s4141_s4  ;;  %s4324_s14 = sld [smem:[#allocation10 + $0x190]] }
  0xeb   : > { %v1151_v27 = vstv %s4149_s27  ;;  %v4198_v36 = vadd.f32 %v1179_v47, %v1177_v20  ;;  %v1002_v7 = vmul.f32 %v1001_v54, %v998_v12  ;;  %v1155_v3 = vstv %s4155_s10  ;;  %s4333_s4 = sld [smem:[#allocation10 + $0x11]] }
  0xec   : > { %v1159_v49 = vstv %s4161_s25  ;;  %v1225_v22 = vstv %s4171_s19  ;;  %v1046_v9 = vmul.f32 0.5, %v1044_v25  ;;  %v1047_v21 = vmul.f32 0.5, %v1045_v15  ;;  %s4342_s19 = sld [smem:[#allocation10 + $0x91]] }
  0xed   : > { %v1141_v32 = vmul.f32 0.7978846, %v1139_v60  ;;  %2960 = vtanh.f32 %v1140_v50  ;;  %v1006_v29 = vmul.f32 %v1005_v17, %v998_v12  ;;  %v1010_v10 = vmul.f32 %v1009_v58, %v998_v12  ;;  %s4362_s10 = sld [smem:[#allocation10 + $0x191]] }
  0xee   : > { %v1163_v63 = vstv %s4181_s5  ;;  %v1182_v53 = vmul.f32 %v4193_v5, %v4193_v5  ;;  %v2957_v56 = vpop.eup %2956  ;;  %v1003_v30 = vmul.f32 %v1001_v54, %v999_v0  ;;  %v1014_v35 = vmul.f32 %v1013_v61, %v998_v12  ;;  %s4372_s27 = sld [smem:[#allocation10 + $0x12]] }
  0xef   : > { %v1183_v34 = vmul.f32 %v4198_v36, %v4198_v36  ;;  %v1226_v6 = vmul.f32 %v3996_v51, %v1225_v22  ;;  %v2959_v18 = vpop.eup %2958  ;;  %v1007_v31 = vmul.f32 %v1005_v17, %v999_v0  ;;  %v1011_v4 = vmul.f32 %v1009_v58, %v999_v0  ;;  %s4380_s25 = sld [smem:[#allocation10 + $0x92]] }
  0xf0   : > { %v1015_v16 = vmul.f32 %v1013_v61, %v999_v0  ;;  %v1229_v13 = vstv %s4188_s11  ;;  %v1016_v26 = vadd.f32 %v1002_v7, %v966_v14  ;;  %v1048_v45 = vmul.f32 %v1046_v9, %v4023_v24  ;;  %s4354_s11 = sld [smem:[#allocation10 + $0x111]] }
  0xf1   : > { %v1049_v54 = vmul.f32 %v1047_v21, %v4028_v2  ;;  %2962 = vtanh.f32 %v1141_v32  ;;  %v1018_v38 = vadd.f32 %v1006_v29, %v4166_v59  ;;  %v1020_v1 = vadd.f32 %v1010_v10, %v4169_v19  ;;  %s4390_s5 = sld [smem:[#allocation10 + $0x112]] }
  0xf2   : > { %v1094_v20 = vadd.f32 1.0, %v2957_v56  ;;  %v1184_v17 = vmul.f32 %v1182_v53, %v4193_v5  ;;  %v1095_v47 = vadd.f32 1.0, %v2959_v18  ;;  %v1185_v61 = vmul.f32 %v1183_v34, %v4198_v36 }
  0xf3   : > { %v2961_v58 = vpop.eup %2960  ;;  %v1227_v24 = vmul.f32 %v4004_v55, %v1225_v22  ;;  %v4237_v2 = vadd.f32 %v1229_v13, %v1226_v6  ;;  %v1017_v14 = vadd.f32 %v1003_v30, %v4173_v48  ;;  %v1019_v59 = vadd.f32 %v1007_v31, %v4178_v11 }
  0xf4   : > { %v1021_v19 = vadd.f32 %v1011_v4, %v971_v43  ;;  %v1022_v12 = vadd.f32 %v1014_v35, %v4176_v42  ;;  %v1023_v25 = vadd.f32 %v1015_v16, %v973_v62  ;;  %v1052_v15 = vmul.f32 %v1051_v23, %v1048_v45 }
  0xf5   : > { %v1053_v60 = vmul.f32 %v1051_v23, %v1049_v54  ;;  %v1056_v50 = vmul.f32 %v1055_v52, %v1048_v45  ;;  %v1096_v48 = vmul.f32 0.5, %v1094_v20  ;;  %v1144_v11 = vadd.f32 1.0, %v2961_v58 }
  0xf6   : > { %v1186_v43 = vmul.f32 0.044715, %v1184_v17  ;;  %v1201_v42 = vstv %s4212_s2  ;;  %v1097_v7 = vmul.f32 0.5, %v1095_v47  ;;  %v1187_v22 = vmul.f32 0.044715, %v1185_v61  ;;  %s4445_s2 = sld [smem:[#allocation10 + $0x13]] }
  0xf7   : > { %v2963_v0 = vpop.eup %2962  ;;  %v4253_v9 = vadd.f32 %v1229_v13, %v1227_v24  ;;  %v1232_v62 = vmul.f32 %v4237_v2, %v4237_v2  ;;  %v1057_v21 = vmul.f32 %v1055_v52, %v1049_v54  ;;  %v1060_v23 = vmul.f32 %v1059_v33, %v1048_v45 }
  0xf8   : > { %v1061_v32 = vmul.f32 %v1059_v33, %v1049_v54  ;;  %v1064_v29 = vmul.f32 %v1063_v44, %v1048_v45  ;;  %v1065_v10 = vmul.f32 %v1063_v44, %v1049_v54  ;;  %v1066_v53 = vadd.f32 %v1052_v15, %v1016_v26 }
  0xf9   : > { %v1067_v56 = vadd.f32 %v1053_v60, %v1017_v14  ;;  %v1068_v30 = vadd.f32 %v1056_v50, %v1018_v38  ;;  %v1098_v35 = vmul.f32 %v1096_v48, %v4083_v39  ;;  %v1145_v52 = vadd.f32 1.0, %v2963_v0 }
  0xfa   : > { %v1146_v34 = vmul.f32 0.5, %v1144_v11  ;;  %v1188_v33 = vadd.f32 %v1186_v43, %v4193_v5  ;;  %v1099_v6 = vmul.f32 %v1097_v7, %v4085_v57  ;;  %v1189_v18 = vadd.f32 %v1187_v22, %v4198_v36 }
  0xfb   : > { %v1233_v44 = vmul.f32 %v4253_v9, %v4253_v9  ;;  %v1234_v31 = vmul.f32 %v1232_v62, %v4237_v2  ;;  %v1069_v4 = vadd.f32 %v1057_v21, %v1019_v59  ;;  %v1070_v16 = vadd.f32 %v1060_v23, %v1020_v1 }
  0xfc   : > { %v1071_v13 = vadd.f32 %v1061_v32, %v1021_v19  ;;  %v1072_v39 = vadd.f32 %v1064_v29, %v1022_v12  ;;  %v1073_v26 = vadd.f32 %v1065_v10, %v1023_v25  ;;  %v1205_v57 = vstv %s4234_s18  ;;  %s4451_s18 = sld [smem:[#allocation7 + $0x15]] }
  0xfd   : > { %v1209_v45 = vstv %s4242_s3  ;;  %v1213_v54 = vstv %s4250_s24  ;;  %v1102_v38 = vmul.f32 %v1101_v41, %v1098_v35  ;;  %v1147_v1 = vmul.f32 0.5, %v1145_v52  ;;  %s4467_s3 = sld [smem:[#allocation8 + $0x15]] }
  0xfe   : > { %v1148_v20 = vmul.f32 %v1146_v34, %v4108_v28  ;;  %v1190_v17 = vmul.f32 0.7978846, %v1188_v33  ;;  %v1103_v58 = vmul.f32 %v1101_v41, %v1099_v6  ;;  %v1191_v47 = vmul.f32 0.7978846, %v1189_v18  ;;  %s4470_s24 = sld [smem:[#allocation10 + $0x93]] }
  0xff   : > { %v1235_v61 = vmul.f32 %v1233_v44, %v4253_v9  ;;  %v1236_v24 = vmul.f32 0.044715, %v1234_v31  ;;  %v1106_v14 = vmul.f32 %v1105_v46, %v1098_v35  ;;  %v1107_v59 = vmul.f32 %v1105_v46, %v1099_v6 }
 0x100   : > { %v1110_v19 = vmul.f32 %v1109_v37, %v1098_v35  ;;  %v1111_v12 = vmul.f32 %v1109_v37, %v1099_v6  ;;  %v1114_v25 = vmul.f32 %v1113_v40, %v1098_v35  ;;  %v1275_v28 = vstv %s4265_s28  ;;  %s4360_s28 = sld [smem:[#allocation8 + $0x13]] }
 0x101   : > { %v1237_v15 = vmul.f32 0.044715, %v1235_v61  ;;  %v1279_v60 = vstv %s4269_s26  ;;  %v1115_v41 = vmul.f32 %v1113_v40, %v1099_v6  ;;  %2964 = vtanh.f32 %v1190_v17  ;;  %s4406_s26 = sld [smem:[#allocation7 + $0x14]] }
 0x102   : > { %v1276_v50 = vmul.f32 %v3996_v51, %v1275_v28  ;;  %v1277_v48 = vmul.f32 %v4004_v55, %v1275_v28  ;;  %v1116_v11 = vadd.f32 %v1102_v38, %v1066_v53  ;;  %v1117_v46 = vadd.f32 %v1103_v58, %v1067_v56 }
 0x103   : > { %2966 = vtanh.f32 %v1191_v47  ;;  %v1238_v43 = vadd.f32 %v1236_v24, %v4237_v2  ;;  %v1239_v37 = vadd.f32 %v1237_v15, %v4253_v9  ;;  %v1325_v7 = vstv %s4278_s17  ;;  %s4420_s17 = sld [smem:[#allocation8 + $0x14]] }
 0x104   : > { %v4313_v0 = vadd.f32 %v1279_v60, %v1276_v50  ;;  %v4315_v40 = vadd.f32 %v1279_v60, %v1277_v48  ;;  %v1118_v22 = vadd.f32 %v1106_v14, %v1068_v30  ;;  %v1326_v62 = vmul.f32 %v3996_v51, %v1325_v7 }
 0x105   : > { %v1327_v21 = vmul.f32 %v4004_v55, %v1325_v7  ;;  %v1329_v23 = vstv %s4283_s1  ;;  %v1119_v32 = vadd.f32 %v1107_v59, %v1069_v4  ;;  %v1149_v29 = vmul.f32 %v1147_v1, %v4110_v8  ;;  %s4428_s1 = sld [smem:[#allocation10 + $0x192]] }
 0x106   : > { %v1282_v10 = vmul.f32 %v4313_v0, %v4313_v0  ;;  %v1283_v53 = vmul.f32 %v4315_v40, %v4315_v40  ;;  %v1120_v56 = vadd.f32 %v1110_v19, %v1070_v16  ;;  %v1121_v30 = vadd.f32 %v1111_v12, %v1071_v13 }
 0x107   : > { %v1122_v35 = vadd.f32 %v1114_v25, %v1072_v39  ;;  %v1240_v52 = vmul.f32 0.7978846, %v1238_v43  ;;  %v2965_v8 = vpop.eup %2964  ;;  %v1123_v34 = vadd.f32 %v1115_v41, %v1073_v26  ;;  %v1241_v33 = vmul.f32 0.7978846, %v1239_v37 }
 0x108   : > { %v1284_v6 = vmul.f32 %v1282_v10, %v4313_v0  ;;  %v4335_v18 = vadd.f32 %v1329_v23, %v1326_v62  ;;  %v1152_v31 = vmul.f32 %v1151_v27, %v1148_v20  ;;  %v1156_v4 = vmul.f32 %v1155_v3, %v1148_v20 }
 0x109   : > { %v2967_v44 = vpop.eup %2966  ;;  %v1285_v16 = vmul.f32 %v1283_v53, %v4315_v40  ;;  %v4344_v13 = vadd.f32 %v1329_v23, %v1327_v21  ;;  %v1153_v39 = vmul.f32 %v1151_v27, %v1149_v29  ;;  %v1157_v26 = vmul.f32 %v1155_v3, %v1149_v29 }
 0x10a   : > { %v1160_v38 = vmul.f32 %v1159_v49, %v1148_v20  ;;  %v1164_v1 = vmul.f32 %v1163_v63, %v1148_v20  ;;  %v1161_v17 = vmul.f32 %v1159_v49, %v1149_v29  ;;  %v1165_v58 = vmul.f32 %v1163_v63, %v1149_v29 }
 0x10b   : > { %v1194_v47 = vadd.f32 1.0, %v2965_v8  ;;  %2968 = vtanh.f32 %v1240_v52  ;;  %v1195_v61 = vadd.f32 1.0, %v2967_v44  ;;  %v1286_v24 = vmul.f32 0.044715, %v1284_v6 }
 0x10c   : > { %2970 = vtanh.f32 %v1241_v33  ;;  %v1332_v27 = vmul.f32 %v4335_v18, %v4335_v18  ;;  %v4366_v3 = vadd.f32 %v1152_v31, %v1116_v11  ;;  %v4368_v20 = vadd.f32 %v1156_v4, %v1118_v22 }
 0x10d   : > { %v1287_v49 = vmul.f32 0.044715, %v1285_v16  ;;  %v1333_v63 = vmul.f32 %v4344_v13, %v4344_v13  ;;  %v4374_v14 = vadd.f32 %v1153_v39, %v1117_v46  ;;  %v4376_v59 = vadd.f32 %v1157_v26, %v1119_v32 }
 0x10e   : > { %v1170_v19 = vadd.f32 %v1160_v38, %v1120_v56  ;;  %v4378_v12 = vadd.f32 %v1164_v1, %v1122_v35  ;;  %v4382_v25 = vadd.f32 %v1161_v17, %v1121_v30  ;;  %v4384_v15 = vadd.f32 %v1165_v58, %v1123_v34 }
 0x10f   : > { %v1196_v28 = vmul.f32 0.5, %v1194_v47  ;;  %v1375_v60 = vstv %s4330_s23  ;;  %v1197_v41 = vmul.f32 0.5, %v1195_v61  ;;  %v1251_v50 = vstv %s4308_s13  ;;  %s4483_s13 = sld [smem:[#allocation10 + $0x113]] }
 0x110   : > { %v1288_v48 = vadd.f32 %v1286_v24, %v4313_v0  ;;  %v1334_v11 = vmul.f32 %v1332_v27, %v4335_v18  ;;  %v1255_v43 = vstv %s4311_s0  ;;  %v1259_v37 = vstv %s4318_s6  ;;  %s4490_s23 = sld [smem:[#allocation10 + $0x193]] }
 0x111   : > { %v2969_v46 = vpop.eup %2968  ;;  %v1289_v7 = vadd.f32 %v1287_v49, %v4315_v40  ;;  %v1335_v22 = vmul.f32 %v1333_v63, %v4344_v13  ;;  %v1263_v21 = vstv %s4324_s14  ;;  %v1301_v23 = vstv %s4333_s4  ;;  %s4492_s0 = sld [smem:[#allocation10 + $0x14]] }
 0x112   : > { %v2971_v62 = vpop.eup %2970  ;;  %v1376_v32 = vmul.f32 %v3996_v51, %v1375_v60  ;;  %v1377_v29 = vmul.f32 %v4004_v55, %v1375_v60  ;;  %v1198_v10 = vmul.f32 %v1196_v28, %v4193_v5  ;;  %v1290_v53 = vmul.f32 0.7978846, %v1288_v48  ;;  %s4499_s6 = sld [smem:[#allocation10 + $0x94]] }
 0x113   : > { %v1305_v56 = vstv %s4342_s19  ;;  %v1379_v30 = vstv %s4360_s28  ;;  %v1199_v35 = vmul.f32 %v1197_v41, %v4198_v36  ;;  %v1309_v52 = vstv %s4354_s11  ;;  %s4509_s14 = sld [smem:[#allocation7 + $0x16]] }
 0x114   : > { %v1313_v8 = vstv %s4362_s10  ;;  %v1336_v34 = vmul.f32 0.044715, %v1334_v11  ;;  %v1244_v33 = vadd.f32 1.0, %v2969_v46  ;;  %v1245_v6 = vadd.f32 1.0, %v2971_v62  ;;  %s4515_s28 = sld [smem:[#allocation10 + $0x114]] }
 0x115   : > { %v1291_v44 = vmul.f32 0.7978846, %v1289_v7  ;;  %v1337_v5 = vmul.f32 0.044715, %v1335_v22  ;;  %v1351_v31 = vstv %s4372_s27  ;;  %v1355_v4 = vstv %s4380_s25  ;;  %s4543_s4 = sld [smem:[#allocation10 + $0x15]] }
 0x116   : > { %v4410_v16 = vadd.f32 %v1379_v30, %v1376_v32  ;;  %v4412_v39 = vadd.f32 %v1379_v30, %v1377_v29  ;;  %v1202_v36 = vmul.f32 %v1201_v42, %v1198_v10  ;;  %v1206_v26 = vmul.f32 %v1205_v57, %v1198_v10  ;;  %s4547_s19 = sld [smem:[#allocation8 + $0x16]] }
 0x117   : > { %v1210_v38 = vmul.f32 %v1209_v45, %v1198_v10  ;;  %2972 = vtanh.f32 %v1290_v53  ;;  %v1203_v1 = vmul.f32 %v1201_v42, %v1199_v35  ;;  %v1214_v17 = vmul.f32 %v1213_v54, %v1198_v10  ;;  %s4553_s11 = sld [smem:[#allocation10 + $0x95]] }
 0x118   : > { %v1338_v58 = vadd.f32 %v1336_v34, %v4335_v18  ;;  %v1359_v47 = vstv %s4390_s5  ;;  %v1246_v61 = vmul.f32 0.5, %v1244_v33  ;;  %v1247_v24 = vmul.f32 0.5, %v1245_v6  ;;  %s4558_s10 = sld [smem:[#allocation7 + $0x17]] }
 0x119   : > { %2974 = vtanh.f32 %v1291_v44  ;;  %v1339_v27 = vadd.f32 %v1337_v5, %v4344_v13  ;;  %v1207_v49 = vmul.f32 %v1205_v57, %v1199_v35  ;;  %v1211_v63 = vmul.f32 %v1209_v45, %v1199_v35  ;;  %s4588_s27 = sld [smem:[#allocation8 + $0x17]] }
 0x11a   : > { %v1382_v42 = vmul.f32 %v4410_v16, %v4410_v16  ;;  %v1383_v28 = vmul.f32 %v4412_v39, %v4412_v39  ;;  %v1215_v60 = vmul.f32 %v1213_v54, %v1199_v35  ;;  %v1216_v41 = vadd.f32 %v1202_v36, %v4366_v3  ;;  %s4607_s25 = sld [smem:[#allocation10 + $0x16]] }
 0x11b   : > { %v1218_v48 = vadd.f32 %v1206_v26, %v4368_v20  ;;  %v1220_v11 = vadd.f32 %v1210_v38, %v1170_v19  ;;  %v1340_v46 = vmul.f32 0.7978846, %v1338_v58  ;;  %v1425_v45 = vstv %s4406_s26  ;;  %s4524_s26 = sld [smem:[#allocation10 + $0x194]] }
 0x11c   : > { %v1384_v7 = vmul.f32 %v1382_v42, %v4410_v16  ;;  %v1385_v57 = vmul.f32 %v1383_v28, %v4412_v39  ;;  %v1222_v62 = vadd.f32 %v1214_v17, %v4378_v12  ;;  %v1248_v32 = vmul.f32 %v1246_v61, %v4237_v2  ;;  %s4614_s5 = sld [smem:[#allocation10 + $0x96]] }
 0x11d   : > { %v2973_v22 = vpop.eup %2972  ;;  %v1249_v54 = vmul.f32 %v1247_v24, %v4253_v9  ;;  %v1341_v3 = vmul.f32 0.7978846, %v1339_v27  ;;  %v1217_v20 = vadd.f32 %v1203_v1, %v4374_v14  ;;  %v1426_v29 = vmul.f32 %v3996_v51, %v1425_v45 }
 0x11e   : > { %v1386_v19 = vmul.f32 0.044715, %v1384_v7  ;;  %v1427_v10 = vmul.f32 %v4004_v55, %v1425_v45  ;;  %v1219_v12 = vadd.f32 %v1207_v49, %v4376_v59  ;;  %v1221_v2 = vadd.f32 %v1211_v63, %v4382_v25 }
 0x11f   : > { %v2975_v53 = vpop.eup %2974  ;;  %v1387_v30 = vmul.f32 0.044715, %v1385_v57  ;;  %v1429_v9 = vstv %s4420_s17  ;;  %v1223_v35 = vadd.f32 %v1215_v60, %v4384_v15  ;;  %v1294_v34 = vadd.f32 1.0, %v2973_v22  ;;  %s4566_s17 = sld [smem:[#allocation10 + $0x115]] }
 0x120   : > { %2976 = vtanh.f32 %v1340_v46  ;;  %v1363_v14 = vstv %s4428_s1  ;;  %v1252_v33 = vmul.f32 %v1251_v50, %v1248_v32  ;;  %v1253_v6 = vmul.f32 %v1251_v50, %v1249_v54  ;;  %s4620_s1 = sld [smem:[#allocation7 + $0x18]] }
 0x121   : > { %v1256_v59 = vmul.f32 %v1255_v43, %v1248_v32  ;;  %2978 = vtanh.f32 %v1341_v3  ;;  %v1295_v25 = vadd.f32 1.0, %v2975_v53  ;;  %v1388_v44 = vadd.f32 %v1386_v19, %v4410_v16 }
 0x122   : > { %v4472_v15 = vadd.f32 %v1429_v9, %v1426_v29  ;;  %v4474_v5 = vadd.f32 %v1429_v9, %v1427_v10  ;;  %v1257_v36 = vmul.f32 %v1255_v43, %v1249_v54  ;;  %v1260_v50 = vmul.f32 %v1259_v37, %v1248_v32 }
 0x123   : > { %v1261_v26 = vmul.f32 %v1259_v37, %v1249_v54  ;;  %v1389_v38 = vadd.f32 %v1387_v30, %v4412_v39  ;;  %v1264_v1 = vmul.f32 %v1263_v21, %v1248_v32  ;;  %v1265_v17 = vmul.f32 %v1263_v21, %v1249_v54 }
 0x124   : > { %v1296_v58 = vmul.f32 0.5, %v1294_v34  ;;  %v1401_v61 = vstv %s4445_s2  ;;  %v1266_v24 = vadd.f32 %v1252_v33, %v1216_v41  ;;  %v1267_v27 = vadd.f32 %v1253_v6, %v1217_v20  ;;  %s4634_s2 = sld [smem:[#allocation10 + $0x196]] }
 0x125   : > { %v1268_v49 = vadd.f32 %v1256_v59, %v1218_v48  ;;  %v1475_v43 = vstv %s4451_s18  ;;  %v1297_v37 = vmul.f32 0.5, %v1295_v25  ;;  %v1390_v42 = vmul.f32 0.7978846, %v1388_v44  ;;  %s4572_s18 = sld [smem:[#allocation10 + $0x195]] }
 0x126   : > { %v2977_v63 = vpop.eup %2976  ;;  %v1432_v28 = vmul.f32 %v4472_v15, %v4472_v15  ;;  %v1433_v21 = vmul.f32 %v4474_v5, %v4474_v5  ;;  %v1269_v46 = vadd.f32 %v1257_v36, %v1219_v12  ;;  %v1270_v7 = vadd.f32 %v1260_v50, %v1220_v11 }
 0x127   : > { %v2979_v60 = vpop.eup %2978  ;;  %v1271_v57 = vadd.f32 %v1261_v26, %v1221_v2  ;;  %v1391_v41 = vmul.f32 0.7978846, %v1389_v38  ;;  %v1298_v48 = vmul.f32 %v1296_v58, %v4313_v0  ;;  %v1476_v32 = vmul.f32 %v3996_v51, %v1475_v43 }
 0x128   : > { %v1434_v45 = vmul.f32 %v1432_v28, %v4472_v15  ;;  %v1435_v22 = vmul.f32 %v1433_v21, %v4474_v5  ;;  %v1272_v54 = vadd.f32 %v1264_v1, %v1222_v62  ;;  %v1273_v3 = vadd.f32 %v1265_v17, %v1223_v35 }
 0x129   : > { %v1477_v11 = vmul.f32 %v4004_v55, %v1475_v43  ;;  %v1479_v20 = vstv %s4467_s3  ;;  %v1299_v19 = vmul.f32 %v1297_v37, %v4315_v40  ;;  %v1344_v0 = vadd.f32 1.0, %v2977_v63  ;;  %s4622_s3 = sld [smem:[#allocation10 + $0x116]] }
 0x12a   : > { %v1345_v29 = vadd.f32 1.0, %v2979_v60  ;;  %2980 = vtanh.f32 %v1390_v42  ;;  %v1405_v10 = vstv %s4470_s24  ;;  %v1436_v53 = vmul.f32 0.044715, %v1434_v45  ;;  %s4652_s24 = sld [smem:[#allocation8 + $0x18]] }
 0x12b   : > { %2982 = vtanh.f32 %v1391_v41  ;;  %v1437_v51 = vmul.f32 0.044715, %v1435_v22  ;;  %v1302_v55 = vmul.f32 %v1301_v23, %v1298_v48  ;;  %v1409_v62 = vstv %s4483_s13  ;;  %s4668_s13 = sld [smem:[#allocation7 + $0x19]] }
 0x12c   : > { %v1413_v12 = vstv %s4490_s23  ;;  %v4517_v40 = vadd.f32 %v1479_v20, %v1476_v32  ;;  %v1306_v2 = vmul.f32 %v1305_v56, %v1298_v48  ;;  %v1310_v30 = vmul.f32 %v1309_v52, %v1298_v48  ;;  %v4569_v32 = vld [vmem:[%s3466_s20] sm:$0xff]  ;;  %s4680_s23 = sld [smem:[#allocation8 + $0x19]] }
 0x12d   : > { %v1451_v9 = vstv %s4492_s0  ;;  %v4526_v35 = vadd.f32 %v1479_v20, %v1477_v11  ;;  %v1303_v34 = vmul.f32 %v1301_v23, %v1299_v19  ;;  %v1314_v33 = vmul.f32 %v1313_v8, %v1298_v48  ;;  %v4575_v20 = vld [vmem:[%s3466_s20 + $0x8] sm:$0xff]  ;;  %s4601_s20 = sld [smem:[#allocation14]] }
 0x12e   : > { %v1346_v6 = vmul.f32 0.5, %v1344_v0  ;;  %v1347_v59 = vmul.f32 0.5, %v1345_v29  ;;  %v1307_v25 = vmul.f32 %v1305_v56, %v1299_v19  ;;  %v1438_v44 = vadd.f32 %v1436_v53, %v4472_v15  ;;  %s4699_s0 = sld [smem:[#allocation10 + $0x97]] }
 0x12f   : > { %v1439_v36 = vadd.f32 %v1437_v51, %v4474_v5  ;;  %v1455_v50 = vstv %s4499_s6  ;;  %v1311_v38 = vmul.f32 %v1309_v52, %v1299_v19  ;;  %v1315_v1 = vmul.f32 %v1313_v8, %v1299_v19  ;;  %s4708_s6 = sld [smem:[#allocation10 + $0x117]] }
 0x130   : > { %v2981_v26 = vpop.eup %2980  ;;  %v1316_v17 = vadd.f32 %v1302_v55, %v1266_v24  ;;  %v1482_v23 = vmul.f32 %v4517_v40, %v4517_v40  ;;  %v1318_v43 = vadd.f32 %v1306_v2, %v1268_v49  ;;  %v1320_v56 = vadd.f32 %v1310_v30, %v1270_v7 }
 0x131   : > { %v2983_v58 = vpop.eup %2982  ;;  %v1440_v63 = vmul.f32 0.7978846, %v1438_v44  ;;  %v1483_v37 = vmul.f32 %v4526_v35, %v4526_v35  ;;  %v1317_v52 = vadd.f32 %v1303_v34, %v1267_v27  ;;  %v1322_v8 = vadd.f32 %v1314_v33, %v1272_v54 }
 0x132   : > { %v1348_v24 = vmul.f32 %v1346_v6, %v4335_v18  ;;  %v1349_v42 = vmul.f32 %v1347_v59, %v4344_v13  ;;  %v1394_v28 = vadd.f32 1.0, %v2981_v26  ;;  %v1441_v49 = vmul.f32 0.7978846, %v1439_v36 }
 0x133   : > { %v1484_v21 = vmul.f32 %v1482_v23, %v4517_v40  ;;  %v1525_v60 = vstv %s4509_s14  ;;  %v1319_v7 = vadd.f32 %v1307_v25, %v1269_v46  ;;  %v1321_v41 = vadd.f32 %v1311_v38, %v1271_v57  ;;  %s4694_s14 = sld [smem:[#allocation10 + $0x17]]  ;;  %p2741_p1 = scmp.eq.s32.totalorder %s4601_s20, 4294967295 }
 0x134   : > { %v1395_v48 = vadd.f32 1.0, %v2983_v58  ;;  %2984 = vtanh.f32 %v1440_v63  ;;  %v1323_v27 = vadd.f32 %v1315_v1, %v1273_v3  ;;  %v1459_v18 = vstv %s4515_s28  ;;  %s4720_s28 = sld [smem:[#allocation10 + $0x197]] }
 0x135   : > { %v1463_v45 = vstv %s4524_s26  ;;  %v1485_v13 = vmul.f32 %v1483_v37, %v4526_v35  ;;  %v1352_v22 = vmul.f32 %v1351_v31, %v1348_v24  ;;  %v1353_v46 = vmul.f32 %v1351_v31, %v1349_v42  ;;  %s4730_s26 = sld [smem:[#allocation7 + $0x1a]] }
 0x136   : > { %v1356_v57 = vmul.f32 %v1355_v4, %v1348_v24  ;;  %v1526_v54 = vmul.f32 %v4569_v32, %v1525_v60  ;;  %v1396_v3 = vmul.f32 0.5, %v1394_v28  ;;  %2986 = vtanh.f32 %v1441_v49 }
 0x137   : > { %v1486_v11 = vmul.f32 0.044715, %v1484_v21  ;;  %v1527_v31 = vmul.f32 %v4575_v20, %v1525_v60  ;;  %v1357_v19 = vmul.f32 %v1355_v4, %v1349_v42  ;;  %v1360_v0 = vmul.f32 %v1359_v47, %v1348_v24 }
 0x138   : > { %v1397_v29 = vmul.f32 0.5, %v1395_v48  ;;  %v1501_v53 = vstv %s4543_s4  ;;  %v1361_v51 = vmul.f32 %v1359_v47, %v1349_v42  ;;  %v1364_v55 = vmul.f32 %v1363_v14, %v1348_v24  ;;  %s4779_s4 = sld [smem:[#allocation10 + $0x99]] }
 0x139   : > { %v1487_v2 = vmul.f32 0.044715, %v1485_v13  ;;  %v1529_v30 = vstv %s4547_s19  ;;  %v1365_v33 = vmul.f32 %v1363_v14, %v1349_v42  ;;  %v1366_v6 = vadd.f32 %v1352_v22, %v1316_v17  ;;  %s4735_s19 = sld [smem:[#allocation8 + $0x1a]] }
 0x13a   : > { %v2985_v34 = vpop.eup %2984  ;;  %v1367_v59 = vadd.f32 %v1353_v46, %v1317_v52  ;;  %v4592_v25 = vadd.f32 %v1529_v30, %v1526_v54  ;;  %v1368_v4 = vadd.f32 %v1356_v57, %v1318_v43  ;;  %v1398_v44 = vmul.f32 %v1396_v3, %v4410_v16 }
 0x13b   : > { %v1488_v47 = vadd.f32 %v1486_v11, %v4517_v40  ;;  %v4596_v36 = vadd.f32 %v1529_v30, %v1527_v31  ;;  %v1369_v26 = vadd.f32 %v1357_v19, %v1319_v7  ;;  %v1370_v38 = vadd.f32 %v1360_v0, %v1320_v56 }
 0x13c   : > { %v1399_v14 = vmul.f32 %v1397_v29, %v4412_v39  ;;  %v1532_v1 = vmul.f32 %v4592_v25, %v4592_v25  ;;  %v2987_v17 = vpop.eup %2986  ;;  %v1371_v23 = vadd.f32 %v1361_v51, %v1321_v41  ;;  %v1444_v16 = vadd.f32 1.0, %v2985_v34 }
 0x13d   : > { %v1489_v58 = vadd.f32 %v1487_v2, %v4526_v35  ;;  %v1575_v43 = vstv %s4558_s10  ;;  %v1372_v63 = vadd.f32 %v1364_v55, %v1322_v8  ;;  %v1373_v37 = vadd.f32 %v1365_v33, %v1323_v27  ;;  %s4738_s10 = sld [smem:[#allocation10 + $0x18]] }
 0x13e   : > { %v1505_v52 = vstv %s4553_s11  ;;  %v1509_v24 = vstv %s4566_s17  ;;  %v1402_v39 = vmul.f32 %v1401_v61, %v1398_v44  ;;  %v1490_v56 = vmul.f32 0.7978846, %v1488_v47  ;;  %s4789_s11 = sld [smem:[#allocation10 + $0x119]] }
 0x13f   : > { %v1513_v42 = vstv %s4572_s18  ;;  %v1533_v28 = vmul.f32 %v4596_v36, %v4596_v36  ;;  %v1403_v8 = vmul.f32 %v1401_v61, %v1399_v14  ;;  %v1445_v49 = vadd.f32 1.0, %v2987_v17  ;;  %s4797_s17 = sld [smem:[#allocation10 + $0x199]] }
 0x140   : > { %v1534_v21 = vmul.f32 %v1532_v1, %v4592_v25  ;;  %v1576_v60 = vmul.f32 %v4569_v32, %v1575_v43  ;;  %v1446_v7 = vmul.f32 0.5, %v1444_v16  ;;  %v1491_v41 = vmul.f32 0.7978846, %v1489_v58  ;;  %s4804_s18 = sld [smem:[#allocation8 + $0x1b]] }
 0x141   : > { %v1577_v48 = vmul.f32 %v4575_v20, %v1575_v43  ;;  %v1579_v27 = vstv %s4588_s27  ;;  %v1406_v13 = vmul.f32 %v1405_v10, %v1398_v44  ;;  %v1407_v22 = vmul.f32 %v1405_v10, %v1399_v14  ;;  %s4747_s27 = sld [smem:[#allocation10 + $0x98]] }
 0x142   : > { %v1410_v61 = vmul.f32 %v1409_v62, %v1398_v44  ;;  %v1411_v46 = vmul.f32 %v1409_v62, %v1399_v14  ;;  %v1414_v57 = vmul.f32 %v1413_v12, %v1398_v44  ;;  %v1415_v54 = vmul.f32 %v1413_v12, %v1399_v14 }
 0x143   : > { %2988 = vtanh.f32 %v1490_v56  ;;  %v1535_v3 = vmul.f32 %v1533_v28, %v4596_v36  ;;  %v1416_v11 = vadd.f32 %v1402_v39, %v1366_v6  ;;  %v1447_v31 = vmul.f32 0.5, %v1445_v49 }
 0x144   : > { %v1536_v19 = vmul.f32 0.044715, %v1534_v21  ;;  %v4641_v0 = vadd.f32 %v1579_v27, %v1576_v60  ;;  %v4643_v29 = vadd.f32 %v1403_v8, %v1367_v59  ;;  %v1448_v10 = vmul.f32 %v1446_v7, %v4472_v15 }
 0x145   : > { %2990 = vtanh.f32 %v1491_v41  ;;  %v4646_v62 = vadd.f32 %v1579_v27, %v1577_v48  ;;  %v1418_v51 = vadd.f32 %v1406_v13, %v1368_v4  ;;  %v4648_v12 = vadd.f32 %v1407_v22, %v1369_v26 }
 0x146   : > { %v1420_v55 = vadd.f32 %v1410_v61, %v1370_v38  ;;  %v1582_v2 = vmul.f32 %v4641_v0, %v4641_v0  ;;  %v4654_v30 = vadd.f32 %v1411_v46, %v1371_v23  ;;  %v1422_v15 = vadd.f32 %v1414_v57, %v1372_v63 }
 0x147   : > { %v1537_v34 = vmul.f32 0.044715, %v1535_v3  ;;  %v1583_v33 = vmul.f32 %v4646_v62, %v4646_v62  ;;  %v4658_v6 = vadd.f32 %v1415_v54, %v1373_v37  ;;  %v1449_v59 = vmul.f32 %v1447_v31, %v4474_v5 }
 0x148   : > { %v1538_v4 = vadd.f32 %v1536_v19, %v4592_v25  ;;  %v1625_v44 = vstv %s4620_s1  ;;  %v1452_v26 = vmul.f32 %v1451_v9, %v1448_v10  ;;  %v1551_v38 = vstv %s4607_s25  ;;  %s4752_s1 = sld [smem:[#allocation10 + $0x118]] }
 0x149   : > { %v2989_v47 = vpop.eup %2988  ;;  %v1555_v14 = vstv %s4614_s5  ;;  %v1559_v1 = vstv %s4622_s3  ;;  %v1456_v17 = vmul.f32 %v1455_v50, %v1448_v10  ;;  %v1563_v23 = vstv %s4634_s2  ;;  %s4849_s25 = sld [smem:[#allocation10 + $0x9a]] }
 0x14a   : > { %v1584_v5 = vmul.f32 %v1582_v2, %v4641_v0  ;;  %v1585_v16 = vmul.f32 %v1583_v33, %v4646_v62  ;;  %v1460_v43 = vmul.f32 %v1459_v18, %v1448_v10  ;;  %v1539_v63 = vadd.f32 %v1537_v34, %v4596_v36  ;;  %s4856_s5 = sld [smem:[#allocation10 + $0x11a]] }
 0x14b   : > { %v2991_v58 = vpop.eup %2990  ;;  %v1626_v37 = vmul.f32 %v4569_v32, %v1625_v44  ;;  %v1627_v39 = vmul.f32 %v4575_v20, %v1625_v44  ;;  %v1453_v56 = vmul.f32 %v1451_v9, %v1449_v59  ;;  %v1464_v28 = vmul.f32 %v1463_v45, %v1448_v10  ;;  %s4865_s3 = sld [smem:[#allocation10 + $0x19a]] }
 0x14c   : > { %v1494_v8 = vadd.f32 1.0, %v2989_v47  ;;  %v1540_v49 = vmul.f32 0.7978846, %v1538_v4  ;;  %v1457_v21 = vmul.f32 %v1455_v50, %v1449_v59  ;;  %v1461_v60 = vmul.f32 %v1459_v18, %v1449_v59  ;;  %s4882_s2 = sld [smem:[#allocation7 + $0x1c]] }
 0x14d   : > { %v1465_v7 = vmul.f32 %v1463_v45, %v1449_v59  ;;  %v4692_v41 = vadd.f32 %v1452_v26, %v1416_v11  ;;  %v1495_v48 = vadd.f32 1.0, %v2991_v58  ;;  %v1586_v27 = vmul.f32 0.044715, %v1584_v5 }
 0x14e   : > { %v1587_v13 = vmul.f32 0.044715, %v1585_v16  ;;  %v1629_v22 = vstv %s4652_s24  ;;  %v4697_v9 = vadd.f32 %v1456_v17, %v1418_v51  ;;  %v1541_v61 = vmul.f32 0.7978846, %v1539_v63  ;;  %s4759_s24 = sld [smem:[#allocation10 + $0x198]] }
 0x14f   : > { %v4701_v46 = vadd.f32 %v1629_v22, %v1626_v37  ;;  %v4703_v50 = vadd.f32 %v1629_v22, %v1627_v39  ;;  %v4705_v18 = vadd.f32 %v1460_v43, %v1420_v55  ;;  %v1496_v45 = vmul.f32 0.5, %v1494_v8 }
 0x150   : > { %2992 = vtanh.f32 %v1540_v49  ;;  %v1588_v57 = vadd.f32 %v1586_v27, %v4641_v0  ;;  %v1589_v54 = vadd.f32 %v1587_v13, %v4646_v62  ;;  %v1675_v31 = vstv %s4668_s13  ;;  %s4767_s13 = sld [smem:[#allocation7 + $0x1b]] }
 0x151   : > { %v1632_v3 = vmul.f32 %v4701_v46, %v4701_v46  ;;  %v1633_v11 = vmul.f32 %v4703_v50, %v4703_v50  ;;  %v4716_v19 = vadd.f32 %v1464_v28, %v1422_v15  ;;  %v1497_v10 = vmul.f32 0.5, %v1495_v48 }
 0x152   : > { %v1676_v51 = vmul.f32 %v4569_v32, %v1675_v31  ;;  %v1677_v55 = vmul.f32 %v4575_v20, %v1675_v31  ;;  %2994 = vtanh.f32 %v1541_v61  ;;  %v1679_v33 = vstv %s4680_s23  ;;  %s4773_s23 = sld [smem:[#allocation10 + $0x19]] }
 0x153   : > { %v1634_v2 = vmul.f32 %v1632_v3, %v4701_v46  ;;  %v1635_v34 = vmul.f32 %v1633_v11, %v4703_v50  ;;  %v1498_v59 = vmul.f32 %v1496_v45, %v4517_v40  ;;  %v1590_v4 = vmul.f32 0.7978846, %v1588_v57 }
 0x154   : > { %v4726_v44 = vadd.f32 %v1679_v33, %v1676_v51  ;;  %v4728_v15 = vadd.f32 %v1679_v33, %v1677_v55  ;;  %v1467_v47 = vadd.f32 %v1453_v56, %v4643_v29  ;;  %v1469_v26 = vadd.f32 %v1457_v21, %v4648_v12 }
 0x155   : > { %v1471_v17 = vadd.f32 %v1461_v60, %v4654_v30  ;;  %v1591_v5 = vmul.f32 0.7978846, %v1589_v54  ;;  %v1499_v16 = vmul.f32 %v1497_v10, %v4526_v35  ;;  %v1636_v58 = vmul.f32 0.044715, %v1634_v2 }
 0x156   : > { %v2993_v40 = vpop.eup %2992  ;;  %v1682_v29 = vmul.f32 %v4726_v44, %v4726_v44  ;;  %v1683_v12 = vmul.f32 %v4728_v15, %v4728_v15  ;;  %v1473_v30 = vadd.f32 %v1465_v7, %v4658_v6  ;;  %v1601_v43 = vstv %s4694_s14  ;;  %s4884_s14 = sld [smem:[#allocation8 + $0x1c]] }
 0x157   : > { %v1605_v63 = vstv %s4699_s0  ;;  %v1637_v37 = vmul.f32 0.044715, %v1635_v34  ;;  %v1502_v35 = vmul.f32 %v1501_v53, %v1498_v59  ;;  %2996 = vtanh.f32 %v1590_v4  ;;  %s4892_s0 = sld [smem:[#allocation7 + $0x1d]] }
 0x158   : > { %v1609_v39 = vstv %s4708_s6  ;;  %v1684_v56 = vmul.f32 %v1682_v29, %v4726_v44  ;;  %v2995_v28 = vpop.eup %2994  ;;  %v1506_v6 = vmul.f32 %v1505_v52, %v1498_v59  ;;  %v1510_v8 = vmul.f32 %v1509_v24, %v1498_v59  ;;  %s4894_s6 = sld [smem:[#allocation8 + $0x1d]] }
 0x159   : > { %v1544_v49 = vadd.f32 1.0, %v2993_v40  ;;  %2998 = vtanh.f32 %v1591_v5  ;;  %v1503_v21 = vmul.f32 %v1501_v53, %v1499_v16  ;;  %v1514_v60 = vmul.f32 %v1513_v42, %v1498_v59 }
 0x15a   : > { %v1638_v7 = vadd.f32 %v1636_v58, %v4701_v46  ;;  %v1685_v48 = vmul.f32 %v1683_v12, %v4728_v15  ;;  %v1507_v27 = vmul.f32 %v1505_v52, %v1499_v16  ;;  %v1613_v13 = vstv %s4720_s28  ;;  %s4929_s28 = sld [smem:[#allocation7 + $0x1e]] }
 0x15b   : > { %v1639_v22 = vadd.f32 %v1637_v37, %v4703_v50  ;;  %v1686_v61 = vmul.f32 0.044715, %v1684_v56  ;;  %v1511_v45 = vmul.f32 %v1509_v24, %v1499_v16  ;;  %v1515_v53 = vmul.f32 %v1513_v42, %v1499_v16 }
 0x15c   : > { %v1545_v57 = vadd.f32 1.0, %v2995_v28  ;;  %v1725_v54 = vstv %s4730_s26  ;;  %v1516_v3 = vadd.f32 %v1502_v35, %v4692_v41  ;;  %v4784_v11 = vadd.f32 %v1506_v6, %v4697_v9  ;;  %s4828_s26 = sld [smem:[#allocation10 + $0x1a]] }
 0x15d   : > { %v4787_v52 = vadd.f32 %v1510_v8, %v4705_v18  ;;  %v1546_v31 = vmul.f32 0.5, %v1544_v49  ;;  %v2997_v10 = vpop.eup %2996  ;;  %v4791_v24 = vadd.f32 %v1503_v21, %v1467_v47  ;;  %v1522_v42 = vadd.f32 %v1514_v60, %v4716_v19 }
 0x15e   : > { %v1640_v51 = vmul.f32 0.7978846, %v1638_v7  ;;  %v1687_v55 = vmul.f32 0.044715, %v1685_v48  ;;  %v4794_v41 = vadd.f32 %v1507_v27, %v1469_v26  ;;  %v1641_v9 = vmul.f32 0.7978846, %v1639_v22 }
 0x15f   : > { %v2999_v2 = vpop.eup %2998  ;;  %v1688_v34 = vadd.f32 %v1686_v61, %v4726_v44  ;;  %v1726_v18 = vmul.f32 %v4569_v32, %v1725_v54  ;;  %v1521_v33 = vadd.f32 %v1511_v45, %v1471_v17  ;;  %v1523_v59 = vadd.f32 %v1515_v53, %v1473_v30 }
 0x160   : > { %v1547_v4 = vmul.f32 0.5, %v1545_v57  ;;  %v1729_v47 = vstv %s4735_s19  ;;  %v1548_v19 = vmul.f32 %v1546_v31, %v4592_v25  ;;  %v1594_v26 = vadd.f32 1.0, %v2997_v10  ;;  %s4933_s19 = sld [smem:[#allocation8 + $0x1e]] }
 0x161   : > { %v1651_v5 = vstv %s4738_s10  ;;  %v1727_v40 = vmul.f32 %v4575_v20, %v1725_v54  ;;  %v1595_v16 = vadd.f32 1.0, %v2999_v2  ;;  %3000 = vtanh.f32 %v1640_v51  ;;  %s4936_s10 = sld [smem:[#allocation10 + $0x1b]] }
 0x162   : > { %v1689_v17 = vadd.f32 %v1687_v55, %v4728_v15  ;;  %v1690_v58 = vmul.f32 0.7978846, %v1688_v34  ;;  %3002 = vtanh.f32 %v1641_v9  ;;  %v1655_v29 = vstv %s4747_s27  ;;  %s4943_s27 = sld [smem:[#allocation10 + $0x9b]] }
 0x163   : > { %v1659_v25 = vstv %s4752_s1  ;;  %v4809_v12 = vadd.f32 %v1729_v47, %v1726_v18  ;;  %v1549_v30 = vmul.f32 %v1547_v4, %v4596_v36  ;;  %v1663_v37 = vstv %s4759_s24  ;;  %s4949_s1 = sld [smem:[#allocation10 + $0x11b]] }
 0x164   : > { %v1701_v35 = vstv %s4773_s23  ;;  %v1705_v56 = vstv %s4779_s4  ;;  %v1552_v28 = vmul.f32 %v1551_v38, %v1548_v19  ;;  %v1596_v6 = vmul.f32 0.5, %v1594_v26  ;;  %s4957_s24 = sld [smem:[#allocation10 + $0x19b]] }
 0x165   : > { %v1709_v8 = vstv %s4789_s11  ;;  %v1775_v49 = vstv %s4767_s13  ;;  %v1597_v21 = vmul.f32 0.5, %v1595_v16  ;;  %v1691_v60 = vmul.f32 0.7978846, %v1689_v17  ;;  %s4967_s13 = sld [smem:[#allocation10 + $0x1c]] }
 0x166   : > { %3004 = vtanh.f32 %v1690_v58  ;;  %v4819_v7 = vadd.f32 %v1729_v47, %v1727_v40  ;;  %v1556_v36 = vmul.f32 %v1555_v14, %v1548_v19  ;;  %v1560_v48 = vmul.f32 %v1559_v1, %v1548_v19  ;;  %s4985_s23 = sld [smem:[#allocation10 + $0x19c]] }
 0x167   : > { %v1713_v27 = vstv %s4797_s17  ;;  %v1732_v22 = vmul.f32 %v4809_v12, %v4809_v12  ;;  %v3001_v61 = vpop.eup %3000  ;;  %v1553_v45 = vmul.f32 %v1551_v38, %v1549_v30  ;;  %v1557_v53 = vmul.f32 %v1555_v14, %v1549_v30  ;;  %s4993_s4 = sld [smem:[#allocation10 + $0x1d]] }
 0x168   : > { %v1564_v57 = vmul.f32 %v1563_v23, %v1548_v19  ;;  %v1776_v54 = vmul.f32 %v4569_v32, %v1775_v49  ;;  %v3003_v31 = vpop.eup %3002  ;;  %v1561_v10 = vmul.f32 %v1559_v1, %v1549_v30  ;;  %v1565_v51 = vmul.f32 %v1563_v23, %v1549_v30  ;;  %s4999_s11 = sld [smem:[#allocation10 + $0x9d]] }
 0x169   : > { %v1566_v55 = vadd.f32 %v1552_v28, %v1516_v3  ;;  %v1779_v2 = vstv %s4804_s18  ;;  %v1598_v9 = vmul.f32 %v1596_v6, %v4641_v0  ;;  %v1599_v34 = vmul.f32 %v1597_v21, %v4646_v62  ;;  %s4975_s18 = sld [smem:[#allocation10 + $0x9c]] }
 0x16a   : > { %3006 = vtanh.f32 %v1691_v60  ;;  %v1733_v38 = vmul.f32 %v4819_v7, %v4819_v7  ;;  %v1568_v14 = vadd.f32 %v1556_v36, %v4784_v11  ;;  %v1570_v18 = vadd.f32 %v1560_v48, %v4787_v52  ;;  %s5008_s17 = sld [smem:[#allocation10 + $0x11d]] }
 0x16b   : > { %v1644_v1 = vadd.f32 1.0, %v3001_v61  ;;  %v1734_v23 = vmul.f32 %v1732_v22, %v4809_v12  ;;  %v1572_v4 = vadd.f32 %v1564_v57, %v1522_v42  ;;  %v1645_v47 = vadd.f32 1.0, %v3003_v31 }
 0x16c   : > { %v3005_v3 = vpop.eup %3004  ;;  %v1777_v0 = vmul.f32 %v4575_v20, %v1775_v49  ;;  %v4852_v62 = vadd.f32 %v1779_v2, %v1776_v54  ;;  %v1567_v11 = vadd.f32 %v1553_v45, %v4791_v24  ;;  %v1569_v19 = vadd.f32 %v1557_v53, %v4794_v41 }
 0x16d   : > { %v1571_v52 = vadd.f32 %v1561_v10, %v1521_v33  ;;  %v1573_v26 = vadd.f32 %v1565_v51, %v1523_v59  ;;  %v1602_v42 = vmul.f32 %v1601_v43, %v1598_v9  ;;  %v1603_v40 = vmul.f32 %v1601_v43, %v1599_v34 }
 0x16e   : > { %v1606_v16 = vmul.f32 %v1605_v63, %v1598_v9  ;;  %v1735_v17 = vmul.f32 %v1733_v38, %v4819_v7  ;;  %v1646_v24 = vmul.f32 0.5, %v1644_v1  ;;  %v1694_v41 = vadd.f32 1.0, %v3005_v3 }
 0x16f   : > { %v1736_v33 = vmul.f32 0.044715, %v1734_v23  ;;  %v1751_v59 = vstv %s4828_s26  ;;  %v1607_v30 = vmul.f32 %v1605_v63, %v1599_v34  ;;  %v1647_v28 = vmul.f32 0.5, %v1645_v47 }
 0x170   : > { %v3007_v58 = vpop.eup %3006  ;;  %v4870_v6 = vadd.f32 %v1779_v2, %v1777_v0  ;;  %v1782_v43 = vmul.f32 %v4852_v62, %v4852_v62  ;;  %v1610_v49 = vmul.f32 %v1609_v39, %v1598_v9  ;;  %v1611_v21 = vmul.f32 %v1609_v39, %v1599_v34 }
 0x171   : > { %v1614_v60 = vmul.f32 %v1613_v13, %v1598_v9  ;;  %v1615_v36 = vmul.f32 %v1613_v13, %v1599_v34  ;;  %v1616_v48 = vadd.f32 %v1602_v42, %v1566_v55  ;;  %v1617_v22 = vadd.f32 %v1603_v40, %v1567_v11 }
 0x172   : > { %v1618_v61 = vadd.f32 %v1606_v16, %v1568_v14  ;;  %v1737_v63 = vmul.f32 0.044715, %v1735_v17  ;;  %v1648_v45 = vmul.f32 %v1646_v24, %v4701_v46  ;;  %v1695_v53 = vadd.f32 1.0, %v3007_v58 }
 0x173   : > { %v1696_v57 = vmul.f32 0.5, %v1694_v41  ;;  %v1738_v39 = vadd.f32 %v1736_v33, %v4809_v12  ;;  %v1619_v54 = vadd.f32 %v1607_v30, %v1569_v19  ;;  %v1649_v13 = vmul.f32 %v1647_v28, %v4703_v50 }
 0x174   : > { %v1783_v31 = vmul.f32 %v4870_v6, %v4870_v6  ;;  %v1784_v10 = vmul.f32 %v1782_v43, %v4852_v62  ;;  %v1620_v46 = vadd.f32 %v1610_v49, %v1570_v18  ;;  %v1621_v51 = vadd.f32 %v1611_v21, %v1571_v52 }
 0x175   : > { %v1622_v55 = vadd.f32 %v1614_v60, %v1572_v4  ;;  %v1623_v2 = vadd.f32 %v1615_v36, %v1573_v26  ;;  %v1739_v50 = vadd.f32 %v1737_v63, %v4819_v7  ;;  %v1755_v9 = vstv %s4849_s25 }
 0x176   : > { %v1759_v34 = vstv %s4856_s5  ;;  %v1763_v38 = vstv %s4865_s3  ;;  %v1652_v14 = vmul.f32 %v1651_v5, %v1648_v45  ;;  %v1697_v18 = vmul.f32 0.5, %v1695_v53 }
 0x177   : > { %v1698_v1 = vmul.f32 %v1696_v57, %v4726_v44  ;;  %v1740_v23 = vmul.f32 0.7978846, %v1738_v39  ;;  %v1653_v3 = vmul.f32 %v1651_v5, %v1649_v13  ;;  %v1656_v4 = vmul.f32 %v1655_v29, %v1648_v45 }
 0x178   : > { %v1785_v47 = vmul.f32 %v1783_v31, %v4870_v6  ;;  %v1786_v0 = vmul.f32 0.044715, %v1784_v10  ;;  %v1657_v11 = vmul.f32 %v1655_v29, %v1649_v13  ;;  %v1660_v19 = vmul.f32 %v1659_v25, %v1648_v45 }
 0x179   : > { %v1661_v52 = vmul.f32 %v1659_v25, %v1649_v13  ;;  %v1664_v26 = vmul.f32 %v1663_v37, %v1648_v45  ;;  %v1665_v44 = vmul.f32 %v1663_v37, %v1649_v13  ;;  %v1741_v42 = vmul.f32 0.7978846, %v1739_v50 }
 0x17a   : > { %v1825_v40 = vstv %s4882_s2  ;;  %v1829_v5 = vstv %s4884_s14  ;;  %3008 = vtanh.f32 %v1740_v23  ;;  %v1787_v16 = vmul.f32 0.044715, %v1785_v47  ;;  %s4979_s2 = sld [smem:[#allocation10 + $0x11c]] }
 0x17b   : > { %v1826_v17 = vmul.f32 %v4569_v32, %v1825_v40  ;;  %v1827_v24 = vmul.f32 %v4575_v20, %v1825_v40  ;;  %v1666_v29 = vadd.f32 %v1652_v14, %v1616_v48  ;;  %v1667_v41 = vadd.f32 %v1653_v3, %v1617_v22  ;;  %s5020_s14 = sld [smem:[#allocation7 + $0x1f]] }
 0x17c   : > { %v1668_v33 = vadd.f32 %v1656_v4, %v1618_v61  ;;  %v1788_v25 = vadd.f32 %v1786_v0, %v4852_v62  ;;  %v1875_v28 = vstv %s4892_s0  ;;  %v1879_v37 = vstv %s4894_s6  ;;  %s5035_s0 = sld [smem:[#allocation8 + $0x1f]] }
 0x17d   : > { %v4923_v58 = vadd.f32 %v1829_v5, %v1826_v17  ;;  %v4925_v30 = vadd.f32 %v1829_v5, %v1827_v24  ;;  %v1669_v43 = vadd.f32 %v1657_v11, %v1619_v54  ;;  %3010 = vtanh.f32 %v1741_v42  ;;  %s5048_s6 = sld [smem:[#allocation10 + $0x19d]] }
 0x17e   : > { %v1876_v49 = vmul.f32 %v4569_v32, %v1875_v28  ;;  %v1877_v21 = vmul.f32 %v4575_v20, %v1875_v28  ;;  %v1670_v60 = vadd.f32 %v1660_v19, %v1620_v46  ;;  %v1789_v36 = vadd.f32 %v1787_v16, %v4870_v6 }
 0x17f   : > { %v1832_v48 = vmul.f32 %v4923_v58, %v4923_v58  ;;  %v1833_v22 = vmul.f32 %v4925_v30, %v4925_v30  ;;  %v1671_v61 = vadd.f32 %v1661_v52, %v1621_v51  ;;  %v1699_v63 = vmul.f32 %v1697_v18, %v4728_v15 }
 0x180   : > { %v4945_v45 = vadd.f32 %v1879_v37, %v1876_v49  ;;  %v4947_v53 = vadd.f32 %v1879_v37, %v1877_v21  ;;  %v3009_v57 = vpop.eup %3008  ;;  %v1672_v39 = vadd.f32 %v1664_v26, %v1622_v55  ;;  %v1790_v54 = vmul.f32 0.7978846, %v1788_v25 }
 0x181   : > { %v1834_v13 = vmul.f32 %v1832_v48, %v4923_v58  ;;  %v1835_v15 = vmul.f32 %v1833_v22, %v4925_v30  ;;  %v1702_v31 = vmul.f32 %v1701_v35, %v1698_v1  ;;  %v1706_v10 = vmul.f32 %v1705_v56, %v1698_v1 }
 0x182   : > { %v1882_v46 = vmul.f32 %v4945_v45, %v4945_v45  ;;  %v1883_v51 = vmul.f32 %v4947_v53, %v4947_v53  ;;  %v1673_v55 = vadd.f32 %v1665_v44, %v1623_v2  ;;  %v1710_v50 = vmul.f32 %v1709_v8, %v1698_v1 }
 0x183   : > { %v1714_v14 = vmul.f32 %v1713_v27, %v1698_v1  ;;  %v1791_v18 = vmul.f32 0.7978846, %v1789_v36  ;;  %v3011_v23 = vpop.eup %3010  ;;  %v1703_v3 = vmul.f32 %v1701_v35, %v1699_v63  ;;  %v1707_v4 = vmul.f32 %v1705_v56, %v1699_v63 }
 0x184   : > { %v1711_v47 = vmul.f32 %v1709_v8, %v1699_v63  ;;  %v1744_v0 = vadd.f32 1.0, %v3009_v57  ;;  %v1715_v11 = vmul.f32 %v1713_v27, %v1699_v63  ;;  %3012 = vtanh.f32 %v1790_v54 }
 0x185   : > { %v1836_v2 = vmul.f32 0.044715, %v1834_v13  ;;  %v1837_v19 = vmul.f32 0.044715, %v1835_v15  ;;  %v4981_v1 = vadd.f32 %v1702_v31, %v1666_v29  ;;  %v4983_v52 = vadd.f32 %v1706_v10, %v1668_v33 }
 0x186   : > { %v1884_v35 = vmul.f32 %v1882_v46, %v4945_v45  ;;  %v1885_v56 = vmul.f32 %v1883_v51, %v4947_v53  ;;  %v4989_v8 = vadd.f32 %v1710_v50, %v1670_v60  ;;  %v4991_v27 = vadd.f32 %v1714_v14, %v1672_v39 }
 0x187   : > { %v1745_v26 = vadd.f32 1.0, %v3011_v23  ;;  %3014 = vtanh.f32 %v1791_v18  ;;  %v4995_v44 = vadd.f32 %v1703_v3, %v1667_v41  ;;  %v4997_v42 = vadd.f32 %v1707_v4, %v1669_v43 }
 0x188   : > { %v1746_v40 = vmul.f32 0.5, %v1744_v0  ;;  %v1925_v5 = vstv %s4929_s28  ;;  %v5002_v16 = vadd.f32 %v1711_v47, %v1671_v61  ;;  %v5004_v17 = vadd.f32 %v1715_v11, %v1673_v55  ;;  %s2740_s28 = sshll.u32 %s3358_s16, 3 }
 0x189   : > { %v1838_v24 = vadd.f32 %v1836_v2, %v4923_v58  ;;  %v1839_v29 = vadd.f32 %v1837_v19, %v4925_v30  ;;  %v1801_v41 = vstv %s4936_s10  ;;  %v1805_v33 = vstv %s4943_s27  ;;  %s5134_s10 = sld [smem:[#allocation10 + $0x9e]] }
 0x18a   : > { %v1886_v25 = vmul.f32 0.044715, %v1884_v35  ;;  %v1887_v28 = vmul.f32 0.044715, %v1885_v56  ;;  %v3013_v37 = vpop.eup %3012  ;;  %v1747_v43 = vmul.f32 0.5, %v1745_v26  ;;  %v1926_v21 = vmul.f32 %v4569_v32, %v1925_v5  ;;  %s5140_s27 = sld [smem:[#allocation10 + $0x11e]] }
 0x18b   : > { %v1840_v49 = vmul.f32 0.7978846, %v1838_v24  ;;  %v1927_v60 = vmul.f32 %v4575_v20, %v1925_v5  ;;  %v1748_v36 = vmul.f32 %v1746_v40, %v4809_v12  ;;  %v1809_v48 = vstv %s4949_s1  ;;  %s5142_s1 = sld [smem:[#allocation10 + $0x19e]] }
 0x18c   : > { %v1813_v22 = vstv %s4957_s24  ;;  %v1929_v61 = vstv %s4933_s19  ;;  %v1841_v57 = vmul.f32 0.7978846, %v1839_v29  ;;  %v1851_v39 = vstv %s4967_s13  ;;  %s5126_s19 = sld [smem:[#allocation10 + $0x1e]] }
 0x18d   : > { %v3015_v63 = vpop.eup %3014  ;;  %3016 = vtanh.f32 %v1840_v49  ;;  %v1888_v54 = vadd.f32 %v1886_v25, %v4945_v45  ;;  %v1794_v13 = vadd.f32 1.0, %v3013_v37  ;;  %v1855_v15 = vstv %s4975_s18  ;;  %s5148_s24 = sld [smem:[#allocation10 + $0x1f]] }
 0x18e   : > { %v1859_v12 = vstv %s4979_s2  ;;  %v1889_v31 = vadd.f32 %v1887_v28, %v4947_v53  ;;  %v1749_v10 = vmul.f32 %v1747_v43, %v4819_v7  ;;  %v1863_v46 = vstv %s4985_s23  ;;  %s5156_s13 = sld [smem:[#allocation10 + $0x9f]]  ;;  %s5313_s23 = sshll.u32 %s3462_s15, 5 }
 0x18f   : > { %v5027_v51 = vadd.f32 %v1929_v61, %v1926_v21  ;;  %v5029_v55 = vadd.f32 %v1929_v61, %v1927_v60  ;;  %v1752_v50 = vmul.f32 %v1751_v59, %v1748_v36  ;;  %v1795_v14 = vadd.f32 1.0, %v3015_v63  ;;  %s5164_s18 = sld [smem:[#allocation10 + $0x11f]] }
 0x190   : > { %v1901_v18 = vstv %s4993_s4  ;;  %v1905_v23 = vstv %s4999_s11  ;;  %v1756_v3 = vmul.f32 %v1755_v9, %v1748_v36  ;;  %3018 = vtanh.f32 %v1841_v57  ;;  %s5172_s2 = sld [smem:[#allocation10 + $0x19f]]  ;;  %s5202_s4 = scalar_lea.vmem [#allocation16], %s5313_s23 }
 0x191   : > { %v1890_v7 = vmul.f32 0.7978846, %v1888_v54  ;;  %v1909_v4 = vstv %s5008_s17  ;;  %v1760_v47 = vmul.f32 %v1759_v34, %v1748_v36  ;;  %v1764_v0 = vmul.f32 %v1763_v38, %v1748_v36  ;;  %s2039_s11 = sld [smem:[#allocation13]] (!%p2741_p1) }
 0x192   : > { %v1796_v11 = vmul.f32 0.5, %v1794_v13  ;;  %v1891_v2 = vmul.f32 0.7978846, %v1889_v31  ;;  %v1753_v35 = vmul.f32 %v1751_v59, %v1749_v10  ;;  %v1757_v56 = vmul.f32 %v1755_v9, %v1749_v10  ;;  %s2742_s17 = sld [smem:[#allocation13 + $0x1]] (!%p2741_p1) }
 0x193   : > { %v3017_v19 = vpop.eup %3016  ;;  %v1932_v26 = vmul.f32 %v5027_v51, %v5027_v51  ;;  %v1933_v40 = vmul.f32 %v5029_v55, %v5029_v55  ;;  %v1761_v5 = vmul.f32 %v1759_v34, %v1749_v10  ;;  %v1765_v24 = vmul.f32 %v1763_v38, %v1749_v10 }
 0x194   : > { %v1766_v29 = vadd.f32 %v1752_v50, %v4981_v1  ;;  %v1797_v25 = vmul.f32 0.5, %v1795_v14  ;;  %3020 = vtanh.f32 %v1890_v7  ;;  %v1975_v28 = vstv %s5020_s14  ;;  %v5094_v7 = vld [vmem:[%s5284_s7] sm:$0x3]  ;;  %s2743_s14 = sld [smem:[#allocation13 + $0x2]] (!%p2741_p1) }
 0x195   : > { %v1934_v59 = vmul.f32 %v1932_v26, %v5027_v51  ;;  %v1935_v9 = vmul.f32 %v1933_v40, %v5029_v55  ;;  %v1768_v37 = vadd.f32 %v1756_v3, %v4983_v52  ;;  %v1798_v43 = vmul.f32 %v1796_v11, %v4852_v62 }
 0x196   : > { %v1844_v49 = vadd.f32 1.0, %v3017_v19  ;;  %3022 = vtanh.f32 %v1891_v2  ;;  %v3019_v21 = vpop.eup %3018  ;;  %v1976_v38 = vmul.f32 %v4569_v32, %v1975_v28  ;;  %v1977_v1 = vmul.f32 %v4575_v20, %v1975_v28 }
 0x197   : > { %v1936_v34 = vmul.f32 0.044715, %v1934_v59  ;;  %v1937_v60 = vmul.f32 0.044715, %v1935_v9  ;;  %v1770_v36 = vadd.f32 %v1760_v47, %v4989_v8  ;;  %v1772_v61 = vadd.f32 %v1764_v0, %v4991_v27  ;;  %v5099_v47 = vld [vmem:[%s5285_s8] sm:$0x3] }
 0x198   : > { %v1799_v63 = vmul.f32 %v1797_v25, %v4870_v6  ;;  %v1979_v52 = vstv %s5035_s0  ;;  %v1767_v62 = vadd.f32 %v1753_v35, %v4995_v44  ;;  %v1769_v57 = vadd.f32 %v1757_v56, %v4997_v42 }
 0x199   : > { %v1771_v32 = vadd.f32 %v1761_v5, %v5002_v16  ;;  %v1773_v54 = vadd.f32 %v1765_v24, %v5004_v17  ;;  %v1845_v20 = vadd.f32 1.0, %v3019_v21  ;;  %v1846_v8 = vmul.f32 0.5, %v1844_v49 }
 0x19a   : > { %v1938_v27 = vadd.f32 %v1936_v34, %v5027_v51  ;;  %v1939_v6 = vadd.f32 %v1937_v60, %v5029_v55  ;;  %v3021_v13 = vpop.eup %3020  ;;  %v1802_v44 = vmul.f32 %v1801_v41, %v1798_v43  ;;  %v1913_v31 = vstv %s5048_s6 }
 0x19b   : > { %v5079_v10 = vadd.f32 %v1979_v52, %v1976_v38  ;;  %v5081_v42 = vadd.f32 %v1979_v52, %v1977_v1  ;;  %v1803_v17 = vmul.f32 %v1801_v41, %v1799_v63  ;;  %v1806_v50 = vmul.f32 %v1805_v33, %v1798_v43 }
 0x19c   : > { %v3023_v16 = vpop.eup %3022  ;;  %v1807_v14 = vmul.f32 %v1805_v33, %v1799_v63  ;;  %v1810_v3 = vmul.f32 %v1809_v48, %v1798_v43  ;;  %v1811_v0 = vmul.f32 %v1809_v48, %v1799_v63  ;;  %v1814_v41 = vmul.f32 %v1813_v22, %v1798_v43 }
 0x19d   : > { %v1815_v11 = vmul.f32 %v1813_v22, %v1799_v63  ;;  %v2025_v33 = vlaneseq  ;;  %v1847_v2 = vmul.f32 0.5, %v1845_v20  ;;  %v1848_v19 = vmul.f32 %v1846_v8, %v4923_v58 }
 0x19e   : > { %v1940_v35 = vmul.f32 0.7978846, %v1938_v27  ;;  %v1941_v56 = vmul.f32 0.7978846, %v1939_v6  ;;  %v1894_v26 = vadd.f32 1.0, %v3021_v13  ;;  %v1895_v40 = vadd.f32 1.0, %v3023_v16 }
 0x19f   : > { %v1982_v5 = vmul.f32 %v5079_v10, %v5079_v10  ;;  %v1983_v24 = vmul.f32 %v5081_v42, %v5081_v42  ;;  %v1816_v48 = vadd.f32 %v1802_v44, %v1766_v29  ;;  %v1817_v25 = vadd.f32 %v1803_v17, %v1767_v62 }
 0x1a0   : > { %v1818_v59 = vadd.f32 %v1806_v50, %v1768_v37  ;;  %3024 = vtanh.f32 %v1940_v35  ;;  %v2026_v9 = vshrl.u32 %v2025_v33, 7  ;;  %v1819_v28 = vadd.f32 %v1807_v14, %v1769_v57 }
 0x1a1   : > { %3026 = vtanh.f32 %v1941_v56  ;;  %v1984_v22 = vmul.f32 %v1982_v5, %v5079_v10  ;;  %v1985_v58 = vmul.f32 %v1983_v24, %v5081_v42  ;;  %v1849_v43 = vmul.f32 %v1847_v2, %v4925_v30 }
 0x1a2   : > { %v2027_v49 = vstv %s2740_s28  ;;  %v1820_v21 = vadd.f32 %v1810_v3, %v1770_v36  ;;  %v1852_v34 = vmul.f32 %v1851_v39, %v1848_v19  ;;  %v1896_v29 = vmul.f32 0.5, %v1894_v26 }
 0x1a3   : > { %v1897_v37 = vmul.f32 0.5, %v1895_v40  ;;  %v3280_v60 = vmov 0.0   ;;  %v1821_v38 = vadd.f32 %v1811_v0, %v1771_v32  ;;  %v1822_v1 = vadd.f32 %v1814_v41, %v1772_v61 }
 0x1a4   : > { %2032 = vst [vmem:[#allocation2] sm:$0xff] %v3280_v60  ;;  %v1986_v63 = vmul.f32 0.044715, %v1984_v22  ;;  %v1987_v52 = vmul.f32 0.044715, %v1985_v58  ;;  %v1856_v30 = vmul.f32 %v1855_v15, %v1848_v19  ;;  %v1860_v36 = vmul.f32 %v1859_v12, %v1848_v19 }
 0x1a5   : > { %2033 = vst [vmem:[#allocation2 + $0x8] sm:$0xff] %v3280_v60  ;;  %v1864_v62 = vmul.f32 %v1863_v46, %v1848_v19  ;;  %v2028_v57 = vadd.s32 %v2027_v49, %v2026_v9  ;;  %v1823_v8 = vadd.f32 %v1815_v11, %v1773_v54  ;;  %v1853_v27 = vmul.f32 %v1851_v39, %v1849_v43 }
 0x1a6   : > { %v3025_v20 = vpop.eup %3024  ;;  %v1857_v61 = vmul.f32 %v1855_v15, %v1849_v43  ;;  %v1861_v32 = vmul.f32 %v1859_v12, %v1849_v43  ;;  %v1865_v13 = vmul.f32 %v1863_v46, %v1849_v43  ;;  %v1866_v44 = vadd.f32 %v1852_v34, %v1816_v48 }
 0x1a7   : > { %v3027_v6 = vpop.eup %3026  ;;  %v1898_v16 = vmul.f32 %v1896_v29, %v4945_v45  ;;  %v1899_v17 = vmul.f32 %v1897_v37, %v4947_v53  ;;  %v1944_v50 = vadd.f32 1.0, %v3025_v20  ;;  %v1988_v39 = vadd.f32 %v1986_v63, %v5079_v10 }
 0x1a8   : > { %v1945_v54 = vadd.f32 1.0, %v3027_v6  ;;  %v1989_v15 = vadd.f32 %v1987_v52, %v5081_v42  ;;  %v1868_v12 = vadd.f32 %v1856_v30, %v1818_v59  ;;  %v1870_v46 = vadd.f32 %v1860_v36, %v1820_v21 }
 0x1a9   : > { %v1872_v14 = vadd.f32 %v1864_v62, %v1822_v1  ;;  %v5146_v45 = vcvt.s32.f32 %v2028_v57  ;;  %v1946_v53 = vmul.f32 0.5, %v1944_v50  ;;  %v1990_v0 = vmul.f32 0.7978846, %v1988_v39 }
 0x1aa   : > { %v1947_v3 = vmul.f32 0.5, %v1945_v54  ;;  %v1991_v41 = vmul.f32 0.7978846, %v1989_v15  ;;  %v1867_v11 = vadd.f32 %v1853_v27, %v1817_v25  ;;  %v1869_v33 = vadd.f32 %v1857_v61, %v1819_v28 }
 0x1ab   : > { %v1871_v2 = vadd.f32 %v1861_v32, %v1821_v38  ;;  %v1873_v19 = vadd.f32 %v1865_v13, %v1823_v8  ;;  %v1902_v35 = vmul.f32 %v1901_v18, %v1898_v16  ;;  %v1903_v56 = vmul.f32 %v1901_v18, %v1899_v17 }
 0x1ac   : > { %v1906_v26 = vmul.f32 %v1905_v23, %v1898_v16  ;;  %3028 = vtanh.f32 %v1990_v0  ;;  %v1907_v40 = vmul.f32 %v1905_v23, %v1899_v17  ;;  %v1910_v5 = vmul.f32 %v1909_v4, %v1898_v16 }
 0x1ad   : > { %v1911_v24 = vmul.f32 %v1909_v4, %v1899_v17  ;;  %3030 = vtanh.f32 %v1991_v41  ;;  %v1914_v48 = vmul.f32 %v1913_v31, %v1898_v16  ;;  %v1915_v18 = vmul.f32 %v1913_v31, %v1899_v17 }
 0x1ae   : > { %v1948_v25 = vmul.f32 %v1946_v53, %v5027_v51  ;;  %v1949_v59 = vmul.f32 %v1947_v3, %v5029_v55  ;;  %v1951_v22 = vstv %s5126_s19  ;;  %v1955_v58 = vstv %s5134_s10 }
 0x1af   : > { %v1916_v23 = vadd.f32 %v1902_v35, %v1866_v44  ;;  %v1917_v9 = vadd.f32 %v1903_v56, %v1867_v11  ;;  %v1959_v28 = vstv %s5140_s27  ;;  %v1963_v43 = vstv %s5142_s1 }
 0x1b0   : > { %v1918_v4 = vadd.f32 %v1906_v26, %v1868_v12  ;;  %v1919_v49 = vadd.f32 %v1907_v40, %v1869_v33  ;;  %v1920_v21 = vadd.f32 %v1910_v5, %v1870_v46  ;;  %v1921_v34 = vadd.f32 %v1911_v24, %v1871_v2 }
 0x1b1   : > { %v1922_v31 = vadd.f32 %v1914_v48, %v1872_v14  ;;  %v1923_v51 = vadd.f32 %v1915_v18, %v1873_v19  ;;  %v1952_v37 = vmul.f32 %v1951_v22, %v1948_v25  ;;  %v1953_v55 = vmul.f32 %v1951_v22, %v1949_v59 }
 0x1b2   : > { %v3029_v29 = vpop.eup %3028  ;;  %v1956_v1 = vmul.f32 %v1955_v58, %v1948_v25  ;;  %v1960_v63 = vmul.f32 %v1959_v28, %v1948_v25  ;;  %v1964_v52 = vmul.f32 %v1963_v43, %v1948_v25  ;;  %v1957_v36 = vmul.f32 %v1955_v58, %v1949_v59 }
 0x1b3   : > { %v3031_v38 = vpop.eup %3030  ;;  %v1994_v30 = vadd.f32 1.0, %v3029_v29  ;;  %v1961_v62 = vmul.f32 %v1959_v28, %v1949_v59  ;;  %v1965_v57 = vmul.f32 %v1963_v43, %v1949_v59  ;;  %v2001_v27 = vstv %s5148_s24 }
 0x1b4   : > { %v1995_v20 = vadd.f32 1.0, %v3031_v38  ;;  %v2005_v61 = vstv %s5156_s13  ;;  %v2009_v32 = vstv %s5164_s18  ;;  %v1966_v6 = vadd.f32 %v1952_v37, %v1916_v23 }
 0x1b5   : > { %v1996_v8 = vmul.f32 0.5, %v1994_v30  ;;  %v1967_v13 = vadd.f32 %v1953_v55, %v1917_v9  ;;  %v2013_v16 = vstv %s5172_s2  ;;  %v1968_v17 = vadd.f32 %v1956_v1, %v1918_v4 }
 0x1b6   : > { %v1997_v44 = vmul.f32 0.5, %v1995_v20  ;;  %v1970_v50 = vadd.f32 %v1960_v63, %v1920_v21  ;;  %v1972_v54 = vadd.f32 %v1964_v52, %v1922_v31  ;;  %v1969_v15 = vadd.f32 %v1957_v36, %v1919_v49 }
 0x1b7   : > { %v1998_v39 = vmul.f32 %v1996_v8, %v5079_v10  ;;  %v1971_v12 = vadd.f32 %v1961_v62, %v1921_v34  ;;  %v1973_v46 = vadd.f32 %v1965_v57, %v1923_v51 }
 0x1b8   : > { %v1999_v14 = vmul.f32 %v1997_v44, %v5081_v42  ;;  %2038 = sbr.rel (%p2741_p1) target bundleno = 471 (0x1d7), region = 88 }
 0x1b9   : > { %v2002_v53 = vmul.f32 %v2001_v27, %v1998_v39  ;;  %v2006_v3 = vmul.f32 %v2005_v61, %v1998_v39  ;;  %v2010_v0 = vmul.f32 %v2009_v32, %v1998_v39  ;;  %v2014_v41 = vmul.f32 %v2013_v16, %v1998_v39 }
 0x1ba   : > { %v2003_v11 = vmul.f32 %v2001_v27, %v1999_v14  ;;  %v2007_v33 = vmul.f32 %v2005_v61, %v1999_v14  ;;  %v2011_v2 = vmul.f32 %v2009_v32, %v1999_v14  ;;  %v2015_v19 = vmul.f32 %v2013_v16, %v1999_v14 }
 0x1bb   : > { %v5184_v35 = vadd.f32 %v2002_v53, %v1966_v6  ;;  %v5186_v56 = vadd.f32 %v2006_v3, %v1968_v17  ;;  %v5188_v26 = vadd.f32 %v2010_v0, %v1970_v50  ;;  %v5190_v10 = vadd.f32 %v2014_v41, %v1972_v54 }
 0x1bc   : > { %v5192_v40 = vadd.f32 %v2003_v11, %v1967_v13  ;;  %v5194_v42 = vadd.f32 %v2007_v33, %v1969_v15  ;;  %v5196_v5 = vadd.f32 %v2011_v2, %v1971_v12  ;;  %v5198_v24 = vadd.f32 %v2015_v19, %v1973_v46 }
 0x1bd   : > { %v2042_v48 = vstv %s2039_s11  ;;  %v2048_v25 = vstv %s2742_s17  ;;  %v2051_v22 = vstv %s2743_s14  ;;  %v2058_v55 = vld [vmem:[#allocation2] sm:$0xff]  ;;  %v2059_v38 = vld [vmem:[#allocation2 + $0x8] sm:$0xff] }
 0x1be   : > { %v2043_v18 = vsub.f32 %v5146_v45, %v2042_v48  ;;  %v2049_v59 = vsub.f32 %v5094_v7, %v2048_v25  ;;  %v2052_v23 = vsub.f32 %v5099_v47, %v2051_v22 }
 0x1c0   : > { %v2044_v58 = vmul.f32 -0.055555556, %v2043_v18  ;;  %v2050_v9 = vmul.f32 %v2049_v59, %v2049_v59  ;;  %v2053_v43 = vmul.f32 %v2052_v23, %v2052_v23 }
 0x1c2   : > { %v2045_v28 = vmul.f32 %v2044_v58, %v2043_v18  ;;  %v2054_v4 = vadd.f32 %v2053_v43, %v2050_v9 }
 0x1c4   : > { %v2046_v49 = vmul.f32 1.442695, %v2045_v28  ;;  %v2055_v21 = vmul.f32 -0.055555556, %v2054_v4 }
 0x1c6   : > { %v2056_v34 = vmul.f32 1.442695, %v2055_v21  ;;  %3036 = vpow2.f32 %v2046_v49 }
 0x1c8   : > { %3038 = vpow2.f32 %v2056_v34 }
 0x1cc   : > { %v3037_v29 = vpop.eup %3036 }
 0x1ce   : > { %v3039_v31 = vpop.eup %3038 }
 0x1cf   : > { %v2061_v51 = vperm.slane %v3039_v31, 0  ;;  %v2062_v37 = vperm.slane %v3039_v31, 1 }
 0x1d1   : > { %v2065_v1 = vmul.f32 %v3037_v29, %v2061_v51  ;;  %v2066_v63 = vmul.f32 %v3037_v29, %v2062_v37 }
 0x1d3   : > { %v2067_v52 = vadd.f32 %v2065_v1, %v2058_v55  ;;  %v2068_v30 = vadd.f32 %v2066_v63, %v2059_v38 }
 0x1d5   : > { %2069 = vst [vmem:[#allocation2] sm:$0xff] %v2067_v52 }
 0x1d6   : > { %2070 = vst [vmem:[#allocation2 + $0x8] sm:$0xff] %v2068_v30 }
 0x1d7 PF: > { %s2744_s20 = sld [smem:[#allocation14 + $0x1]] }
 0x1dd   : > { %p2745_p3 = scmp.eq.s32.totalorder %s2744_s20, 4294967295 }
 0x1de   : > { %s2746_s0 = sld [smem:[#allocation13 + $0x80]] (!%p2745_p3) }
 0x1df   : > { %2075 = sbr.rel (%p2745_p3) target bundleno = 512 (0x200), region = 92  ;;  %s2747_s6 = sld [smem:[#allocation13 + $0x81]] (!%p2745_p3) }
 0x1e0   : > { %s2748_s26 = sld [smem:[#allocation13 + $0x82]] (!%p2745_p3) }
 0x1e4   : > { %v2079_v36 = vstv %s2746_s0  ;;  %v2095_v46 = vld [vmem:[#allocation2] sm:$0xff]  ;;  %v2096_v14 = vld [vmem:[#allocation2 + $0x8] sm:$0xff] }
 0x1e5   : > { %v2080_v62 = vsub.f32 %v5146_v45, %v2079_v36  ;;  %v2085_v57 = vstv %s2747_s6 }
 0x1e6   : > { %v2086_v20 = vsub.f32 %v5094_v7, %v2085_v57  ;;  %v2088_v8 = vstv %s2748_s26 }
 0x1e7   : > { %v2081_v27 = vmul.f32 -0.055555556, %v2080_v62  ;;  %v2089_v61 = vsub.f32 %v5099_v47, %v2088_v8 }
 0x1e8   : > { %v2087_v32 = vmul.f32 %v2086_v20, %v2086_v20 }
 0x1e9   : > { %v2082_v6 = vmul.f32 %v2081_v27, %v2080_v62  ;;  %v2090_v13 = vmul.f32 %v2089_v61, %v2089_v61 }
 0x1eb   : > { %v2091_v44 = vadd.f32 %v2090_v13, %v2087_v32  ;;  %v2083_v16 = vmul.f32 1.442695, %v2082_v6 }
 0x1ed   : > { %v2092_v17 = vmul.f32 -0.055555556, %v2091_v44  ;;  %3040 = vpow2.f32 %v2083_v16 }
 0x1ef   : > { %v2093_v50 = vmul.f32 1.442695, %v2092_v17 }
 0x1f1   : > { %3042 = vpow2.f32 %v2093_v50 }
 0x1f3   : > { %v3041_v54 = vpop.eup %3040 }
 0x1f7   : > { %v3043_v39 = vpop.eup %3042 }
 0x1f8   : > { %v2098_v15 = vperm.slane %v3043_v39, 0  ;;  %v2099_v12 = vperm.slane %v3043_v39, 1 }
 0x1fa   : > { %v2102_v53 = vmul.f32 %v3041_v54, %v2098_v15  ;;  %v2103_v3 = vmul.f32 %v3041_v54, %v2099_v12 }
 0x1fc   : > { %v2104_v0 = vadd.f32 %v2102_v53, %v2095_v46  ;;  %v2105_v41 = vadd.f32 %v2103_v3, %v2096_v14 }
 0x1fe   : > { %2106 = vst [vmem:[#allocation2] sm:$0xff] %v2104_v0 }
 0x1ff   : > { %2107 = vst [vmem:[#allocation2 + $0x8] sm:$0xff] %v2105_v41 }
 0x200 PF: > { %s2749_s25 = sld [smem:[#allocation14 + $0x2]] }
 0x206   : > { %p2750_p4 = scmp.eq.s32.totalorder %s2749_s25, 4294967295 }
 0x207   : > { %s2751_s5 = sld [smem:[#allocation13 + $0x100]] (!%p2750_p4) }
 0x208   : > { %2112 = sbr.rel (%p2750_p4) target bundleno = 553 (0x229), region = 96  ;;  %s2752_s3 = sld [smem:[#allocation13 + $0x101]] (!%p2750_p4) }
 0x209   : > { %s2753_s28 = sld [smem:[#allocation13 + $0x102]] (!%p2750_p4) }
 0x20d   : > { %v2116_v11 = vstv %s2751_s5  ;;  %v2132_v29 = vld [vmem:[#allocation2] sm:$0xff]  ;;  %v2133_v31 = vld [vmem:[#allocation2 + $0x8] sm:$0xff] }
 0x20e   : > { %v2117_v33 = vsub.f32 %v5146_v45, %v2116_v11  ;;  %v2122_v2 = vstv %s2752_s3 }
 0x20f   : > { %v2123_v19 = vsub.f32 %v5094_v7, %v2122_v2  ;;  %v2125_v48 = vstv %s2753_s28 }
 0x210   : > { %v2118_v18 = vmul.f32 -0.055555556, %v2117_v33  ;;  %v2126_v25 = vsub.f32 %v5099_v47, %v2125_v48 }
 0x211   : > { %v2124_v59 = vmul.f32 %v2123_v19, %v2123_v19 }
 0x212   : > { %v2119_v22 = vmul.f32 %v2118_v18, %v2117_v33  ;;  %v2127_v58 = vmul.f32 %v2126_v25, %v2126_v25 }
 0x214   : > { %v2128_v23 = vadd.f32 %v2127_v58, %v2124_v59  ;;  %v2120_v9 = vmul.f32 1.442695, %v2119_v22 }
 0x216   : > { %v2129_v28 = vmul.f32 -0.055555556, %v2128_v23  ;;  %3044 = vpow2.f32 %v2120_v9 }
 0x218   : > { %v2130_v43 = vmul.f32 1.442695, %v2129_v28 }
 0x21a   : > { %3046 = vpow2.f32 %v2130_v43 }
 0x21c   : > { %v3045_v4 = vpop.eup %3044 }
 0x220   : > { %v3047_v49 = vpop.eup %3046 }
 0x221   : > { %v2135_v21 = vperm.slane %v3047_v49, 0  ;;  %v2136_v34 = vperm.slane %v3047_v49, 1 }
 0x223   : > { %v2139_v51 = vmul.f32 %v3045_v4, %v2135_v21  ;;  %v2140_v37 = vmul.f32 %v3045_v4, %v2136_v34 }
 0x225   : > { %v2141_v55 = vadd.f32 %v2139_v51, %v2132_v29  ;;  %v2142_v38 = vadd.f32 %v2140_v37, %v2133_v31 }
 0x227   : > { %2143 = vst [vmem:[#allocation2] sm:$0xff] %v2141_v55 }
 0x228   : > { %2144 = vst [vmem:[#allocation2 + $0x8] sm:$0xff] %v2142_v38 }
 0x229 PF: > { %s2754_s19 = sld [smem:[#allocation14 + $0x3]] }
 0x22f   : > { %p2755_p12 = scmp.eq.s32.totalorder %s2754_s19, 4294967295 }
 0x230   : > { %s2756_s10 = sld [smem:[#allocation13 + $0x180]] (!%p2755_p12) }
 0x231   : > { %2149 = sbr.rel (%p2755_p12) target bundleno = 594 (0x252), region = 100  ;;  %s2757_s27 = sld [smem:[#allocation13 + $0x181]] (!%p2755_p12) }
 0x232   : > { %s2758_s1 = sld [smem:[#allocation13 + $0x182]] (!%p2755_p12) }
 0x236   : > { %v2153_v1 = vstv %s2756_s10  ;;  %v2169_v54 = vld [vmem:[#allocation2] sm:$0xff]  ;;  %v2170_v39 = vld [vmem:[#allocation2 + $0x8] sm:$0xff] }
 0x237   : > { %v2154_v63 = vsub.f32 %v5146_v45, %v2153_v1  ;;  %v2159_v52 = vstv %s2757_s27 }
 0x238   : > { %v2160_v30 = vsub.f32 %v5094_v7, %v2159_v52  ;;  %v2162_v36 = vstv %s2758_s1 }
 0x239   : > { %v2155_v62 = vmul.f32 -0.055555556, %v2154_v63  ;;  %v2163_v57 = vsub.f32 %v5099_v47, %v2162_v36 }
 0x23a   : > { %v2161_v20 = vmul.f32 %v2160_v30, %v2160_v30 }
 0x23b   : > { %v2156_v8 = vmul.f32 %v2155_v62, %v2154_v63  ;;  %v2164_v27 = vmul.f32 %v2163_v57, %v2163_v57 }
 0x23d   : > { %v2165_v61 = vadd.f32 %v2164_v27, %v2161_v20  ;;  %v2157_v32 = vmul.f32 1.442695, %v2156_v8 }
 0x23f   : > { %v2166_v6 = vmul.f32 -0.055555556, %v2165_v61  ;;  %3048 = vpow2.f32 %v2157_v32 }
 0x241   : > { %v2167_v13 = vmul.f32 1.442695, %v2166_v6 }
 0x243   : > { %3050 = vpow2.f32 %v2167_v13 }
 0x245   : > { %v3049_v44 = vpop.eup %3048 }
 0x249   : > { %v3051_v16 = vpop.eup %3050 }
 0x24a   : > { %v2172_v17 = vperm.slane %v3051_v16, 0  ;;  %v2173_v50 = vperm.slane %v3051_v16, 1 }
 0x24c   : > { %v2176_v15 = vmul.f32 %v3049_v44, %v2172_v17  ;;  %v2177_v12 = vmul.f32 %v3049_v44, %v2173_v50 }
 0x24e   : > { %v2178_v46 = vadd.f32 %v2176_v15, %v2169_v54  ;;  %v2179_v14 = vadd.f32 %v2177_v12, %v2170_v39 }
 0x250   : > { %2180 = vst [vmem:[#allocation2] sm:$0xff] %v2178_v46 }
 0x251   : > { %2181 = vst [vmem:[#allocation2 + $0x8] sm:$0xff] %v2179_v14 }
 0x252 PF: > { %s2188_s24 = sld [smem:[#allocation11]] }
 0x253   : > { %s2759_s13 = sld [smem:[#allocation11 + $0x2]] }
 0x254   : > { %s2760_s18 = sld [smem:[#allocation14 + $0x80]] }
 0x257   : > { %v2182_v53 = vld [vmem:[#allocation2] sm:$0xff] }
 0x258   : > { %v2183_v3 = vld [vmem:[#allocation2 + $0x8] sm:$0xff]  ;;  %v2184_v0 = vsub.f32 1.0, %v2182_v53  ;;  %2206 = vst [vmem:[#allocation2] sm:$0xff] %v3280_v60  ;;  %v2189_v2 = vstv %s2188_s24 }
 0x259   : > { %v2185_v41 = vsub.f32 1.0, %v2183_v3  ;;  %2207 = vst [vmem:[#allocation2 + $0x8] sm:$0xff] %v3280_v60  ;;  %v2190_v18 = vadd.f32 %v2189_v2, %v5184_v35  ;;  %v2193_v25 = vstv %s2759_s13  ;;  %v2191_v59 = vadd.f32 %v2189_v2, %v5192_v40 }
 0x25a   : > { %v2186_v11 = vmax.f32 %v2184_v0, 0.0  ;;  %v2194_v22 = vadd.f32 %v2193_v25, %v5188_v26  ;;  %v2195_v58 = vadd.f32 %v2193_v25, %v5196_v5  ;;  %p2761_p7 = scmp.eq.s32.totalorder %s2760_s18, 4294967295 }
 0x25b   : > { %v2187_v33 = vmax.f32 %v2185_v41, 0.0  ;;  %s2762_s2 = sld [smem:[#allocation13 + $0x200]] (!%p2761_p7) }
 0x25c   : > { %v2198_v19 = vsub.f32 1.0, %v2186_v11  ;;  %v2196_v23 = vmul.f32 %v2190_v18, %v2186_v11  ;;  %s2763_s23 = sld [smem:[#allocation13 + $0x201]] (!%p2761_p7) }
 0x25d   : > { %v2199_v48 = vsub.f32 1.0, %v2187_v33  ;;  %v2197_v9 = vmul.f32 %v2191_v59, %v2187_v33  ;;  %s2764_s11 = sld [smem:[#allocation13 + $0x202]] (!%p2761_p7) }
 0x25e   : > { %v2200_v60 = vmul.f32 %v2198_v19, %v2194_v22 }
 0x25f   : > { %v2201_v28 = vmul.f32 %v2199_v48, %v2195_v58  ;;  %2212 = sbr.rel (%p2761_p7) target bundleno = 638 (0x27e), region = 104 }
 0x260   : > { %v2202_v43 = vadd.f32 %v2200_v60, %v2196_v23 }
 0x261   : > { %v2203_v4 = vadd.f32 %v2201_v28, %v2197_v9 }
 0x262   : > { %2204 = vst [vmem:[%s5202_s4] sm:$0xff] %v2202_v43 }
 0x263   : > { %2205 = vst [vmem:[%s5202_s4 + $0x8] sm:$0xff] %v2203_v4 }
 0x264   : > { %v2216_v35 = vstv %s2762_s2  ;;  %v2222_v49 = vstv %s2763_s23  ;;  %v2225_v5 = vstv %s2764_s11  ;;  %v2232_v62 = vld [vmem:[#allocation2] sm:$0xff]  ;;  %v2233_v57 = vld [vmem:[#allocation2 + $0x8] sm:$0xff] }
 0x265   : > { %v2217_v40 = vsub.f32 %v5146_v45, %v2216_v35  ;;  %v2223_v26 = vsub.f32 %v5094_v7, %v2222_v49  ;;  %v2226_v34 = vsub.f32 %v5099_v47, %v2225_v5 }
 0x267   : > { %v2218_v21 = vmul.f32 -0.055555556, %v2217_v40  ;;  %v2224_v29 = vmul.f32 %v2223_v26, %v2223_v26  ;;  %v2227_v51 = vmul.f32 %v2226_v34, %v2226_v34 }
 0x269   : > { %v2219_v31 = vmul.f32 %v2218_v21, %v2217_v40  ;;  %v2228_v37 = vadd.f32 %v2227_v51, %v2224_v29 }
 0x26b   : > { %v2220_v55 = vmul.f32 1.442695, %v2219_v31  ;;  %v2229_v38 = vmul.f32 -0.055555556, %v2228_v37 }
 0x26d   : > { %v2230_v1 = vmul.f32 1.442695, %v2229_v38  ;;  %3052 = vpow2.f32 %v2220_v55 }
 0x26f   : > { %3054 = vpow2.f32 %v2230_v1 }
 0x273   : > { %v3053_v63 = vpop.eup %3052 }
 0x275   : > { %v3055_v52 = vpop.eup %3054 }
 0x276   : > { %v2235_v30 = vperm.slane %v3055_v52, 0  ;;  %v2236_v36 = vperm.slane %v3055_v52, 1 }
 0x278   : > { %v2239_v20 = vmul.f32 %v3053_v63, %v2235_v30  ;;  %v2240_v8 = vmul.f32 %v3053_v63, %v2236_v36 }
 0x27a   : > { %v2241_v27 = vadd.f32 %v2239_v20, %v2232_v62  ;;  %v2242_v61 = vadd.f32 %v2240_v8, %v2233_v57 }
 0x27c   : > { %2243 = vst [vmem:[#allocation2] sm:$0xff] %v2241_v27 }
 0x27d   : > { %2244 = vst [vmem:[#allocation2 + $0x8] sm:$0xff] %v2242_v61 }
 0x27e PF: > { %s2765_s17 = sld [smem:[#allocation14 + $0x81]] }
 0x284   : > { %p2766_p8 = scmp.eq.s32.totalorder %s2765_s17, 4294967295 }
 0x285   : > { %s2767_s14 = sld [smem:[#allocation13 + $0x280]] (!%p2766_p8) }
 0x286   : > { %2249 = sbr.rel (%p2766_p8) target bundleno = 679 (0x2a7), region = 108  ;;  %s2768_s20 = sld [smem:[#allocation13 + $0x281]] (!%p2766_p8) }
 0x287   : > { %s2769_s0 = sld [smem:[#allocation13 + $0x282]] (!%p2766_p8) }
 0x28b   : > { %v2253_v32 = vstv %s2767_s14  ;;  %v2269_v33 = vld [vmem:[#allocation2] sm:$0xff]  ;;  %v2270_v2 = vld [vmem:[#allocation2 + $0x8] sm:$0xff] }
 0x28c   : > { %v2254_v6 = vsub.f32 %v5146_v45, %v2253_v32  ;;  %v2259_v13 = vstv %s2768_s20 }
 0x28d   : > { %v2260_v44 = vsub.f32 %v5094_v7, %v2259_v13  ;;  %v2262_v16 = vstv %s2769_s0 }
 0x28e   : > { %v2255_v17 = vmul.f32 -0.055555556, %v2254_v6  ;;  %v2263_v50 = vsub.f32 %v5099_v47, %v2262_v16 }
 0x28f   : > { %v2261_v54 = vmul.f32 %v2260_v44, %v2260_v44 }
 0x290   : > { %v2256_v39 = vmul.f32 %v2255_v17, %v2254_v6  ;;  %v2264_v15 = vmul.f32 %v2263_v50, %v2263_v50 }
 0x292   : > { %v2265_v12 = vadd.f32 %v2264_v15, %v2261_v54  ;;  %v2257_v46 = vmul.f32 1.442695, %v2256_v39 }
 0x294   : > { %v2266_v14 = vmul.f32 -0.055555556, %v2265_v12  ;;  %3056 = vpow2.f32 %v2257_v46 }
 0x296   : > { %v2267_v53 = vmul.f32 1.442695, %v2266_v14 }
 0x298   : > { %3058 = vpow2.f32 %v2267_v53 }
 0x29a   : > { %v3057_v3 = vpop.eup %3056 }
 0x29e   : > { %v3059_v0 = vpop.eup %3058 }
 0x29f   : > { %v2272_v41 = vperm.slane %v3059_v0, 0  ;;  %v2273_v11 = vperm.slane %v3059_v0, 1 }
 0x2a1   : > { %v2276_v19 = vmul.f32 %v3057_v3, %v2272_v41  ;;  %v2277_v48 = vmul.f32 %v3057_v3, %v2273_v11 }
 0x2a3   : > { %v2278_v18 = vadd.f32 %v2276_v19, %v2269_v33  ;;  %v2279_v25 = vadd.f32 %v2277_v48, %v2270_v2 }
 0x2a5   : > { %2280 = vst [vmem:[#allocation2] sm:$0xff] %v2278_v18 }
 0x2a6   : > { %2281 = vst [vmem:[#allocation2 + $0x8] sm:$0xff] %v2279_v25 }
 0x2a7 PF: > { %s2770_s6 = sld [smem:[#allocation14 + $0x82]] }
 0x2ad   : > { %p2771_p9 = scmp.eq.s32.totalorder %s2770_s6, 4294967295 }
 0x2ae   : > { %s2772_s26 = sld [smem:[#allocation13 + $0x300]] (!%p2771_p9) }
 0x2af   : > { %2286 = sbr.rel (%p2771_p9) target bundleno = 720 (0x2d0), region = 112  ;;  %s2773_s25 = sld [smem:[#allocation13 + $0x301]] (!%p2771_p9) }
 0x2b0   : > { %s2774_s5 = sld [smem:[#allocation13 + $0x302]] (!%p2771_p9) }
 0x2b4   : > { %v2290_v59 = vstv %s2772_s26  ;;  %v2306_v51 = vld [vmem:[#allocation2] sm:$0xff]  ;;  %v2307_v37 = vld [vmem:[#allocation2 + $0x8] sm:$0xff] }
 0x2b5   : > { %v2291_v22 = vsub.f32 %v5146_v45, %v2290_v59  ;;  %v2296_v58 = vstv %s2773_s25 }
 0x2b6   : > { %v2297_v23 = vsub.f32 %v5094_v7, %v2296_v58  ;;  %v2299_v9 = vstv %s2774_s5 }
 0x2b7   : > { %v2292_v60 = vmul.f32 -0.055555556, %v2291_v22  ;;  %v2300_v28 = vsub.f32 %v5099_v47, %v2299_v9 }
 0x2b8   : > { %v2298_v43 = vmul.f32 %v2297_v23, %v2297_v23 }
 0x2b9   : > { %v2293_v4 = vmul.f32 %v2292_v60, %v2291_v22  ;;  %v2301_v35 = vmul.f32 %v2300_v28, %v2300_v28 }
 0x2bb   : > { %v2302_v40 = vadd.f32 %v2301_v35, %v2298_v43  ;;  %v2294_v49 = vmul.f32 1.442695, %v2293_v4 }
 0x2bd   : > { %v2303_v26 = vmul.f32 -0.055555556, %v2302_v40  ;;  %3060 = vpow2.f32 %v2294_v49 }
 0x2bf   : > { %v2304_v5 = vmul.f32 1.442695, %v2303_v26 }
 0x2c1   : > { %3062 = vpow2.f32 %v2304_v5 }
 0x2c3   : > { %v3061_v21 = vpop.eup %3060 }
 0x2c7   : > { %v3063_v34 = vpop.eup %3062 }
 0x2c8   : > { %v2309_v29 = vperm.slane %v3063_v34, 0  ;;  %v2310_v31 = vperm.slane %v3063_v34, 1 }
 0x2ca   : > { %v2313_v55 = vmul.f32 %v3061_v21, %v2309_v29  ;;  %v2314_v38 = vmul.f32 %v3061_v21, %v2310_v31 }
 0x2cc   : > { %v2315_v1 = vadd.f32 %v2313_v55, %v2306_v51  ;;  %v2316_v63 = vadd.f32 %v2314_v38, %v2307_v37 }
 0x2ce   : > { %2317 = vst [vmem:[#allocation2] sm:$0xff] %v2315_v1 }
 0x2cf   : > { %2318 = vst [vmem:[#allocation2 + $0x8] sm:$0xff] %v2316_v63 }
 0x2d0 PF: > { %s2775_s3 = sld [smem:[#allocation14 + $0x83]] }
 0x2d6   : > { %p2776_p10 = scmp.eq.s32.totalorder %s2775_s3, 4294967295 }
 0x2d7   : > { %s2777_s28 = sld [smem:[#allocation13 + $0x380]] (!%p2776_p10) }
 0x2d8   : > { %2323 = sbr.rel (%p2776_p10) target bundleno = 761 (0x2f9), region = 116  ;;  %s2778_s19 = sld [smem:[#allocation13 + $0x381]] (!%p2776_p10) }
 0x2d9   : > { %s2779_s10 = sld [smem:[#allocation13 + $0x382]] (!%p2776_p10) }
 0x2dd   : > { %v2327_v52 = vstv %s2777_s28  ;;  %v2343_v39 = vld [vmem:[#allocation2] sm:$0xff]  ;;  %v2344_v15 = vld [vmem:[#allocation2 + $0x8] sm:$0xff] }
 0x2de   : > { %v2328_v30 = vsub.f32 %v5146_v45, %v2327_v52  ;;  %v2333_v36 = vstv %s2778_s19 }
 0x2df   : > { %v2334_v62 = vsub.f32 %v5094_v7, %v2333_v36  ;;  %v2336_v57 = vstv %s2779_s10 }
 0x2e0   : > { %v2329_v20 = vmul.f32 -0.055555556, %v2328_v30  ;;  %v2337_v8 = vsub.f32 %v5099_v47, %v2336_v57 }
 0x2e1   : > { %v2335_v27 = vmul.f32 %v2334_v62, %v2334_v62 }
 0x2e2   : > { %v2330_v61 = vmul.f32 %v2329_v20, %v2328_v30  ;;  %v2338_v32 = vmul.f32 %v2337_v8, %v2337_v8 }
 0x2e4   : > { %v2339_v6 = vadd.f32 %v2338_v32, %v2335_v27  ;;  %v2331_v13 = vmul.f32 1.442695, %v2330_v61 }
 0x2e6   : > { %v2340_v44 = vmul.f32 -0.055555556, %v2339_v6  ;;  %3064 = vpow2.f32 %v2331_v13 }
 0x2e8   : > { %v2341_v16 = vmul.f32 1.442695, %v2340_v44 }
 0x2ea   : > { %3066 = vpow2.f32 %v2341_v16 }
 0x2ec   : > { %v3065_v17 = vpop.eup %3064 }
 0x2f0   : > { %v3067_v50 = vpop.eup %3066 }
 0x2f1   : > { %v2346_v54 = vperm.slane %v3067_v50, 0  ;;  %v2347_v45 = vperm.slane %v3067_v50, 1 }
 0x2f3   : > { %v2350_v7 = vmul.f32 %v3065_v17, %v2346_v54  ;;  %v2351_v12 = vmul.f32 %v3065_v17, %v2347_v45 }
 0x2f5   : > { %v2352_v46 = vadd.f32 %v2350_v7, %v2343_v39  ;;  %v2353_v14 = vadd.f32 %v2351_v12, %v2344_v15 }
 0x2f7   : > { %2354 = vst [vmem:[#allocation2] sm:$0xff] %v2352_v46 }
 0x2f8   : > { %2355 = vst [vmem:[#allocation2 + $0x8] sm:$0xff] %v2353_v14 }
 0x2f9 PF: > { %s2780_s27 = sld [smem:[#allocation11 + $0x1]]  ;;  %s2790_s24 = sshll.u32 %s3358_s16, 4 }
 0x2fa   : > { %s2781_s1 = sld [smem:[#allocation11 + $0x3]]  ;;  %s2393_s2 = scalar_lea.hbm %s5286_s9, %s2790_s24 }
 0x2fb   : > { %s2394_s16 = sshll.u32 %s5202_s4, 4  ;;  %s2396_s23 = sshll.u32 %s2393_s2, 4  ;;  %s2395_s16 = int_to_ptr.vmem [resolvable:$true] %s2394_s16  ;;  %s2397_s23 = int_to_ptr.hbm [resolvable:$true] %s2396_s23 }
 0x2fc   : > { %s2382_s11 = scalar_lea.sflag [#allocation5], %s3462_s15  ;;  %s3202_s17 = sshra.s32 %s2397_s23, 4  ;;  %s3203_s17 = int_to_ptr.hbm [resolvable:$true] %s3202_s17 }
 0x2fd   : > { %s3204_s14 = scalar_lea.hbm %s3203_s17, 32  ;;  %s3208_s6 = scalar_lea.hbm %s5286_s9, 64 }
 0x2fe   : > { %v2356_v47 = vld [vmem:[#allocation2] sm:$0xff]  ;;  %p3205_p13 = scmp.ne.s32.totalorder %s3203_s17, %s3204_s14  ;;  %p3209_p2 = scmp.lt.s32.totalorder %s3203_s17, %s5286_s9 }
 0x2ff   : > { %v2357_v53 = vld [vmem:[#allocation2 + $0x8] sm:$0xff]  ;;  %v2358_v3 = vsub.f32 1.0, %v2356_v47  ;;  %v2363_v33 = vstv %s2780_s27  ;;  %p3210_p1 = scmp.lt.s32.totalorder %s3208_s6, %s3204_s14 }
 0x300   : > { %v2359_v0 = vsub.f32 1.0, %v2357_v53  ;;  %v2364_v48 = vadd.f32 %v2363_v33, %v5186_v56  ;;  %v2367_v18 = vstv %s2781_s1  ;;  %v2365_v25 = vadd.f32 %v2363_v33, %v5194_v42  ;;  %p3206_p11 = pnand %p3205_p13, %p3431_p5 }
 0x301   : > { %v2360_v41 = vmax.f32 %v2358_v3, 0.0  ;;  %v2368_v59 = vadd.f32 %v2367_v18, %v5190_v10  ;;  %v2369_v22 = vadd.f32 %v2367_v18, %v5198_v24  ;;  %p3211_p3 = por %p3210_p1, %p3209_p2 }
 0x302   : > { %v2361_v11 = vmax.f32 %v2359_v0, 0.0  ;;  %p3207_p0 = pneg %p3206_p11 }
 0x303   : > { %v2372_v2 = vsub.f32 1.0, %v2360_v41  ;;  %v2370_v58 = vmul.f32 %v2364_v48, %v2360_v41 }
 0x304   : > { %v2373_v19 = vsub.f32 1.0, %v2361_v11  ;;  %v2371_v23 = vmul.f32 %v2365_v25, %v2361_v11  ;;  %p3212_p4 = pnand %p3211_p3, %p3207_p0 }
 0x305   : > { %v2374_v9 = vmul.f32 %v2372_v2, %v2368_v59 }
 0x306   : > { %v2375_v60 = vmul.f32 %v2373_v19, %v2369_v22 }
 0x307   : > { %v2376_v28 = vadd.f32 %v2374_v9, %v2370_v58 }
 0x308   : > { %v2377_v43 = vadd.f32 %v2375_v60, %v2371_v23 }
 0x309   : > { %2782 = vst [vmem:[%s5202_s4 + $0x10] sm:$0xff] %v2376_v28 }
 0x30a   : > { %2783 = vst [vmem:[%s5202_s4 + $0x18] sm:$0xff] %v2377_v43 }
 0x30b   : > { %3215 = shalt.err (!%p3212_p4)
}
 0x30c   : > { %s3281_s15 = smov 256   ;;  %s3282_s4 = smov 512  }
 0x30d   : > { %s3283_s5 = smov 16  }
 0x30e   : > { %2817 = dma.vmem_to_hbm [thread:$0]  (%p3431_p5), %s2395_s16, 512, %s2397_s23, %s2382_s11, %s3281_s15, %s3282_s4, %s3283_s5  }
 0x30f PF: > { %s2411_s3 = sand.u32 1, %s3258_s30   ;;  %p5314_p12 = scmp.ge.s32.totalorder %s3270_s12, 2 }
 0x310   : > { %s2412_s28 = scalar_lea.sflag [#allocation5], %s2411_s3 }
 0x311   : > { %p2843_p7 = pnand %p5314_p12, %p3435_p6 }
 0x313   : > { %p2844_p8 = pneg %p2843_p7 }
 0x315   : > { %3253 = dma.done.wait (%p2844_p8), %s2412_s28, 512  }
 0x316   : > { %3255 = vsyncadd (%p2844_p8), %s2412_s28, 4294966784  ;;  %s5315_s30 = sld [smem:[#allocation23_spill]]  ;;  %p26_p9 = scmp.ge.s32.totalorder %s3405_s29, 4  }
 0x317   : > { %s5316_s10 = sld [smem:[#allocation24_spill]]  ;;  %s5318_s12 = smov %s3405_s29 }
 0x318   : > { %s5317_s11 = sld [smem:[#allocation25_spill]]  ;;  %28 = sbr.rel (!%p26_p9) target bundleno = 17 (0x11), region = 159 }
 0x31d   :  { %2418 = vsyncpa [#allocation4], 1 }
 0x31e   :  { %2420 = vsyncpa [#allocation4 + $0x1], 1 }
 0x31f   :  { %2421 = vsyncpa [#allocation5], 1 }
 0x320   :  { %2423 = vsyncpa [#allocation5 + $0x1], 1 }
 0x321   :  { %2424 = vsyncpa [#allocation6], 1 }
 0x322   :  { %2426 = vsyncpa [#allocation6 + $0x1], 1 }
 0x323   :  { %2427 = vsyncpa [#allocation9], 1 }
 0x324   :  { %2428 = vsyncpa [#allocation12], 1 }
 0x325   :  { %2429 = vsyncpa [#allocation15], 1 }

</bundles_post_ra>
